<compile_context>
chip_gen: v6e
topology: v6e:2x2x1
jax: 0.10.0
libtpu: 0.0.40
codegen_flags: <defaults>
</compile_context>

<pallas_src>
import functools
import math

import jax
import jax.numpy as jnp
from jax.experimental import pallas as pl
from jax.experimental.pallas import tpu as pltpu


N_HEAD_VIEW = 12  # hard-coded in the PyTorch .view(B, L, 12, d_key) calls


# ---------------------------------------------------------------------------
# Fused MHA kernel: one invocation handles the whole (small) batch.
# ---------------------------------------------------------------------------
def _mha_kernel(
    q_ref, k_ref, v_ref,
    wq_ref, bq_ref, wk_ref, bk_ref, wv_ref, bv_ref,
    wfc_ref, bfc_ref, gamma_ref, beta_ref,
    o_ref, attn_ref=None,
    *, batch, len_q, len_k, n_head, d_key, d_value, inv_temperature, eps,
):
    f32 = jnp.float32
    bf16 = jnp.bfloat16

    xq = q_ref[...]                                      # (B*Lq, D) f32, residual

    # ---- dense Q/K/V projections: bf16 MXU operands, f32 accumulate --------
    q_proj = jnp.dot(xq.astype(bf16), wq_ref[...],
                     preferred_element_type=f32) + bq_ref[...]
    k_proj = jnp.dot(k_ref[...].astype(bf16), wk_ref[...],
                     preferred_element_type=f32) + bk_ref[...]
    v_proj = jnp.dot(v_ref[...].astype(bf16), wv_ref[...],
                     preferred_element_type=f32) + bv_ref[...]

    ctx_rows = []    # per-batch (Lq, H*dv) f32, heads merged along lanes
    attn_rows = []   # per-batch (Lq, H*Lk) f32, lane-dense attention probs
    for b in range(batch):                               # static tiny batch loop
        q_b = q_proj[b * len_q:(b + 1) * len_q, :]       # (Lq, D)
        k_b = k_proj[b * len_k:(b + 1) * len_k, :]       # (Lk, D)
        v_b = v_proj[b * len_k:(b + 1) * len_k, :]       # (Lk, D)

        ctx_h = []
        p_all = []
        for h in range(n_head):                          # static; 12 heads
            qh = q_b[:, h * d_key:(h + 1) * d_key].astype(bf16)      # (Lq, dk)
            kh = k_b[:, h * d_key:(h + 1) * d_key].astype(bf16)      # (Lk, dk)
            vh = v_b[:, h * d_value:(h + 1) * d_value].astype(bf16)  # (Lk, dv)

            # scaled dot-product attention (softmax math kept in f32)
            s = jnp.einsum("qd,kd->qk", qh, kh,
                           preferred_element_type=f32) * inv_temperature
            # TODO(synk): optional `mask` argument not implemented (mask=None)
            s = s - jnp.max(s, axis=-1, keepdims=True)
            p = jnp.exp(s)
            p = p / jnp.sum(p, axis=-1, keepdims=True)   # exact softmax
            if attn_ref is not None:
                p_all.append(p)

            ctx_h.append(jnp.dot(p.astype(bf16), vh,
                                 preferred_element_type=f32))        # (Lq, dv)

        # head merge folded into a lane concat: feature order h*d_v + d, same
        # as torch's transpose(1, 2).contiguous().view(B, Lq, d_model)
        ctx_rows.append(jnp.concatenate(ctx_h, axis=-1))             # (Lq, H*dv)
        if attn_ref is not None:
            attn_rows.append(jnp.concatenate(p_all, axis=-1))        # (Lq, H*Lk)

    ctx = ctx_rows[0] if batch == 1 else jnp.concatenate(ctx_rows, axis=0)

    # ---- single dense output projection + residual --------------------------
    y = jnp.dot(ctx.astype(bf16), wfc_ref[...],
                preferred_element_type=f32) + bfc_ref[...]
    # TODO(synk): dropout(p=0.1) skipped (identity in eval mode)
    y = y + xq

    # ---- LayerNorm(eps=1e-6), matching nn.LayerNorm(d_model, eps=1e-06) -----
    mean = jnp.mean(y, axis=-1, keepdims=True)
    var = jnp.mean((y - mean) ** 2, axis=-1, keepdims=True)
    y = (y - mean) * jax.lax.rsqrt(var + eps)
    o_ref[...] = y * gamma_ref[...] + beta_ref[...]

    if attn_ref is not None:
        attn_flat = (attn_rows[0] if batch == 1
                     else jnp.concatenate(attn_rows, axis=0))
        attn_ref[...] = attn_flat                        # (B*Lq, H*Lk) lane-dense


# ---------------------------------------------------------------------------
# Parameter init: weights stored ONCE in kernel-ready dense bf16 layouts.
# ---------------------------------------------------------------------------
def init_params(key, d_model, d_key, d_value, n_head=N_HEAD_VIEW):
    if d_model != n_head * d_key or d_model != n_head * d_value:
        raise ValueError("d_model must equal n_head*d_key and n_head*d_value")

    ks = jax.random.split(key, 4)
    s = 1.0 / math.sqrt(d_model)

    def lin(k):
        kw, kb = jax.random.split(k)
        w = jax.random.uniform(kw, (d_model, d_model), jnp.float32, -s, s)  # (out,in)
        b = jax.random.uniform(kb, (d_model,), jnp.float32, -s, s)
        # nn.Linear: y = x @ w.T + b  ->  store w.T (lane-dense), bf16 for the MXU
        return jnp.asarray(w).T.astype(jnp.bfloat16), b.reshape(1, d_model)

    wq, bq = lin(ks[0])
    wk, bk = lin(ks[1])
    wv, bv = lin(ks[2])
    wfc, bfc = lin(ks[3])

    return {
        "d_key": d_key, "d_value": d_value,
        "wq": wq, "bq": bq, "wk": wk, "bk": bk, "wv": wv, "bv": bv,
        "wfc": wfc, "bfc": bfc,
        "gamma": jnp.ones((1, d_model), jnp.float32),
        "beta": jnp.zeros((1, d_model), jnp.float32),
    }


# ---------------------------------------------------------------------------
# Module wrapper: one pallas_call, whole batch in one grid step.
# ---------------------------------------------------------------------------
def multi_head_attention(params, query, key, value, *, return_attn=False):
    """query/key/value: (B, L, d_model) float32. Returns (out, attn or None)."""
    B, Lq, D = query.shape
    Lk = key.shape[1]
    Lv = value.shape[1]
    H = N_HEAD_VIEW
    dk = params["d_key"]
    dv = params["d_value"]
    if D != H * dk or D != H * dv:
        raise ValueError("d_model must equal 12*d_key and 12*d_value")
    if Lk != Lv:
        raise ValueError("key and value must have the same sequence length")

    # Flatten batch*seq outside the kernel (free XLA metadata reshape) so the
    # projections run on (B*L, D) rows in a single grid step.
    q2 = query.reshape(B * Lq, D)
    k2 = key.reshape(B * Lk, D)
    v2 = value.reshape(B * Lk, D)

    kernel = functools.partial(
        _mha_kernel,
        batch=B, len_q=Lq, len_k=Lk, n_head=H, d_key=dk, d_value=dv,
        inv_temperature=1.0 / math.sqrt(dk), eps=1e-6,
    )

    full = lambda i: (0, 0)
    in_specs = [
        pl.BlockSpec((B * Lq, D), full),   # query rows (also the residual)
        pl.BlockSpec((B * Lk, D), full),   # key rows
        pl.BlockSpec((B * Lk, D), full),   # value rows
        pl.BlockSpec((D, D), full),        # Wq^T (bf16, lane-dense)
        pl.BlockSpec((1, D), full),        # bq
        pl.BlockSpec((D, D), full),        # Wk^T
        pl.BlockSpec((1, D), full),        # bk
        pl.BlockSpec((D, D), full),        # Wv^T
        pl.BlockSpec((1, D), full),        # bv
        pl.BlockSpec((D, D), full),        # Wfc^T
        pl.BlockSpec((1, D), full),        # bfc
        pl.BlockSpec((1, D), full),        # gamma
        pl.BlockSpec((1, D), full),        # beta
    ]

    if return_attn:
        out_shape = (
            jax.ShapeDtypeStruct((B * Lq, D), jnp.float32),
            jax.ShapeDtypeStruct((B * Lq, H * Lk), jnp.float32),  # lane-dense
        )
        out_specs = (
            pl.BlockSpec((B * Lq, D), full),
            pl.BlockSpec((B * Lq, H * Lk), full),
        )
    else:
        out_shape = jax.ShapeDtypeStruct((B * Lq, D), jnp.float32)
        out_specs = pl.BlockSpec((B * Lq, D), full)

    result = pl.pallas_call(
        kernel,
        out_shape=out_shape,
        grid=(1,),
        in_specs=in_specs,
        out_specs=out_specs,
        compiler_params=pltpu.CompilerParams(
            dimension_semantics=("arbitrary",)
        ),
    )(
        q2, k2, v2,
        params["wq"], params["bq"],
        params["wk"], params["bk"],
        params["wv"], params["bv"],
        params["wfc"], params["bfc"],
        params["gamma"], params["beta"],
    )

    if return_attn:
        out_flat, attn_flat = result
        out = out_flat.reshape(B, Lq, D)
        # (B*Lq, H*Lk) -> (B, H, Lq, Lk): cheap XLA-side rearrangement
        attn = attn_flat.reshape(B, Lq, H, Lk).transpose(0, 2, 1, 3)
        return out, attn
    return result.reshape(B, Lq, D), None


if __name__ == "__main__":
    # small shapes consistent with the module: d_model must be 12 * d_key
    B, L = 2, 8
    d_key = d_value = 8
    d_model = N_HEAD_VIEW * d_key  # 96
    n_head = N_HEAD_VIEW

    root = jax.random.PRNGKey(0)
    kp, kq, kk, kv = jax.random.split(root, 4)
    params = init_params(kp, d_model, d_key, d_value)

    query = jax.random.normal(kq, (B, L, d_model), jnp.float32)
    key_in = jax.random.normal(kk, (B, L, d_model), jnp.float32)
    value_in = jax.random.normal(kv, (B, L, d_model), jnp.float32)

    # full module semantics: returns (output, attention probabilities)
    out, attn = multi_head_attention(params, query, key_in, value_in,
                                     return_attn=True)
    jax.block_until_ready((out, attn))
    assert out.shape == (B, L, d_model)
    assert attn.shape == (B, n_head, L, L)

    # default fast path: skips the O(L^2) attention writeback entirely
    out2, _ = multi_head_attention(params, query, key_in, value_in)
    jax.block_until_ready(out2)
    assert out2.shape == (B, L, d_model)

    print("KERNEL_OK")
</pallas_src>

<mosaic_0001>
module attributes {stable_mosaic.version = 11 : i64} {
  func.func @_mha_kernel(%arg0: i32, %arg1: memref<16x96xf32, #tpu.memory_space<vmem>>, %arg2: memref<16x96xf32, #tpu.memory_space<vmem>>, %arg3: memref<16x96xf32, #tpu.memory_space<vmem>>, %arg4: memref<96x96xbf16, #tpu.memory_space<vmem>>, %arg5: memref<1x96xf32, #tpu.memory_space<vmem>>, %arg6: memref<96x96xbf16, #tpu.memory_space<vmem>>, %arg7: memref<1x96xf32, #tpu.memory_space<vmem>>, %arg8: memref<96x96xbf16, #tpu.memory_space<vmem>>, %arg9: memref<1x96xf32, #tpu.memory_space<vmem>>, %arg10: memref<96x96xbf16, #tpu.memory_space<vmem>>, %arg11: memref<1x96xf32, #tpu.memory_space<vmem>>, %arg12: memref<1x96xf32, #tpu.memory_space<vmem>>, %arg13: memref<1x96xf32, #tpu.memory_space<vmem>>, %arg14: memref<16x96xf32, #tpu.memory_space<vmem>>, %arg15: memref<16x96xf32, #tpu.memory_space<vmem>>) attributes {dimension_semantics = [#tpu.dimension_semantics<arbitrary>], iteration_bounds = array<i64: 1>, scalar_prefetch = 0 : i64, scratch_operands = 0 : i64, tpu.core_type = #tpu.core_type<tc>, window_params = [{pipeline_mode = #tpu.pipeline_mode<synchronous>, transform_indices = @transform_0, window_bounds = array<i64: 16, 96>}, {pipeline_mode = #tpu.pipeline_mode<synchronous>, transform_indices = @transform_1, window_bounds = array<i64: 16, 96>}, {pipeline_mode = #tpu.pipeline_mode<synchronous>, transform_indices = @transform_2, window_bounds = array<i64: 16, 96>}, {pipeline_mode = #tpu.pipeline_mode<synchronous>, transform_indices = @transform_3, window_bounds = array<i64: 96, 96>}, {pipeline_mode = #tpu.pipeline_mode<synchronous>, transform_indices = @transform_4, window_bounds = array<i64: 1, 96>}, {pipeline_mode = #tpu.pipeline_mode<synchronous>, transform_indices = @transform_5, window_bounds = array<i64: 96, 96>}, {pipeline_mode = #tpu.pipeline_mode<synchronous>, transform_indices = @transform_6, window_bounds = array<i64: 1, 96>}, {pipeline_mode = #tpu.pipeline_mode<synchronous>, transform_indices = @transform_7, window_bounds = array<i64: 96, 96>}, {pipeline_mode = #tpu.pipeline_mode<synchronous>, transform_indices = @transform_8, window_bounds = array<i64: 1, 96>}, {pipeline_mode = #tpu.pipeline_mode<synchronous>, transform_indices = @transform_9, window_bounds = array<i64: 96, 96>}, {pipeline_mode = #tpu.pipeline_mode<synchronous>, transform_indices = @transform_10, window_bounds = array<i64: 1, 96>}, {pipeline_mode = #tpu.pipeline_mode<synchronous>, transform_indices = @transform_11, window_bounds = array<i64: 1, 96>}, {pipeline_mode = #tpu.pipeline_mode<synchronous>, transform_indices = @transform_12, window_bounds = array<i64: 1, 96>}, {pipeline_mode = #tpu.pipeline_mode<synchronous>, transform_indices = @transform_13, window_bounds = array<i64: 16, 96>}, {pipeline_mode = #tpu.pipeline_mode<synchronous>, transform_indices = @transform_14, window_bounds = array<i64: 16, 96>}]} {
    %c0 = arith.constant 0 : index
    %c0_0 = arith.constant 0 : index
    %0 = vector.load %arg1[%c0, %c0_0] : memref<16x96xf32, #tpu.memory_space<vmem>>, vector<16x96xf32>
    %1 = arith.truncf %0 : vector<16x96xf32> to vector<16x96xbf16>
    %c0_1 = arith.constant 0 : index
    %c0_2 = arith.constant 0 : index
    %2 = vector.load %arg4[%c0_1, %c0_2] : memref<96x96xbf16, #tpu.memory_space<vmem>>, vector<96x96xbf16>
    %cst = arith.constant dense<0.000000e+00> : vector<16x96xf32>
    %3 = tpu.matmul %1, %2, %cst {dimension_numbers = #tpu.dot_dimension_numbers<[1], [0], [0], [1], [0, 0, 1, 1], [], []>} : vector<16x96xbf16>, vector<96x96xbf16>, vector<16x96xf32> -> vector<16x96xf32>
    %c0_3 = arith.constant 0 : index
    %c0_4 = arith.constant 0 : index
    %4 = vector.load %arg5[%c0_3, %c0_4] : memref<1x96xf32, #tpu.memory_space<vmem>>, vector<1x96xf32>
    %5 = vector.broadcast %4 : vector<1x96xf32> to vector<16x96xf32>
    %6 = arith.addf %3, %5 : vector<16x96xf32>
    %c0_5 = arith.constant 0 : index
    %c0_6 = arith.constant 0 : index
    %7 = vector.load %arg2[%c0_5, %c0_6] : memref<16x96xf32, #tpu.memory_space<vmem>>, vector<16x96xf32>
    %8 = arith.truncf %7 : vector<16x96xf32> to vector<16x96xbf16>
    %c0_7 = arith.constant 0 : index
    %c0_8 = arith.constant 0 : index
    %9 = vector.load %arg6[%c0_7, %c0_8] : memref<96x96xbf16, #tpu.memory_space<vmem>>, vector<96x96xbf16>
    %cst_9 = arith.constant dense<0.000000e+00> : vector<16x96xf32>
    %10 = tpu.matmul %8, %9, %cst_9 {dimension_numbers = #tpu.dot_dimension_numbers<[1], [0], [0], [1], [0, 0, 1, 1], [], []>} : vector<16x96xbf16>, vector<96x96xbf16>, vector<16x96xf32> -> vector<16x96xf32>
    %c0_10 = arith.constant 0 : index
    %c0_11 = arith.constant 0 : index
    %11 = vector.load %arg7[%c0_10, %c0_11] : memref<1x96xf32, #tpu.memory_space<vmem>>, vector<1x96xf32>
    %12 = vector.broadcast %11 : vector<1x96xf32> to vector<16x96xf32>
    %13 = arith.addf %10, %12 : vector<16x96xf32>
    %c0_12 = arith.constant 0 : index
    %c0_13 = arith.constant 0 : index
    %14 = vector.load %arg3[%c0_12, %c0_13] : memref<16x96xf32, #tpu.memory_space<vmem>>, vector<16x96xf32>
    %15 = arith.truncf %14 : vector<16x96xf32> to vector<16x96xbf16>
    %c0_14 = arith.constant 0 : index
    %c0_15 = arith.constant 0 : index
    %16 = vector.load %arg8[%c0_14, %c0_15] : memref<96x96xbf16, #tpu.memory_space<vmem>>, vector<96x96xbf16>
    %cst_16 = arith.constant dense<0.000000e+00> : vector<16x96xf32>
    %17 = tpu.matmul %15, %16, %cst_16 {dimension_numbers = #tpu.dot_dimension_numbers<[1], [0], [0], [1], [0, 0, 1, 1], [], []>} : vector<16x96xbf16>, vector<96x96xbf16>, vector<16x96xf32> -> vector<16x96xf32>
    %c0_17 = arith.constant 0 : index
    %c0_18 = arith.constant 0 : index
    %18 = vector.load %arg9[%c0_17, %c0_18] : memref<1x96xf32, #tpu.memory_space<vmem>>, vector<1x96xf32>
    %19 = vector.broadcast %18 : vector<1x96xf32> to vector<16x96xf32>
    %20 = arith.addf %17, %19 : vector<16x96xf32>
    %21 = vector.extract_strided_slice %6 {offsets = [0, 0], sizes = [8, 96], strides = [1, 1]} : vector<16x96xf32> to vector<8x96xf32>
    %22 = vector.extract_strided_slice %13 {offsets = [0, 0], sizes = [8, 96], strides = [1, 1]} : vector<16x96xf32> to vector<8x96xf32>
    %23 = vector.extract_strided_slice %20 {offsets = [0, 0], sizes = [8, 96], strides = [1, 1]} : vector<16x96xf32> to vector<8x96xf32>
    %24 = vector.extract_strided_slice %21 {offsets = [0, 0], sizes = [8, 8], strides = [1, 1]} : vector<8x96xf32> to vector<8x8xf32>
    %25 = arith.truncf %24 : vector<8x8xf32> to vector<8x8xbf16>
    %26 = vector.extract_strided_slice %22 {offsets = [0, 0], sizes = [8, 8], strides = [1, 1]} : vector<8x96xf32> to vector<8x8xf32>
    %27 = arith.truncf %26 : vector<8x8xf32> to vector<8x8xbf16>
    %28 = vector.extract_strided_slice %23 {offsets = [0, 0], sizes = [8, 8], strides = [1, 1]} : vector<8x96xf32> to vector<8x8xf32>
    %29 = arith.truncf %28 : vector<8x8xf32> to vector<8x8xbf16>
    "tpu.trace_start"() <{level = 10 : i32, message = "qd,kd->qk"}> : () -> ()
    %cst_19 = arith.constant dense<0.000000e+00> : vector<8x8xf32>
    %30 = tpu.matmul %25, %27, %cst_19 {dimension_numbers = #tpu.dot_dimension_numbers<[1], [1], [0], [0], [0, 0, 1, 0], [], []>} : vector<8x8xbf16>, vector<8x8xbf16>, vector<8x8xf32> -> vector<8x8xf32>
    "tpu.trace_stop"() : () -> ()
    %cst_20 = arith.constant 0.353553385 : f32
    %31 = vector.broadcast %cst_20 : f32 to vector<8x8xf32>
    %32 = arith.mulf %30, %31 : vector<8x8xf32>
    %cst_21 = arith.constant dense<0xFF800000> : vector<8xf32>
    %33 = vector.multi_reduction <maximumf>, %32, %cst_21 [1] : vector<8x8xf32> to vector<8xf32>
    %34 = vector.shape_cast %33 : vector<8xf32> to vector<8x1xf32>
    %35 = vector.broadcast %34 : vector<8x1xf32> to vector<8x8xf32>
    %36 = arith.subf %32, %35 : vector<8x8xf32>
    %37 = math.exp %36 : vector<8x8xf32>
    %cst_22 = arith.constant dense<0.000000e+00> : vector<8xf32>
    %38 = vector.multi_reduction <add>, %37, %cst_22 [1] : vector<8x8xf32> to vector<8xf32>
    %39 = vector.shape_cast %38 : vector<8xf32> to vector<8x1xf32>
    %40 = vector.broadcast %39 : vector<8x1xf32> to vector<8x8xf32>
    %41 = arith.divf %37, %40 : vector<8x8xf32>
    %42 = arith.truncf %41 : vector<8x8xf32> to vector<8x8xbf16>
    %cst_23 = arith.constant dense<0.000000e+00> : vector<8x8xf32>
    %43 = tpu.matmul %42, %29, %cst_23 {dimension_numbers = #tpu.dot_dimension_numbers<[1], [0], [0], [1], [0, 0, 1, 1], [], []>} : vector<8x8xbf16>, vector<8x8xbf16>, vector<8x8xf32> -> vector<8x8xf32>
    %44 = vector.extract_strided_slice %21 {offsets = [0, 8], sizes = [8, 8], strides = [1, 1]} : vector<8x96xf32> to vector<8x8xf32>
    %45 = arith.truncf %44 : vector<8x8xf32> to vector<8x8xbf16>
    %46 = vector.extract_strided_slice %22 {offsets = [0, 8], sizes = [8, 8], strides = [1, 1]} : vector<8x96xf32> to vector<8x8xf32>
    %47 = arith.truncf %46 : vector<8x8xf32> to vector<8x8xbf16>
    %48 = vector.extract_strided_slice %23 {offsets = [0, 8], sizes = [8, 8], strides = [1, 1]} : vector<8x96xf32> to vector<8x8xf32>
    %49 = arith.truncf %48 : vector<8x8xf32> to vector<8x8xbf16>
    "tpu.trace_start"() <{level = 10 : i32, message = "qd,kd->qk"}> : () -> ()
    %cst_24 = arith.constant dense<0.000000e+00> : vector<8x8xf32>
    %50 = tpu.matmul %45, %47, %cst_24 {dimension_numbers = #tpu.dot_dimension_numbers<[1], [1], [0], [0], [0, 0, 1, 0], [], []>} : vector<8x8xbf16>, vector<8x8xbf16>, vector<8x8xf32> -> vector<8x8xf32>
    "tpu.trace_stop"() : () -> ()
    %cst_25 = arith.constant 0.353553385 : f32
    %51 = vector.broadcast %cst_25 : f32 to vector<8x8xf32>
    %52 = arith.mulf %50, %51 : vector<8x8xf32>
    %cst_26 = arith.constant dense<0xFF800000> : vector<8xf32>
    %53 = vector.multi_reduction <maximumf>, %52, %cst_26 [1] : vector<8x8xf32> to vector<8xf32>
    %54 = vector.shape_cast %53 : vector<8xf32> to vector<8x1xf32>
    %55 = vector.broadcast %54 : vector<8x1xf32> to vector<8x8xf32>
    %56 = arith.subf %52, %55 : vector<8x8xf32>
    %57 = math.exp %56 : vector<8x8xf32>
    %cst_27 = arith.constant dense<0.000000e+00> : vector<8xf32>
    %58 = vector.multi_reduction <add>, %57, %cst_27 [1] : vector<8x8xf32> to vector<8xf32>
    %59 = vector.shape_cast %58 : vector<8xf32> to vector<8x1xf32>
    %60 = vector.broadcast %59 : vector<8x1xf32> to vector<8x8xf32>
    %61 = arith.divf %57, %60 : vector<8x8xf32>
    %62 = arith.truncf %61 : vector<8x8xf32> to vector<8x8xbf16>
    %cst_28 = arith.constant dense<0.000000e+00> : vector<8x8xf32>
    %63 = tpu.matmul %62, %49, %cst_28 {dimension_numbers = #tpu.dot_dimension_numbers<[1], [0], [0], [1], [0, 0, 1, 1], [], []>} : vector<8x8xbf16>, vector<8x8xbf16>, vector<8x8xf32> -> vector<8x8xf32>
    %64 = vector.extract_strided_slice %21 {offsets = [0, 16], sizes = [8, 8], strides = [1, 1]} : vector<8x96xf32> to vector<8x8xf32>
    %65 = arith.truncf %64 : vector<8x8xf32> to vector<8x8xbf16>
    %66 = vector.extract_strided_slice %22 {offsets = [0, 16], sizes = [8, 8], strides = [1, 1]} : vector<8x96xf32> to vector<8x8xf32>
    %67 = arith.truncf %66 : vector<8x8xf32> to vector<8x8xbf16>
    %68 = vector.extract_strided_slice %23 {offsets = [0, 16], sizes = [8, 8], strides = [1, 1]} : vector<8x96xf32> to vector<8x8xf32>
    %69 = arith.truncf %68 : vector<8x8xf32> to vector<8x8xbf16>
    "tpu.trace_start"() <{level = 10 : i32, message = "qd,kd->qk"}> : () -> ()
    %cst_29 = arith.constant dense<0.000000e+00> : vector<8x8xf32>
    %70 = tpu.matmul %65, %67, %cst_29 {dimension_numbers = #tpu.dot_dimension_numbers<[1], [1], [0], [0], [0, 0, 1, 0], [], []>} : vector<8x8xbf16>, vector<8x8xbf16>, vector<8x8xf32> -> vector<8x8xf32>
    "tpu.trace_stop"() : () -> ()
    %cst_30 = arith.constant 0.353553385 : f32
    %71 = vector.broadcast %cst_30 : f32 to vector<8x8xf32>
    %72 = arith.mulf %70, %71 : vector<8x8xf32>
    %cst_31 = arith.constant dense<0xFF800000> : vector<8xf32>
    %73 = vector.multi_reduction <maximumf>, %72, %cst_31 [1] : vector<8x8xf32> to vector<8xf32>
    %74 = vector.shape_cast %73 : vector<8xf32> to vector<8x1xf32>
    %75 = vector.broadcast %74 : vector<8x1xf32> to vector<8x8xf32>
    %76 = arith.subf %72, %75 : vector<8x8xf32>
    %77 = math.exp %76 : vector<8x8xf32>
    %cst_32 = arith.constant dense<0.000000e+00> : vector<8xf32>
    %78 = vector.multi_reduction <add>, %77, %cst_32 [1] : vector<8x8xf32> to vector<8xf32>
    %79 = vector.shape_cast %78 : vector<8xf32> to vector<8x1xf32>
    %80 = vector.broadcast %79 : vector<8x1xf32> to vector<8x8xf32>
    %81 = arith.divf %77, %80 : vector<8x8xf32>
    %82 = arith.truncf %81 : vector<8x8xf32> to vector<8x8xbf16>
    %cst_33 = arith.constant dense<0.000000e+00> : vector<8x8xf32>
    %83 = tpu.matmul %82, %69, %cst_33 {dimension_numbers = #tpu.dot_dimension_numbers<[1], [0], [0], [1], [0, 0, 1, 1], [], []>} : vector<8x8xbf16>, vector<8x8xbf16>, vector<8x8xf32> -> vector<8x8xf32>
    %84 = vector.extract_strided_slice %21 {offsets = [0, 24], sizes = [8, 8], strides = [1, 1]} : vector<8x96xf32> to vector<8x8xf32>
    %85 = arith.truncf %84 : vector<8x8xf32> to vector<8x8xbf16>
    %86 = vector.extract_strided_slice %22 {offsets = [0, 24], sizes = [8, 8], strides = [1, 1]} : vector<8x96xf32> to vector<8x8xf32>
    %87 = arith.truncf %86 : vector<8x8xf32> to vector<8x8xbf16>
    %88 = vector.extract_strided_slice %23 {offsets = [0, 24], sizes = [8, 8], strides = [1, 1]} : vector<8x96xf32> to vector<8x8xf32>
    %89 = arith.truncf %88 : vector<8x8xf32> to vector<8x8xbf16>
    "tpu.trace_start"() <{level = 10 : i32, message = "qd,kd->qk"}> : () -> ()
    %cst_34 = arith.constant dense<0.000000e+00> : vector<8x8xf32>
    %90 = tpu.matmul %85, %87, %cst_34 {dimension_numbers = #tpu.dot_dimension_numbers<[1], [1], [0], [0], [0, 0, 1, 0], [], []>} : vector<8x8xbf16>, vector<8x8xbf16>, vector<8x8xf32> -> vector<8x8xf32>
    "tpu.trace_stop"() : () -> ()
    %cst_35 = arith.constant 0.353553385 : f32
    %91 = vector.broadcast %cst_35 : f32 to vector<8x8xf32>
    %92 = arith.mulf %90, %91 : vector<8x8xf32>
    %cst_36 = arith.constant dense<0xFF800000> : vector<8xf32>
    %93 = vector.multi_reduction <maximumf>, %92, %cst_36 [1] : vector<8x8xf32> to vector<8xf32>
    %94 = vector.shape_cast %93 : vector<8xf32> to vector<8x1xf32>
    %95 = vector.broadcast %94 : vector<8x1xf32> to vector<8x8xf32>
    %96 = arith.subf %92, %95 : vector<8x8xf32>
    %97 = math.exp %96 : vector<8x8xf32>
    %cst_37 = arith.constant dense<0.000000e+00> : vector<8xf32>
    %98 = vector.multi_reduction <add>, %97, %cst_37 [1] : vector<8x8xf32> to vector<8xf32>
    %99 = vector.shape_cast %98 : vector<8xf32> to vector<8x1xf32>
    %100 = vector.broadcast %99 : vector<8x1xf32> to vector<8x8xf32>
    %101 = arith.divf %97, %100 : vector<8x8xf32>
    %102 = arith.truncf %101 : vector<8x8xf32> to vector<8x8xbf16>
    %cst_38 = arith.constant dense<0.000000e+00> : vector<8x8xf32>
    %103 = tpu.matmul %102, %89, %cst_38 {dimension_numbers = #tpu.dot_dimension_numbers<[1], [0], [0], [1], [0, 0, 1, 1], [], []>} : vector<8x8xbf16>, vector<8x8xbf16>, vector<8x8xf32> -> vector<8x8xf32>
    %104 = vector.extract_strided_slice %21 {offsets = [0, 32], sizes = [8, 8], strides = [1, 1]} : vector<8x96xf32> to vector<8x8xf32>
    %105 = arith.truncf %104 : vector<8x8xf32> to vector<8x8xbf16>
    %106 = vector.extract_strided_slice %22 {offsets = [0, 32], sizes = [8, 8], strides = [1, 1]} : vector<8x96xf32> to vector<8x8xf32>
    %107 = arith.truncf %106 : vector<8x8xf32> to vector<8x8xbf16>
    %108 = vector.extract_strided_slice %23 {offsets = [0, 32], sizes = [8, 8], strides = [1, 1]} : vector<8x96xf32> to vector<8x8xf32>
    %109 = arith.truncf %108 : vector<8x8xf32> to vector<8x8xbf16>
    "tpu.trace_start"() <{level = 10 : i32, message = "qd,kd->qk"}> : () -> ()
    %cst_39 = arith.constant dense<0.000000e+00> : vector<8x8xf32>
    %110 = tpu.matmul %105, %107, %cst_39 {dimension_numbers = #tpu.dot_dimension_numbers<[1], [1], [0], [0], [0, 0, 1, 0], [], []>} : vector<8x8xbf16>, vector<8x8xbf16>, vector<8x8xf32> -> vector<8x8xf32>
    "tpu.trace_stop"() : () -> ()
    %cst_40 = arith.constant 0.353553385 : f32
    %111 = vector.broadcast %cst_40 : f32 to vector<8x8xf32>
    %112 = arith.mulf %110, %111 : vector<8x8xf32>
    %cst_41 = arith.constant dense<0xFF800000> : vector<8xf32>
    %113 = vector.multi_reduction <maximumf>, %112, %cst_41 [1] : vector<8x8xf32> to vector<8xf32>
    %114 = vector.shape_cast %113 : vector<8xf32> to vector<8x1xf32>
    %115 = vector.broadcast %114 : vector<8x1xf32> to vector<8x8xf32>
    %116 = arith.subf %112, %115 : vector<8x8xf32>
    %117 = math.exp %116 : vector<8x8xf32>
    %cst_42 = arith.constant dense<0.000000e+00> : vector<8xf32>
    %118 = vector.multi_reduction <add>, %117, %cst_42 [1] : vector<8x8xf32> to vector<8xf32>
    %119 = vector.shape_cast %118 : vector<8xf32> to vector<8x1xf32>
    %120 = vector.broadcast %119 : vector<8x1xf32> to vector<8x8xf32>
    %121 = arith.divf %117, %120 : vector<8x8xf32>
    %122 = arith.truncf %121 : vector<8x8xf32> to vector<8x8xbf16>
    %cst_43 = arith.constant dense<0.000000e+00> : vector<8x8xf32>
    %123 = tpu.matmul %122, %109, %cst_43 {dimension_numbers = #tpu.dot_dimension_numbers<[1], [0], [0], [1], [0, 0, 1, 1], [], []>} : vector<8x8xbf16>, vector<8x8xbf16>, vector<8x8xf32> -> vector<8x8xf32>
    %124 = vector.extract_strided_slice %21 {offsets = [0, 40], sizes = [8, 8], strides = [1, 1]} : vector<8x96xf32> to vector<8x8xf32>
    %125 = arith.truncf %124 : vector<8x8xf32> to vector<8x8xbf16>
    %126 = vector.extract_strided_slice %22 {offsets = [0, 40], sizes = [8, 8], strides = [1, 1]} : vector<8x96xf32> to vector<8x8xf32>
    %127 = arith.truncf %126 : vector<8x8xf32> to vector<8x8xbf16>
    %128 = vector.extract_strided_slice %23 {offsets = [0, 40], sizes = [8, 8], strides = [1, 1]} : vector<8x96xf32> to vector<8x8xf32>
    %129 = arith.truncf %128 : vector<8x8xf32> to vector<8x8xbf16>
    "tpu.trace_start"() <{level = 10 : i32, message = "qd,kd->qk"}> : () -> ()
    %cst_44 = arith.constant dense<0.000000e+00> : vector<8x8xf32>
    %130 = tpu.matmul %125, %127, %cst_44 {dimension_numbers = #tpu.dot_dimension_numbers<[1], [1], [0], [0], [0, 0, 1, 0], [], []>} : vector<8x8xbf16>, vector<8x8xbf16>, vector<8x8xf32> -> vector<8x8xf32>
    "tpu.trace_stop"() : () -> ()
    %cst_45 = arith.constant 0.353553385 : f32
    %131 = vector.broadcast %cst_45 : f32 to vector<8x8xf32>
    %132 = arith.mulf %130, %131 : vector<8x8xf32>
    %cst_46 = arith.constant dense<0xFF800000> : vector<8xf32>
    %133 = vector.multi_reduction <maximumf>, %132, %cst_46 [1] : vector<8x8xf32> to vector<8xf32>
    %134 = vector.shape_cast %133 : vector<8xf32> to vector<8x1xf32>
    %135 = vector.broadcast %134 : vector<8x1xf32> to vector<8x8xf32>
    %136 = arith.subf %132, %135 : vector<8x8xf32>
    %137 = math.exp %136 : vector<8x8xf32>
    %cst_47 = arith.constant dense<0.000000e+00> : vector<8xf32>
    %138 = vector.multi_reduction <add>, %137, %cst_47 [1] : vector<8x8xf32> to vector<8xf32>
    %139 = vector.shape_cast %138 : vector<8xf32> to vector<8x1xf32>
    %140 = vector.broadcast %139 : vector<8x1xf32> to vector<8x8xf32>
    %141 = arith.divf %137, %140 : vector<8x8xf32>
    %142 = arith.truncf %141 : vector<8x8xf32> to vector<8x8xbf16>
    %cst_48 = arith.constant dense<0.000000e+00> : vector<8x8xf32>
    %143 = tpu.matmul %142, %129, %cst_48 {dimension_numbers = #tpu.dot_dimension_numbers<[1], [0], [0], [1], [0, 0, 1, 1], [], []>} : vector<8x8xbf16>, vector<8x8xbf16>, vector<8x8xf32> -> vector<8x8xf32>
    %144 = vector.extract_strided_slice %21 {offsets = [0, 48], sizes = [8, 8], strides = [1, 1]} : vector<8x96xf32> to vector<8x8xf32>
    %145 = arith.truncf %144 : vector<8x8xf32> to vector<8x8xbf16>
    %146 = vector.extract_strided_slice %22 {offsets = [0, 48], sizes = [8, 8], strides = [1, 1]} : vector<8x96xf32> to vector<8x8xf32>
    %147 = arith.truncf %146 : vector<8x8xf32> to vector<8x8xbf16>
    %148 = vector.extract_strided_slice %23 {offsets = [0, 48], sizes = [8, 8], strides = [1, 1]} : vector<8x96xf32> to vector<8x8xf32>
    %149 = arith.truncf %148 : vector<8x8xf32> to vector<8x8xbf16>
    "tpu.trace_start"() <{level = 10 : i32, message = "qd,kd->qk"}> : () -> ()
    %cst_49 = arith.constant dense<0.000000e+00> : vector<8x8xf32>
    %150 = tpu.matmul %145, %147, %cst_49 {dimension_numbers = #tpu.dot_dimension_numbers<[1], [1], [0], [0], [0, 0, 1, 0], [], []>} : vector<8x8xbf16>, vector<8x8xbf16>, vector<8x8xf32> -> vector<8x8xf32>
    "tpu.trace_stop"() : () -> ()
    %cst_50 = arith.constant 0.353553385 : f32
    %151 = vector.broadcast %cst_50 : f32 to vector<8x8xf32>
    %152 = arith.mulf %150, %151 : vector<8x8xf32>
    %cst_51 = arith.constant dense<0xFF800000> : vector<8xf32>
    %153 = vector.multi_reduction <maximumf>, %152, %cst_51 [1] : vector<8x8xf32> to vector<8xf32>
    %154 = vector.shape_cast %153 : vector<8xf32> to vector<8x1xf32>
    %155 = vector.broadcast %154 : vector<8x1xf32> to vector<8x8xf32>
    %156 = arith.subf %152, %155 : vector<8x8xf32>
    %157 = math.exp %156 : vector<8x8xf32>
    %cst_52 = arith.constant dense<0.000000e+00> : vector<8xf32>
    %158 = vector.multi_reduction <add>, %157, %cst_52 [1] : vector<8x8xf32> to vector<8xf32>
    %159 = vector.shape_cast %158 : vector<8xf32> to vector<8x1xf32>
    %160 = vector.broadcast %159 : vector<8x1xf32> to vector<8x8xf32>
    %161 = arith.divf %157, %160 : vector<8x8xf32>
    %162 = arith.truncf %161 : vector<8x8xf32> to vector<8x8xbf16>
    %cst_53 = arith.constant dense<0.000000e+00> : vector<8x8xf32>
    %163 = tpu.matmul %162, %149, %cst_53 {dimension_numbers = #tpu.dot_dimension_numbers<[1], [0], [0], [1], [0, 0, 1, 1], [], []>} : vector<8x8xbf16>, vector<8x8xbf16>, vector<8x8xf32> -> vector<8x8xf32>
    %164 = vector.extract_strided_slice %21 {offsets = [0, 56], sizes = [8, 8], strides = [1, 1]} : vector<8x96xf32> to vector<8x8xf32>
    %165 = arith.truncf %164 : vector<8x8xf32> to vector<8x8xbf16>
    %166 = vector.extract_strided_slice %22 {offsets = [0, 56], sizes = [8, 8], strides = [1, 1]} : vector<8x96xf32> to vector<8x8xf32>
    %167 = arith.truncf %166 : vector<8x8xf32> to vector<8x8xbf16>
    %168 = vector.extract_strided_slice %23 {offsets = [0, 56], sizes = [8, 8], strides = [1, 1]} : vector<8x96xf32> to vector<8x8xf32>
    %169 = arith.truncf %168 : vector<8x8xf32> to vector<8x8xbf16>
    "tpu.trace_start"() <{level = 10 : i32, message = "qd,kd->qk"}> : () -> ()
    %cst_54 = arith.constant dense<0.000000e+00> : vector<8x8xf32>
    %170 = tpu.matmul %165, %167, %cst_54 {dimension_numbers = #tpu.dot_dimension_numbers<[1], [1], [0], [0], [0, 0, 1, 0], [], []>} : vector<8x8xbf16>, vector<8x8xbf16>, vector<8x8xf32> -> vector<8x8xf32>
    "tpu.trace_stop"() : () -> ()
    %cst_55 = arith.constant 0.353553385 : f32
    %171 = vector.broadcast %cst_55 : f32 to vector<8x8xf32>
    %172 = arith.mulf %170, %171 : vector<8x8xf32>
    %cst_56 = arith.constant dense<0xFF800000> : vector<8xf32>
    %173 = vector.multi_reduction <maximumf>, %172, %cst_56 [1] : vector<8x8xf32> to vector<8xf32>
    %174 = vector.shape_cast %173 : vector<8xf32> to vector<8x1xf32>
    %175 = vector.broadcast %174 : vector<8x1xf32> to vector<8x8xf32>
    %176 = arith.subf %172, %175 : vector<8x8xf32>
    %177 = math.exp %176 : vector<8x8xf32>
    %cst_57 = arith.constant dense<0.000000e+00> : vector<8xf32>
    %178 = vector.multi_reduction <add>, %177, %cst_57 [1] : vector<8x8xf32> to vector<8xf32>
    %179 = vector.shape_cast %178 : vector<8xf32> to vector<8x1xf32>
    %180 = vector.broadcast %179 : vector<8x1xf32> to vector<8x8xf32>
    %181 = arith.divf %177, %180 : vector<8x8xf32>
    %182 = arith.truncf %181 : vector<8x8xf32> to vector<8x8xbf16>
    %cst_58 = arith.constant dense<0.000000e+00> : vector<8x8xf32>
    %183 = tpu.matmul %182, %169, %cst_58 {dimension_numbers = #tpu.dot_dimension_numbers<[1], [0], [0], [1], [0, 0, 1, 1], [], []>} : vector<8x8xbf16>, vector<8x8xbf16>, vector<8x8xf32> -> vector<8x8xf32>
    %184 = vector.extract_strided_slice %21 {offsets = [0, 64], sizes = [8, 8], strides = [1, 1]} : vector<8x96xf32> to vector<8x8xf32>
    %185 = arith.truncf %184 : vector<8x8xf32> to vector<8x8xbf16>
    %186 = vector.extract_strided_slice %22 {offsets = [0, 64], sizes = [8, 8], strides = [1, 1]} : vector<8x96xf32> to vector<8x8xf32>
    %187 = arith.truncf %186 : vector<8x8xf32> to vector<8x8xbf16>
    %188 = vector.extract_strided_slice %23 {offsets = [0, 64], sizes = [8, 8], strides = [1, 1]} : vector<8x96xf32> to vector<8x8xf32>
    %189 = arith.truncf %188 : vector<8x8xf32> to vector<8x8xbf16>
    "tpu.trace_start"() <{level = 10 : i32, message = "qd,kd->qk"}> : () -> ()
    %cst_59 = arith.constant dense<0.000000e+00> : vector<8x8xf32>
    %190 = tpu.matmul %185, %187, %cst_59 {dimension_numbers = #tpu.dot_dimension_numbers<[1], [1], [0], [0], [0, 0, 1, 0], [], []>} : vector<8x8xbf16>, vector<8x8xbf16>, vector<8x8xf32> -> vector<8x8xf32>
    "tpu.trace_stop"() : () -> ()
    %cst_60 = arith.constant 0.353553385 : f32
    %191 = vector.broadcast %cst_60 : f32 to vector<8x8xf32>
    %192 = arith.mulf %190, %191 : vector<8x8xf32>
    %cst_61 = arith.constant dense<0xFF800000> : vector<8xf32>
    %193 = vector.multi_reduction <maximumf>, %192, %cst_61 [1] : vector<8x8xf32> to vector<8xf32>
    %194 = vector.shape_cast %193 : vector<8xf32> to vector<8x1xf32>
    %195 = vector.broadcast %194 : vector<8x1xf32> to vector<8x8xf32>
    %196 = arith.subf %192, %195 : vector<8x8xf32>
    %197 = math.exp %196 : vector<8x8xf32>
    %cst_62 = arith.constant dense<0.000000e+00> : vector<8xf32>
    %198 = vector.multi_reduction <add>, %197, %cst_62 [1] : vector<8x8xf32> to vector<8xf32>
    %199 = vector.shape_cast %198 : vector<8xf32> to vector<8x1xf32>
    %200 = vector.broadcast %199 : vector<8x1xf32> to vector<8x8xf32>
    %201 = arith.divf %197, %200 : vector<8x8xf32>
    %202 = arith.truncf %201 : vector<8x8xf32> to vector<8x8xbf16>
    %cst_63 = arith.constant dense<0.000000e+00> : vector<8x8xf32>
    %203 = tpu.matmul %202, %189, %cst_63 {dimension_numbers = #tpu.dot_dimension_numbers<[1], [0], [0], [1], [0, 0, 1, 1], [], []>} : vector<8x8xbf16>, vector<8x8xbf16>, vector<8x8xf32> -> vector<8x8xf32>
    %204 = vector.extract_strided_slice %21 {offsets = [0, 72], sizes = [8, 8], strides = [1, 1]} : vector<8x96xf32> to vector<8x8xf32>
    %205 = arith.truncf %204 : vector<8x8xf32> to vector<8x8xbf16>
    %206 = vector.extract_strided_slice %22 {offsets = [0, 72], sizes = [8, 8], strides = [1, 1]} : vector<8x96xf32> to vector<8x8xf32>
    %207 = arith.truncf %206 : vector<8x8xf32> to vector<8x8xbf16>
    %208 = vector.extract_strided_slice %23 {offsets = [0, 72], sizes = [8, 8], strides = [1, 1]} : vector<8x96xf32> to vector<8x8xf32>
    %209 = arith.truncf %208 : vector<8x8xf32> to vector<8x8xbf16>
    "tpu.trace_start"() <{level = 10 : i32, message = "qd,kd->qk"}> : () -> ()
    %cst_64 = arith.constant dense<0.000000e+00> : vector<8x8xf32>
    %210 = tpu.matmul %205, %207, %cst_64 {dimension_numbers = #tpu.dot_dimension_numbers<[1], [1], [0], [0], [0, 0, 1, 0], [], []>} : vector<8x8xbf16>, vector<8x8xbf16>, vector<8x8xf32> -> vector<8x8xf32>
    "tpu.trace_stop"() : () -> ()
    %cst_65 = arith.constant 0.353553385 : f32
    %211 = vector.broadcast %cst_65 : f32 to vector<8x8xf32>
    %212 = arith.mulf %210, %211 : vector<8x8xf32>
    %cst_66 = arith.constant dense<0xFF800000> : vector<8xf32>
    %213 = vector.multi_reduction <maximumf>, %212, %cst_66 [1] : vector<8x8xf32> to vector<8xf32>
    %214 = vector.shape_cast %213 : vector<8xf32> to vector<8x1xf32>
    %215 = vector.broadcast %214 : vector<8x1xf32> to vector<8x8xf32>
    %216 = arith.subf %212, %215 : vector<8x8xf32>
    %217 = math.exp %216 : vector<8x8xf32>
    %cst_67 = arith.constant dense<0.000000e+00> : vector<8xf32>
    %218 = vector.multi_reduction <add>, %217, %cst_67 [1] : vector<8x8xf32> to vector<8xf32>
    %219 = vector.shape_cast %218 : vector<8xf32> to vector<8x1xf32>
    %220 = vector.broadcast %219 : vector<8x1xf32> to vector<8x8xf32>
    %221 = arith.divf %217, %220 : vector<8x8xf32>
    %222 = arith.truncf %221 : vector<8x8xf32> to vector<8x8xbf16>
    %cst_68 = arith.constant dense<0.000000e+00> : vector<8x8xf32>
    %223 = tpu.matmul %222, %209, %cst_68 {dimension_numbers = #tpu.dot_dimension_numbers<[1], [0], [0], [1], [0, 0, 1, 1], [], []>} : vector<8x8xbf16>, vector<8x8xbf16>, vector<8x8xf32> -> vector<8x8xf32>
    %224 = vector.extract_strided_slice %21 {offsets = [0, 80], sizes = [8, 8], strides = [1, 1]} : vector<8x96xf32> to vector<8x8xf32>
    %225 = arith.truncf %224 : vector<8x8xf32> to vector<8x8xbf16>
    %226 = vector.extract_strided_slice %22 {offsets = [0, 80], sizes = [8, 8], strides = [1, 1]} : vector<8x96xf32> to vector<8x8xf32>
    %227 = arith.truncf %226 : vector<8x8xf32> to vector<8x8xbf16>
    %228 = vector.extract_strided_slice %23 {offsets = [0, 80], sizes = [8, 8], strides = [1, 1]} : vector<8x96xf32> to vector<8x8xf32>
    %229 = arith.truncf %228 : vector<8x8xf32> to vector<8x8xbf16>
    "tpu.trace_start"() <{level = 10 : i32, message = "qd,kd->qk"}> : () -> ()
    %cst_69 = arith.constant dense<0.000000e+00> : vector<8x8xf32>
    %230 = tpu.matmul %225, %227, %cst_69 {dimension_numbers = #tpu.dot_dimension_numbers<[1], [1], [0], [0], [0, 0, 1, 0], [], []>} : vector<8x8xbf16>, vector<8x8xbf16>, vector<8x8xf32> -> vector<8x8xf32>
    "tpu.trace_stop"() : () -> ()
    %cst_70 = arith.constant 0.353553385 : f32
    %231 = vector.broadcast %cst_70 : f32 to vector<8x8xf32>
    %232 = arith.mulf %230, %231 : vector<8x8xf32>
    %cst_71 = arith.constant dense<0xFF800000> : vector<8xf32>
    %233 = vector.multi_reduction <maximumf>, %232, %cst_71 [1] : vector<8x8xf32> to vector<8xf32>
    %234 = vector.shape_cast %233 : vector<8xf32> to vector<8x1xf32>
    %235 = vector.broadcast %234 : vector<8x1xf32> to vector<8x8xf32>
    %236 = arith.subf %232, %235 : vector<8x8xf32>
    %237 = math.exp %236 : vector<8x8xf32>
    %cst_72 = arith.constant dense<0.000000e+00> : vector<8xf32>
    %238 = vector.multi_reduction <add>, %237, %cst_72 [1] : vector<8x8xf32> to vector<8xf32>
    %239 = vector.shape_cast %238 : vector<8xf32> to vector<8x1xf32>
    %240 = vector.broadcast %239 : vector<8x1xf32> to vector<8x8xf32>
    %241 = arith.divf %237, %240 : vector<8x8xf32>
    %242 = arith.truncf %241 : vector<8x8xf32> to vector<8x8xbf16>
    %cst_73 = arith.constant dense<0.000000e+00> : vector<8x8xf32>
    %243 = tpu.matmul %242, %229, %cst_73 {dimension_numbers = #tpu.dot_dimension_numbers<[1], [0], [0], [1], [0, 0, 1, 1], [], []>} : vector<8x8xbf16>, vector<8x8xbf16>, vector<8x8xf32> -> vector<8x8xf32>
    %244 = vector.extract_strided_slice %21 {offsets = [0, 88], sizes = [8, 8], strides = [1, 1]} : vector<8x96xf32> to vector<8x8xf32>
    %245 = arith.truncf %244 : vector<8x8xf32> to vector<8x8xbf16>
    %246 = vector.extract_strided_slice %22 {offsets = [0, 88], sizes = [8, 8], strides = [1, 1]} : vector<8x96xf32> to vector<8x8xf32>
    %247 = arith.truncf %246 : vector<8x8xf32> to vector<8x8xbf16>
    %248 = vector.extract_strided_slice %23 {offsets = [0, 88], sizes = [8, 8], strides = [1, 1]} : vector<8x96xf32> to vector<8x8xf32>
    %249 = arith.truncf %248 : vector<8x8xf32> to vector<8x8xbf16>
    "tpu.trace_start"() <{level = 10 : i32, message = "qd,kd->qk"}> : () -> ()
    %cst_74 = arith.constant dense<0.000000e+00> : vector<8x8xf32>
    %250 = tpu.matmul %245, %247, %cst_74 {dimension_numbers = #tpu.dot_dimension_numbers<[1], [1], [0], [0], [0, 0, 1, 0], [], []>} : vector<8x8xbf16>, vector<8x8xbf16>, vector<8x8xf32> -> vector<8x8xf32>
    "tpu.trace_stop"() : () -> ()
    %cst_75 = arith.constant 0.353553385 : f32
    %251 = vector.broadcast %cst_75 : f32 to vector<8x8xf32>
    %252 = arith.mulf %250, %251 : vector<8x8xf32>
    %cst_76 = arith.constant dense<0xFF800000> : vector<8xf32>
    %253 = vector.multi_reduction <maximumf>, %252, %cst_76 [1] : vector<8x8xf32> to vector<8xf32>
    %254 = vector.shape_cast %253 : vector<8xf32> to vector<8x1xf32>
    %255 = vector.broadcast %254 : vector<8x1xf32> to vector<8x8xf32>
    %256 = arith.subf %252, %255 : vector<8x8xf32>
    %257 = math.exp %256 : vector<8x8xf32>
    %cst_77 = arith.constant dense<0.000000e+00> : vector<8xf32>
    %258 = vector.multi_reduction <add>, %257, %cst_77 [1] : vector<8x8xf32> to vector<8xf32>
    %259 = vector.shape_cast %258 : vector<8xf32> to vector<8x1xf32>
    %260 = vector.broadcast %259 : vector<8x1xf32> to vector<8x8xf32>
    %261 = arith.divf %257, %260 : vector<8x8xf32>
    %262 = arith.truncf %261 : vector<8x8xf32> to vector<8x8xbf16>
    %cst_78 = arith.constant dense<0.000000e+00> : vector<8x8xf32>
    %263 = tpu.matmul %262, %249, %cst_78 {dimension_numbers = #tpu.dot_dimension_numbers<[1], [0], [0], [1], [0, 0, 1, 1], [], []>} : vector<8x8xbf16>, vector<8x8xbf16>, vector<8x8xf32> -> vector<8x8xf32>
    %264 = tpu.concatenate %43, %63, %83, %103, %123, %143, %163, %183, %203, %223, %243, %263 in 1 : vector<8x8xf32>, vector<8x8xf32>, vector<8x8xf32>, vector<8x8xf32>, vector<8x8xf32>, vector<8x8xf32>, vector<8x8xf32>, vector<8x8xf32>, vector<8x8xf32>, vector<8x8xf32>, vector<8x8xf32>, vector<8x8xf32> -> vector<8x96xf32>
    %265 = tpu.concatenate %41, %61, %81, %101, %121, %141, %161, %181, %201, %221, %241, %261 in 1 : vector<8x8xf32>, vector<8x8xf32>, vector<8x8xf32>, vector<8x8xf32>, vector<8x8xf32>, vector<8x8xf32>, vector<8x8xf32>, vector<8x8xf32>, vector<8x8xf32>, vector<8x8xf32>, vector<8x8xf32>, vector<8x8xf32> -> vector<8x96xf32>
    %266 = vector.extract_strided_slice %6 {offsets = [8, 0], sizes = [8, 96], strides = [1, 1]} : vector<16x96xf32> to vector<8x96xf32>
    %267 = vector.extract_strided_slice %13 {offsets = [8, 0], sizes = [8, 96], strides = [1, 1]} : vector<16x96xf32> to vector<8x96xf32>
    %268 = vector.extract_strided_slice %20 {offsets = [8, 0], sizes = [8, 96], strides = [1, 1]} : vector<16x96xf32> to vector<8x96xf32>
    %269 = vector.extract_strided_slice %266 {offsets = [0, 0], sizes = [8, 8], strides = [1, 1]} : vector<8x96xf32> to vector<8x8xf32>
    %270 = arith.truncf %269 : vector<8x8xf32> to vector<8x8xbf16>
    %271 = vector.extract_strided_slice %267 {offsets = [0, 0], sizes = [8, 8], strides = [1, 1]} : vector<8x96xf32> to vector<8x8xf32>
    %272 = arith.truncf %271 : vector<8x8xf32> to vector<8x8xbf16>
    %273 = vector.extract_strided_slice %268 {offsets = [0, 0], sizes = [8, 8], strides = [1, 1]} : vector<8x96xf32> to vector<8x8xf32>
    %274 = arith.truncf %273 : vector<8x8xf32> to vector<8x8xbf16>
    "tpu.trace_start"() <{level = 10 : i32, message = "qd,kd->qk"}> : () -> ()
    %cst_79 = arith.constant dense<0.000000e+00> : vector<8x8xf32>
    %275 = tpu.matmul %270, %272, %cst_79 {dimension_numbers = #tpu.dot_dimension_numbers<[1], [1], [0], [0], [0, 0, 1, 0], [], []>} : vector<8x8xbf16>, vector<8x8xbf16>, vector<8x8xf32> -> vector<8x8xf32>
    "tpu.trace_stop"() : () -> ()
    %cst_80 = arith.constant 0.353553385 : f32
    %276 = vector.broadcast %cst_80 : f32 to vector<8x8xf32>
    %277 = arith.mulf %275, %276 : vector<8x8xf32>
    %cst_81 = arith.constant dense<0xFF800000> : vector<8xf32>
    %278 = vector.multi_reduction <maximumf>, %277, %cst_81 [1] : vector<8x8xf32> to vector<8xf32>
    %279 = vector.shape_cast %278 : vector<8xf32> to vector<8x1xf32>
    %280 = vector.broadcast %279 : vector<8x1xf32> to vector<8x8xf32>
    %281 = arith.subf %277, %280 : vector<8x8xf32>
    %282 = math.exp %281 : vector<8x8xf32>
    %cst_82 = arith.constant dense<0.000000e+00> : vector<8xf32>
    %283 = vector.multi_reduction <add>, %282, %cst_82 [1] : vector<8x8xf32> to vector<8xf32>
    %284 = vector.shape_cast %283 : vector<8xf32> to vector<8x1xf32>
    %285 = vector.broadcast %284 : vector<8x1xf32> to vector<8x8xf32>
    %286 = arith.divf %282, %285 : vector<8x8xf32>
    %287 = arith.truncf %286 : vector<8x8xf32> to vector<8x8xbf16>
    %cst_83 = arith.constant dense<0.000000e+00> : vector<8x8xf32>
    %288 = tpu.matmul %287, %274, %cst_83 {dimension_numbers = #tpu.dot_dimension_numbers<[1], [0], [0], [1], [0, 0, 1, 1], [], []>} : vector<8x8xbf16>, vector<8x8xbf16>, vector<8x8xf32> -> vector<8x8xf32>
    %289 = vector.extract_strided_slice %266 {offsets = [0, 8], sizes = [8, 8], strides = [1, 1]} : vector<8x96xf32> to vector<8x8xf32>
    %290 = arith.truncf %289 : vector<8x8xf32> to vector<8x8xbf16>
    %291 = vector.extract_strided_slice %267 {offsets = [0, 8], sizes = [8, 8], strides = [1, 1]} : vector<8x96xf32> to vector<8x8xf32>
    %292 = arith.truncf %291 : vector<8x8xf32> to vector<8x8xbf16>
    %293 = vector.extract_strided_slice %268 {offsets = [0, 8], sizes = [8, 8], strides = [1, 1]} : vector<8x96xf32> to vector<8x8xf32>
    %294 = arith.truncf %293 : vector<8x8xf32> to vector<8x8xbf16>
    "tpu.trace_start"() <{level = 10 : i32, message = "qd,kd->qk"}> : () -> ()
    %cst_84 = arith.constant dense<0.000000e+00> : vector<8x8xf32>
    %295 = tpu.matmul %290, %292, %cst_84 {dimension_numbers = #tpu.dot_dimension_numbers<[1], [1], [0], [0], [0, 0, 1, 0], [], []>} : vector<8x8xbf16>, vector<8x8xbf16>, vector<8x8xf32> -> vector<8x8xf32>
    "tpu.trace_stop"() : () -> ()
    %cst_85 = arith.constant 0.353553385 : f32
    %296 = vector.broadcast %cst_85 : f32 to vector<8x8xf32>
    %297 = arith.mulf %295, %296 : vector<8x8xf32>
    %cst_86 = arith.constant dense<0xFF800000> : vector<8xf32>
    %298 = vector.multi_reduction <maximumf>, %297, %cst_86 [1] : vector<8x8xf32> to vector<8xf32>
    %299 = vector.shape_cast %298 : vector<8xf32> to vector<8x1xf32>
    %300 = vector.broadcast %299 : vector<8x1xf32> to vector<8x8xf32>
    %301 = arith.subf %297, %300 : vector<8x8xf32>
    %302 = math.exp %301 : vector<8x8xf32>
    %cst_87 = arith.constant dense<0.000000e+00> : vector<8xf32>
    %303 = vector.multi_reduction <add>, %302, %cst_87 [1] : vector<8x8xf32> to vector<8xf32>
    %304 = vector.shape_cast %303 : vector<8xf32> to vector<8x1xf32>
    %305 = vector.broadcast %304 : vector<8x1xf32> to vector<8x8xf32>
    %306 = arith.divf %302, %305 : vector<8x8xf32>
    %307 = arith.truncf %306 : vector<8x8xf32> to vector<8x8xbf16>
    %cst_88 = arith.constant dense<0.000000e+00> : vector<8x8xf32>
    %308 = tpu.matmul %307, %294, %cst_88 {dimension_numbers = #tpu.dot_dimension_numbers<[1], [0], [0], [1], [0, 0, 1, 1], [], []>} : vector<8x8xbf16>, vector<8x8xbf16>, vector<8x8xf32> -> vector<8x8xf32>
    %309 = vector.extract_strided_slice %266 {offsets = [0, 16], sizes = [8, 8], strides = [1, 1]} : vector<8x96xf32> to vector<8x8xf32>
    %310 = arith.truncf %309 : vector<8x8xf32> to vector<8x8xbf16>
    %311 = vector.extract_strided_slice %267 {offsets = [0, 16], sizes = [8, 8], strides = [1, 1]} : vector<8x96xf32> to vector<8x8xf32>
    %312 = arith.truncf %311 : vector<8x8xf32> to vector<8x8xbf16>
    %313 = vector.extract_strided_slice %268 {offsets = [0, 16], sizes = [8, 8], strides = [1, 1]} : vector<8x96xf32> to vector<8x8xf32>
    %314 = arith.truncf %313 : vector<8x8xf32> to vector<8x8xbf16>
    "tpu.trace_start"() <{level = 10 : i32, message = "qd,kd->qk"}> : () -> ()
    %cst_89 = arith.constant dense<0.000000e+00> : vector<8x8xf32>
    %315 = tpu.matmul %310, %312, %cst_89 {dimension_numbers = #tpu.dot_dimension_numbers<[1], [1], [0], [0], [0, 0, 1, 0], [], []>} : vector<8x8xbf16>, vector<8x8xbf16>, vector<8x8xf32> -> vector<8x8xf32>
    "tpu.trace_stop"() : () -> ()
    %cst_90 = arith.constant 0.353553385 : f32
    %316 = vector.broadcast %cst_90 : f32 to vector<8x8xf32>
    %317 = arith.mulf %315, %316 : vector<8x8xf32>
    %cst_91 = arith.constant dense<0xFF800000> : vector<8xf32>
    %318 = vector.multi_reduction <maximumf>, %317, %cst_91 [1] : vector<8x8xf32> to vector<8xf32>
    %319 = vector.shape_cast %318 : vector<8xf32> to vector<8x1xf32>
    %320 = vector.broadcast %319 : vector<8x1xf32> to vector<8x8xf32>
    %321 = arith.subf %317, %320 : vector<8x8xf32>
    %322 = math.exp %321 : vector<8x8xf32>
    %cst_92 = arith.constant dense<0.000000e+00> : vector<8xf32>
    %323 = vector.multi_reduction <add>, %322, %cst_92 [1] : vector<8x8xf32> to vector<8xf32>
    %324 = vector.shape_cast %323 : vector<8xf32> to vector<8x1xf32>
    %325 = vector.broadcast %324 : vector<8x1xf32> to vector<8x8xf32>
    %326 = arith.divf %322, %325 : vector<8x8xf32>
    %327 = arith.truncf %326 : vector<8x8xf32> to vector<8x8xbf16>
    %cst_93 = arith.constant dense<0.000000e+00> : vector<8x8xf32>
    %328 = tpu.matmul %327, %314, %cst_93 {dimension_numbers = #tpu.dot_dimension_numbers<[1], [0], [0], [1], [0, 0, 1, 1], [], []>} : vector<8x8xbf16>, vector<8x8xbf16>, vector<8x8xf32> -> vector<8x8xf32>
    %329 = vector.extract_strided_slice %266 {offsets = [0, 24], sizes = [8, 8], strides = [1, 1]} : vector<8x96xf32> to vector<8x8xf32>
    %330 = arith.truncf %329 : vector<8x8xf32> to vector<8x8xbf16>
    %331 = vector.extract_strided_slice %267 {offsets = [0, 24], sizes = [8, 8], strides = [1, 1]} : vector<8x96xf32> to vector<8x8xf32>
    %332 = arith.truncf %331 : vector<8x8xf32> to vector<8x8xbf16>
    %333 = vector.extract_strided_slice %268 {offsets = [0, 24], sizes = [8, 8], strides = [1, 1]} : vector<8x96xf32> to vector<8x8xf32>
    %334 = arith.truncf %333 : vector<8x8xf32> to vector<8x8xbf16>
    "tpu.trace_start"() <{level = 10 : i32, message = "qd,kd->qk"}> : () -> ()
    %cst_94 = arith.constant dense<0.000000e+00> : vector<8x8xf32>
    %335 = tpu.matmul %330, %332, %cst_94 {dimension_numbers = #tpu.dot_dimension_numbers<[1], [1], [0], [0], [0, 0, 1, 0], [], []>} : vector<8x8xbf16>, vector<8x8xbf16>, vector<8x8xf32> -> vector<8x8xf32>
    "tpu.trace_stop"() : () -> ()
    %cst_95 = arith.constant 0.353553385 : f32
    %336 = vector.broadcast %cst_95 : f32 to vector<8x8xf32>
    %337 = arith.mulf %335, %336 : vector<8x8xf32>
    %cst_96 = arith.constant dense<0xFF800000> : vector<8xf32>
    %338 = vector.multi_reduction <maximumf>, %337, %cst_96 [1] : vector<8x8xf32> to vector<8xf32>
    %339 = vector.shape_cast %338 : vector<8xf32> to vector<8x1xf32>
    %340 = vector.broadcast %339 : vector<8x1xf32> to vector<8x8xf32>
    %341 = arith.subf %337, %340 : vector<8x8xf32>
    %342 = math.exp %341 : vector<8x8xf32>
    %cst_97 = arith.constant dense<0.000000e+00> : vector<8xf32>
    %343 = vector.multi_reduction <add>, %342, %cst_97 [1] : vector<8x8xf32> to vector<8xf32>
    %344 = vector.shape_cast %343 : vector<8xf32> to vector<8x1xf32>
    %345 = vector.broadcast %344 : vector<8x1xf32> to vector<8x8xf32>
    %346 = arith.divf %342, %345 : vector<8x8xf32>
    %347 = arith.truncf %346 : vector<8x8xf32> to vector<8x8xbf16>
    %cst_98 = arith.constant dense<0.000000e+00> : vector<8x8xf32>
    %348 = tpu.matmul %347, %334, %cst_98 {dimension_numbers = #tpu.dot_dimension_numbers<[1], [0], [0], [1], [0, 0, 1, 1], [], []>} : vector<8x8xbf16>, vector<8x8xbf16>, vector<8x8xf32> -> vector<8x8xf32>
    %349 = vector.extract_strided_slice %266 {offsets = [0, 32], sizes = [8, 8], strides = [1, 1]} : vector<8x96xf32> to vector<8x8xf32>
    %350 = arith.truncf %349 : vector<8x8xf32> to vector<8x8xbf16>
    %351 = vector.extract_strided_slice %267 {offsets = [0, 32], sizes = [8, 8], strides = [1, 1]} : vector<8x96xf32> to vector<8x8xf32>
    %352 = arith.truncf %351 : vector<8x8xf32> to vector<8x8xbf16>
    %353 = vector.extract_strided_slice %268 {offsets = [0, 32], sizes = [8, 8], strides = [1, 1]} : vector<8x96xf32> to vector<8x8xf32>
    %354 = arith.truncf %353 : vector<8x8xf32> to vector<8x8xbf16>
    "tpu.trace_start"() <{level = 10 : i32, message = "qd,kd->qk"}> : () -> ()
    %cst_99 = arith.constant dense<0.000000e+00> : vector<8x8xf32>
    %355 = tpu.matmul %350, %352, %cst_99 {dimension_numbers = #tpu.dot_dimension_numbers<[1], [1], [0], [0], [0, 0, 1, 0], [], []>} : vector<8x8xbf16>, vector<8x8xbf16>, vector<8x8xf32> -> vector<8x8xf32>
    "tpu.trace_stop"() : () -> ()
    %cst_100 = arith.constant 0.353553385 : f32
    %356 = vector.broadcast %cst_100 : f32 to vector<8x8xf32>
    %357 = arith.mulf %355, %356 : vector<8x8xf32>
    %cst_101 = arith.constant dense<0xFF800000> : vector<8xf32>
    %358 = vector.multi_reduction <maximumf>, %357, %cst_101 [1] : vector<8x8xf32> to vector<8xf32>
    %359 = vector.shape_cast %358 : vector<8xf32> to vector<8x1xf32>
    %360 = vector.broadcast %359 : vector<8x1xf32> to vector<8x8xf32>
    %361 = arith.subf %357, %360 : vector<8x8xf32>
    %362 = math.exp %361 : vector<8x8xf32>
    %cst_102 = arith.constant dense<0.000000e+00> : vector<8xf32>
    %363 = vector.multi_reduction <add>, %362, %cst_102 [1] : vector<8x8xf32> to vector<8xf32>
    %364 = vector.shape_cast %363 : vector<8xf32> to vector<8x1xf32>
    %365 = vector.broadcast %364 : vector<8x1xf32> to vector<8x8xf32>
    %366 = arith.divf %362, %365 : vector<8x8xf32>
    %367 = arith.truncf %366 : vector<8x8xf32> to vector<8x8xbf16>
    %cst_103 = arith.constant dense<0.000000e+00> : vector<8x8xf32>
    %368 = tpu.matmul %367, %354, %cst_103 {dimension_numbers = #tpu.dot_dimension_numbers<[1], [0], [0], [1], [0, 0, 1, 1], [], []>} : vector<8x8xbf16>, vector<8x8xbf16>, vector<8x8xf32> -> vector<8x8xf32>
    %369 = vector.extract_strided_slice %266 {offsets = [0, 40], sizes = [8, 8], strides = [1, 1]} : vector<8x96xf32> to vector<8x8xf32>
    %370 = arith.truncf %369 : vector<8x8xf32> to vector<8x8xbf16>
    %371 = vector.extract_strided_slice %267 {offsets = [0, 40], sizes = [8, 8], strides = [1, 1]} : vector<8x96xf32> to vector<8x8xf32>
    %372 = arith.truncf %371 : vector<8x8xf32> to vector<8x8xbf16>
    %373 = vector.extract_strided_slice %268 {offsets = [0, 40], sizes = [8, 8], strides = [1, 1]} : vector<8x96xf32> to vector<8x8xf32>
    %374 = arith.truncf %373 : vector<8x8xf32> to vector<8x8xbf16>
    "tpu.trace_start"() <{level = 10 : i32, message = "qd,kd->qk"}> : () -> ()
    %cst_104 = arith.constant dense<0.000000e+00> : vector<8x8xf32>
    %375 = tpu.matmul %370, %372, %cst_104 {dimension_numbers = #tpu.dot_dimension_numbers<[1], [1], [0], [0], [0, 0, 1, 0], [], []>} : vector<8x8xbf16>, vector<8x8xbf16>, vector<8x8xf32> -> vector<8x8xf32>
    "tpu.trace_stop"() : () -> ()
    %cst_105 = arith.constant 0.353553385 : f32
    %376 = vector.broadcast %cst_105 : f32 to vector<8x8xf32>
    %377 = arith.mulf %375, %376 : vector<8x8xf32>
    %cst_106 = arith.constant dense<0xFF800000> : vector<8xf32>
    %378 = vector.multi_reduction <maximumf>, %377, %cst_106 [1] : vector<8x8xf32> to vector<8xf32>
    %379 = vector.shape_cast %378 : vector<8xf32> to vector<8x1xf32>
    %380 = vector.broadcast %379 : vector<8x1xf32> to vector<8x8xf32>
    %381 = arith.subf %377, %380 : vector<8x8xf32>
    %382 = math.exp %381 : vector<8x8xf32>
    %cst_107 = arith.constant dense<0.000000e+00> : vector<8xf32>
    %383 = vector.multi_reduction <add>, %382, %cst_107 [1] : vector<8x8xf32> to vector<8xf32>
    %384 = vector.shape_cast %383 : vector<8xf32> to vector<8x1xf32>
    %385 = vector.broadcast %384 : vector<8x1xf32> to vector<8x8xf32>
    %386 = arith.divf %382, %385 : vector<8x8xf32>
    %387 = arith.truncf %386 : vector<8x8xf32> to vector<8x8xbf16>
    %cst_108 = arith.constant dense<0.000000e+00> : vector<8x8xf32>
    %388 = tpu.matmul %387, %374, %cst_108 {dimension_numbers = #tpu.dot_dimension_numbers<[1], [0], [0], [1], [0, 0, 1, 1], [], []>} : vector<8x8xbf16>, vector<8x8xbf16>, vector<8x8xf32> -> vector<8x8xf32>
    %389 = vector.extract_strided_slice %266 {offsets = [0, 48], sizes = [8, 8], strides = [1, 1]} : vector<8x96xf32> to vector<8x8xf32>
    %390 = arith.truncf %389 : vector<8x8xf32> to vector<8x8xbf16>
    %391 = vector.extract_strided_slice %267 {offsets = [0, 48], sizes = [8, 8], strides = [1, 1]} : vector<8x96xf32> to vector<8x8xf32>
    %392 = arith.truncf %391 : vector<8x8xf32> to vector<8x8xbf16>
    %393 = vector.extract_strided_slice %268 {offsets = [0, 48], sizes = [8, 8], strides = [1, 1]} : vector<8x96xf32> to vector<8x8xf32>
    %394 = arith.truncf %393 : vector<8x8xf32> to vector<8x8xbf16>
    "tpu.trace_start"() <{level = 10 : i32, message = "qd,kd->qk"}> : () -> ()
    %cst_109 = arith.constant dense<0.000000e+00> : vector<8x8xf32>
    %395 = tpu.matmul %390, %392, %cst_109 {dimension_numbers = #tpu.dot_dimension_numbers<[1], [1], [0], [0], [0, 0, 1, 0], [], []>} : vector<8x8xbf16>, vector<8x8xbf16>, vector<8x8xf32> -> vector<8x8xf32>
    "tpu.trace_stop"() : () -> ()
    %cst_110 = arith.constant 0.353553385 : f32
    %396 = vector.broadcast %cst_110 : f32 to vector<8x8xf32>
    %397 = arith.mulf %395, %396 : vector<8x8xf32>
    %cst_111 = arith.constant dense<0xFF800000> : vector<8xf32>
    %398 = vector.multi_reduction <maximumf>, %397, %cst_111 [1] : vector<8x8xf32> to vector<8xf32>
    %399 = vector.shape_cast %398 : vector<8xf32> to vector<8x1xf32>
    %400 = vector.broadcast %399 : vector<8x1xf32> to vector<8x8xf32>
    %401 = arith.subf %397, %400 : vector<8x8xf32>
    %402 = math.exp %401 : vector<8x8xf32>
    %cst_112 = arith.constant dense<0.000000e+00> : vector<8xf32>
    %403 = vector.multi_reduction <add>, %402, %cst_112 [1] : vector<8x8xf32> to vector<8xf32>
    %404 = vector.shape_cast %403 : vector<8xf32> to vector<8x1xf32>
    %405 = vector.broadcast %404 : vector<8x1xf32> to vector<8x8xf32>
    %406 = arith.divf %402, %405 : vector<8x8xf32>
    %407 = arith.truncf %406 : vector<8x8xf32> to vector<8x8xbf16>
    %cst_113 = arith.constant dense<0.000000e+00> : vector<8x8xf32>
    %408 = tpu.matmul %407, %394, %cst_113 {dimension_numbers = #tpu.dot_dimension_numbers<[1], [0], [0], [1], [0, 0, 1, 1], [], []>} : vector<8x8xbf16>, vector<8x8xbf16>, vector<8x8xf32> -> vector<8x8xf32>
    %409 = vector.extract_strided_slice %266 {offsets = [0, 56], sizes = [8, 8], strides = [1, 1]} : vector<8x96xf32> to vector<8x8xf32>
    %410 = arith.truncf %409 : vector<8x8xf32> to vector<8x8xbf16>
    %411 = vector.extract_strided_slice %267 {offsets = [0, 56], sizes = [8, 8], strides = [1, 1]} : vector<8x96xf32> to vector<8x8xf32>
    %412 = arith.truncf %411 : vector<8x8xf32> to vector<8x8xbf16>
    %413 = vector.extract_strided_slice %268 {offsets = [0, 56], sizes = [8, 8], strides = [1, 1]} : vector<8x96xf32> to vector<8x8xf32>
    %414 = arith.truncf %413 : vector<8x8xf32> to vector<8x8xbf16>
    "tpu.trace_start"() <{level = 10 : i32, message = "qd,kd->qk"}> : () -> ()
    %cst_114 = arith.constant dense<0.000000e+00> : vector<8x8xf32>
    %415 = tpu.matmul %410, %412, %cst_114 {dimension_numbers = #tpu.dot_dimension_numbers<[1], [1], [0], [0], [0, 0, 1, 0], [], []>} : vector<8x8xbf16>, vector<8x8xbf16>, vector<8x8xf32> -> vector<8x8xf32>
    "tpu.trace_stop"() : () -> ()
    %cst_115 = arith.constant 0.353553385 : f32
    %416 = vector.broadcast %cst_115 : f32 to vector<8x8xf32>
    %417 = arith.mulf %415, %416 : vector<8x8xf32>
    %cst_116 = arith.constant dense<0xFF800000> : vector<8xf32>
    %418 = vector.multi_reduction <maximumf>, %417, %cst_116 [1] : vector<8x8xf32> to vector<8xf32>
    %419 = vector.shape_cast %418 : vector<8xf32> to vector<8x1xf32>
    %420 = vector.broadcast %419 : vector<8x1xf32> to vector<8x8xf32>
    %421 = arith.subf %417, %420 : vector<8x8xf32>
    %422 = math.exp %421 : vector<8x8xf32>
    %cst_117 = arith.constant dense<0.000000e+00> : vector<8xf32>
    %423 = vector.multi_reduction <add>, %422, %cst_117 [1] : vector<8x8xf32> to vector<8xf32>
    %424 = vector.shape_cast %423 : vector<8xf32> to vector<8x1xf32>
    %425 = vector.broadcast %424 : vector<8x1xf32> to vector<8x8xf32>
    %426 = arith.divf %422, %425 : vector<8x8xf32>
    %427 = arith.truncf %426 : vector<8x8xf32> to vector<8x8xbf16>
    %cst_118 = arith.constant dense<0.000000e+00> : vector<8x8xf32>
    %428 = tpu.matmul %427, %414, %cst_118 {dimension_numbers = #tpu.dot_dimension_numbers<[1], [0], [0], [1], [0, 0, 1, 1], [], []>} : vector<8x8xbf16>, vector<8x8xbf16>, vector<8x8xf32> -> vector<8x8xf32>
    %429 = vector.extract_strided_slice %266 {offsets = [0, 64], sizes = [8, 8], strides = [1, 1]} : vector<8x96xf32> to vector<8x8xf32>
    %430 = arith.truncf %429 : vector<8x8xf32> to vector<8x8xbf16>
    %431 = vector.extract_strided_slice %267 {offsets = [0, 64], sizes = [8, 8], strides = [1, 1]} : vector<8x96xf32> to vector<8x8xf32>
    %432 = arith.truncf %431 : vector<8x8xf32> to vector<8x8xbf16>
    %433 = vector.extract_strided_slice %268 {offsets = [0, 64], sizes = [8, 8], strides = [1, 1]} : vector<8x96xf32> to vector<8x8xf32>
    %434 = arith.truncf %433 : vector<8x8xf32> to vector<8x8xbf16>
    "tpu.trace_start"() <{level = 10 : i32, message = "qd,kd->qk"}> : () -> ()
    %cst_119 = arith.constant dense<0.000000e+00> : vector<8x8xf32>
    %435 = tpu.matmul %430, %432, %cst_119 {dimension_numbers = #tpu.dot_dimension_numbers<[1], [1], [0], [0], [0, 0, 1, 0], [], []>} : vector<8x8xbf16>, vector<8x8xbf16>, vector<8x8xf32> -> vector<8x8xf32>
    "tpu.trace_stop"() : () -> ()
    %cst_120 = arith.constant 0.353553385 : f32
    %436 = vector.broadcast %cst_120 : f32 to vector<8x8xf32>
    %437 = arith.mulf %435, %436 : vector<8x8xf32>
    %cst_121 = arith.constant dense<0xFF800000> : vector<8xf32>
    %438 = vector.multi_reduction <maximumf>, %437, %cst_121 [1] : vector<8x8xf32> to vector<8xf32>
    %439 = vector.shape_cast %438 : vector<8xf32> to vector<8x1xf32>
    %440 = vector.broadcast %439 : vector<8x1xf32> to vector<8x8xf32>
    %441 = arith.subf %437, %440 : vector<8x8xf32>
    %442 = math.exp %441 : vector<8x8xf32>
    %cst_122 = arith.constant dense<0.000000e+00> : vector<8xf32>
    %443 = vector.multi_reduction <add>, %442, %cst_122 [1] : vector<8x8xf32> to vector<8xf32>
    %444 = vector.shape_cast %443 : vector<8xf32> to vector<8x1xf32>
    %445 = vector.broadcast %444 : vector<8x1xf32> to vector<8x8xf32>
    %446 = arith.divf %442, %445 : vector<8x8xf32>
    %447 = arith.truncf %446 : vector<8x8xf32> to vector<8x8xbf16>
    %cst_123 = arith.constant dense<0.000000e+00> : vector<8x8xf32>
    %448 = tpu.matmul %447, %434, %cst_123 {dimension_numbers = #tpu.dot_dimension_numbers<[1], [0], [0], [1], [0, 0, 1, 1], [], []>} : vector<8x8xbf16>, vector<8x8xbf16>, vector<8x8xf32> -> vector<8x8xf32>
    %449 = vector.extract_strided_slice %266 {offsets = [0, 72], sizes = [8, 8], strides = [1, 1]} : vector<8x96xf32> to vector<8x8xf32>
    %450 = arith.truncf %449 : vector<8x8xf32> to vector<8x8xbf16>
    %451 = vector.extract_strided_slice %267 {offsets = [0, 72], sizes = [8, 8], strides = [1, 1]} : vector<8x96xf32> to vector<8x8xf32>
    %452 = arith.truncf %451 : vector<8x8xf32> to vector<8x8xbf16>
    %453 = vector.extract_strided_slice %268 {offsets = [0, 72], sizes = [8, 8], strides = [1, 1]} : vector<8x96xf32> to vector<8x8xf32>
    %454 = arith.truncf %453 : vector<8x8xf32> to vector<8x8xbf16>
    "tpu.trace_start"() <{level = 10 : i32, message = "qd,kd->qk"}> : () -> ()
    %cst_124 = arith.constant dense<0.000000e+00> : vector<8x8xf32>
    %455 = tpu.matmul %450, %452, %cst_124 {dimension_numbers = #tpu.dot_dimension_numbers<[1], [1], [0], [0], [0, 0, 1, 0], [], []>} : vector<8x8xbf16>, vector<8x8xbf16>, vector<8x8xf32> -> vector<8x8xf32>
    "tpu.trace_stop"() : () -> ()
    %cst_125 = arith.constant 0.353553385 : f32
    %456 = vector.broadcast %cst_125 : f32 to vector<8x8xf32>
    %457 = arith.mulf %455, %456 : vector<8x8xf32>
    %cst_126 = arith.constant dense<0xFF800000> : vector<8xf32>
    %458 = vector.multi_reduction <maximumf>, %457, %cst_126 [1] : vector<8x8xf32> to vector<8xf32>
    %459 = vector.shape_cast %458 : vector<8xf32> to vector<8x1xf32>
    %460 = vector.broadcast %459 : vector<8x1xf32> to vector<8x8xf32>
    %461 = arith.subf %457, %460 : vector<8x8xf32>
    %462 = math.exp %461 : vector<8x8xf32>
    %cst_127 = arith.constant dense<0.000000e+00> : vector<8xf32>
    %463 = vector.multi_reduction <add>, %462, %cst_127 [1] : vector<8x8xf32> to vector<8xf32>
    %464 = vector.shape_cast %463 : vector<8xf32> to vector<8x1xf32>
    %465 = vector.broadcast %464 : vector<8x1xf32> to vector<8x8xf32>
    %466 = arith.divf %462, %465 : vector<8x8xf32>
    %467 = arith.truncf %466 : vector<8x8xf32> to vector<8x8xbf16>
    %cst_128 = arith.constant dense<0.000000e+00> : vector<8x8xf32>
    %468 = tpu.matmul %467, %454, %cst_128 {dimension_numbers = #tpu.dot_dimension_numbers<[1], [0], [0], [1], [0, 0, 1, 1], [], []>} : vector<8x8xbf16>, vector<8x8xbf16>, vector<8x8xf32> -> vector<8x8xf32>
    %469 = vector.extract_strided_slice %266 {offsets = [0, 80], sizes = [8, 8], strides = [1, 1]} : vector<8x96xf32> to vector<8x8xf32>
    %470 = arith.truncf %469 : vector<8x8xf32> to vector<8x8xbf16>
    %471 = vector.extract_strided_slice %267 {offsets = [0, 80], sizes = [8, 8], strides = [1, 1]} : vector<8x96xf32> to vector<8x8xf32>
    %472 = arith.truncf %471 : vector<8x8xf32> to vector<8x8xbf16>
    %473 = vector.extract_strided_slice %268 {offsets = [0, 80], sizes = [8, 8], strides = [1, 1]} : vector<8x96xf32> to vector<8x8xf32>
    %474 = arith.truncf %473 : vector<8x8xf32> to vector<8x8xbf16>
    "tpu.trace_start"() <{level = 10 : i32, message = "qd,kd->qk"}> : () -> ()
    %cst_129 = arith.constant dense<0.000000e+00> : vector<8x8xf32>
    %475 = tpu.matmul %470, %472, %cst_129 {dimension_numbers = #tpu.dot_dimension_numbers<[1], [1], [0], [0], [0, 0, 1, 0], [], []>} : vector<8x8xbf16>, vector<8x8xbf16>, vector<8x8xf32> -> vector<8x8xf32>
    "tpu.trace_stop"() : () -> ()
    %cst_130 = arith.constant 0.353553385 : f32
    %476 = vector.broadcast %cst_130 : f32 to vector<8x8xf32>
    %477 = arith.mulf %475, %476 : vector<8x8xf32>
    %cst_131 = arith.constant dense<0xFF800000> : vector<8xf32>
    %478 = vector.multi_reduction <maximumf>, %477, %cst_131 [1] : vector<8x8xf32> to vector<8xf32>
    %479 = vector.shape_cast %478 : vector<8xf32> to vector<8x1xf32>
    %480 = vector.broadcast %479 : vector<8x1xf32> to vector<8x8xf32>
    %481 = arith.subf %477, %480 : vector<8x8xf32>
    %482 = math.exp %481 : vector<8x8xf32>
    %cst_132 = arith.constant dense<0.000000e+00> : vector<8xf32>
    %483 = vector.multi_reduction <add>, %482, %cst_132 [1] : vector<8x8xf32> to vector<8xf32>
    %484 = vector.shape_cast %483 : vector<8xf32> to vector<8x1xf32>
    %485 = vector.broadcast %484 : vector<8x1xf32> to vector<8x8xf32>
    %486 = arith.divf %482, %485 : vector<8x8xf32>
    %487 = arith.truncf %486 : vector<8x8xf32> to vector<8x8xbf16>
    %cst_133 = arith.constant dense<0.000000e+00> : vector<8x8xf32>
    %488 = tpu.matmul %487, %474, %cst_133 {dimension_numbers = #tpu.dot_dimension_numbers<[1], [0], [0], [1], [0, 0, 1, 1], [], []>} : vector<8x8xbf16>, vector<8x8xbf16>, vector<8x8xf32> -> vector<8x8xf32>
    %489 = vector.extract_strided_slice %266 {offsets = [0, 88], sizes = [8, 8], strides = [1, 1]} : vector<8x96xf32> to vector<8x8xf32>
    %490 = arith.truncf %489 : vector<8x8xf32> to vector<8x8xbf16>
    %491 = vector.extract_strided_slice %267 {offsets = [0, 88], sizes = [8, 8], strides = [1, 1]} : vector<8x96xf32> to vector<8x8xf32>
    %492 = arith.truncf %491 : vector<8x8xf32> to vector<8x8xbf16>
    %493 = vector.extract_strided_slice %268 {offsets = [0, 88], sizes = [8, 8], strides = [1, 1]} : vector<8x96xf32> to vector<8x8xf32>
    %494 = arith.truncf %493 : vector<8x8xf32> to vector<8x8xbf16>
    "tpu.trace_start"() <{level = 10 : i32, message = "qd,kd->qk"}> : () -> ()
    %cst_134 = arith.constant dense<0.000000e+00> : vector<8x8xf32>
    %495 = tpu.matmul %490, %492, %cst_134 {dimension_numbers = #tpu.dot_dimension_numbers<[1], [1], [0], [0], [0, 0, 1, 0], [], []>} : vector<8x8xbf16>, vector<8x8xbf16>, vector<8x8xf32> -> vector<8x8xf32>
    "tpu.trace_stop"() : () -> ()
    %cst_135 = arith.constant 0.353553385 : f32
    %496 = vector.broadcast %cst_135 : f32 to vector<8x8xf32>
    %497 = arith.mulf %495, %496 : vector<8x8xf32>
    %cst_136 = arith.constant dense<0xFF800000> : vector<8xf32>
    %498 = vector.multi_reduction <maximumf>, %497, %cst_136 [1] : vector<8x8xf32> to vector<8xf32>
    %499 = vector.shape_cast %498 : vector<8xf32> to vector<8x1xf32>
    %500 = vector.broadcast %499 : vector<8x1xf32> to vector<8x8xf32>
    %501 = arith.subf %497, %500 : vector<8x8xf32>
    %502 = math.exp %501 : vector<8x8xf32>
    %cst_137 = arith.constant dense<0.000000e+00> : vector<8xf32>
    %503 = vector.multi_reduction <add>, %502, %cst_137 [1] : vector<8x8xf32> to vector<8xf32>
    %504 = vector.shape_cast %503 : vector<8xf32> to vector<8x1xf32>
    %505 = vector.broadcast %504 : vector<8x1xf32> to vector<8x8xf32>
    %506 = arith.divf %502, %505 : vector<8x8xf32>
    %507 = arith.truncf %506 : vector<8x8xf32> to vector<8x8xbf16>
    %cst_138 = arith.constant dense<0.000000e+00> : vector<8x8xf32>
    %508 = tpu.matmul %507, %494, %cst_138 {dimension_numbers = #tpu.dot_dimension_numbers<[1], [0], [0], [1], [0, 0, 1, 1], [], []>} : vector<8x8xbf16>, vector<8x8xbf16>, vector<8x8xf32> -> vector<8x8xf32>
    %509 = tpu.concatenate %288, %308, %328, %348, %368, %388, %408, %428, %448, %468, %488, %508 in 1 : vector<8x8xf32>, vector<8x8xf32>, vector<8x8xf32>, vector<8x8xf32>, vector<8x8xf32>, vector<8x8xf32>, vector<8x8xf32>, vector<8x8xf32>, vector<8x8xf32>, vector<8x8xf32>, vector<8x8xf32>, vector<8x8xf32> -> vector<8x96xf32>
    %510 = tpu.concatenate %286, %306, %326, %346, %366, %386, %406, %426, %446, %466, %486, %506 in 1 : vector<8x8xf32>, vector<8x8xf32>, vector<8x8xf32>, vector<8x8xf32>, vector<8x8xf32>, vector<8x8xf32>, vector<8x8xf32>, vector<8x8xf32>, vector<8x8xf32>, vector<8x8xf32>, vector<8x8xf32>, vector<8x8xf32> -> vector<8x96xf32>
    %511 = tpu.concatenate %264, %509 in 0 : vector<8x96xf32>, vector<8x96xf32> -> vector<16x96xf32>
    %512 = arith.truncf %511 : vector<16x96xf32> to vector<16x96xbf16>
    %c0_139 = arith.constant 0 : index
    %c0_140 = arith.constant 0 : index
    %513 = vector.load %arg10[%c0_139, %c0_140] : memref<96x96xbf16, #tpu.memory_space<vmem>>, vector<96x96xbf16>
    %cst_141 = arith.constant dense<0.000000e+00> : vector<16x96xf32>
    %514 = tpu.matmul %512, %513, %cst_141 {dimension_numbers = #tpu.dot_dimension_numbers<[1], [0], [0], [1], [0, 0, 1, 1], [], []>} : vector<16x96xbf16>, vector<96x96xbf16>, vector<16x96xf32> -> vector<16x96xf32>
    %c0_142 = arith.constant 0 : index
    %c0_143 = arith.constant 0 : index
    %515 = vector.load %arg11[%c0_142, %c0_143] : memref<1x96xf32, #tpu.memory_space<vmem>>, vector<1x96xf32>
    %516 = vector.broadcast %515 : vector<1x96xf32> to vector<16x96xf32>
    %517 = arith.addf %514, %516 : vector<16x96xf32>
    %518 = arith.addf %517, %0 : vector<16x96xf32>
    %cst_144 = arith.constant dense<0.000000e+00> : vector<16xf32>
    %519 = vector.multi_reduction <add>, %518, %cst_144 [1] : vector<16x96xf32> to vector<16xf32>
    %520 = vector.shape_cast %519 : vector<16xf32> to vector<16x1xf32>
    %cst_145 = arith.constant 9.600000e+01 : f32
    %521 = vector.broadcast %cst_145 : f32 to vector<16x1xf32>
    %522 = arith.divf %520, %521 : vector<16x1xf32>
    %523 = vector.broadcast %522 : vector<16x1xf32> to vector<16x96xf32>
    %524 = arith.subf %518, %523 : vector<16x96xf32>
    %525 = arith.mulf %524, %524 : vector<16x96xf32>
    %cst_146 = arith.constant dense<0.000000e+00> : vector<16xf32>
    %526 = vector.multi_reduction <add>, %525, %cst_146 [1] : vector<16x96xf32> to vector<16xf32>
    %527 = vector.shape_cast %526 : vector<16xf32> to vector<16x1xf32>
    %cst_147 = arith.constant 9.600000e+01 : f32
    %528 = vector.broadcast %cst_147 : f32 to vector<16x1xf32>
    %529 = arith.divf %527, %528 : vector<16x1xf32>
    %530 = vector.broadcast %522 : vector<16x1xf32> to vector<16x96xf32>
    %531 = arith.subf %518, %530 : vector<16x96xf32>
    %cst_148 = arith.constant 9.99999997E-7 : f32
    %532 = vector.broadcast %cst_148 : f32 to vector<16x1xf32>
    %533 = arith.addf %529, %532 : vector<16x1xf32>
    %534 = math.rsqrt %533 : vector<16x1xf32>
    %535 = vector.broadcast %534 : vector<16x1xf32> to vector<16x96xf32>
    %536 = arith.mulf %531, %535 : vector<16x96xf32>
    %c0_149 = arith.constant 0 : index
    %c0_150 = arith.constant 0 : index
    %537 = vector.load %arg12[%c0_149, %c0_150] : memref<1x96xf32, #tpu.memory_space<vmem>>, vector<1x96xf32>
    %538 = vector.broadcast %537 : vector<1x96xf32> to vector<16x96xf32>
    %539 = arith.mulf %536, %538 : vector<16x96xf32>
    %c0_151 = arith.constant 0 : index
    %c0_152 = arith.constant 0 : index
    %540 = vector.load %arg13[%c0_151, %c0_152] : memref<1x96xf32, #tpu.memory_space<vmem>>, vector<1x96xf32>
    %541 = vector.broadcast %540 : vector<1x96xf32> to vector<16x96xf32>
    %542 = arith.addf %539, %541 : vector<16x96xf32>
    %c0_153 = arith.constant 0 : index
    %c0_154 = arith.constant 0 : index
    %543 = vector.load %arg14[%c0_153, %c0_154] : memref<16x96xf32, #tpu.memory_space<vmem>>, vector<16x96xf32>
    tpu.vector_store %arg14[%c0_153, %c0_154], %542 {strides = array<i32>} : memref<16x96xf32, #tpu.memory_space<vmem>>, vector<16x96xf32>,
    %544 = tpu.concatenate %265, %510 in 0 : vector<8x96xf32>, vector<8x96xf32> -> vector<16x96xf32>
    %c0_155 = arith.constant 0 : index
    %c0_156 = arith.constant 0 : index
    %545 = vector.load %arg15[%c0_155, %c0_156] : memref<16x96xf32, #tpu.memory_space<vmem>>, vector<16x96xf32>
    tpu.vector_store %arg15[%c0_155, %c0_156], %544 {strides = array<i32>} : memref<16x96xf32, #tpu.memory_space<vmem>>, vector<16x96xf32>,
    return
  }
  func.func @transform_0(%arg0: i32) -> (i32, i32) {
    %c0_i32 = arith.constant 0 : i32
    %c0_i32_0 = arith.constant 0 : i32
    %c0_i32_1 = arith.constant 0 : i32
    return %c0_i32, %c0_i32_0 : i32, i32
  }
  func.func @transform_1(%arg0: i32) -> (i32, i32) {
    %c0_i32 = arith.constant 0 : i32
    %c0_i32_0 = arith.constant 0 : i32
    %c0_i32_1 = arith.constant 0 : i32
    return %c0_i32, %c0_i32_0 : i32, i32
  }
  func.func @transform_2(%arg0: i32) -> (i32, i32) {
    %c0_i32 = arith.constant 0 : i32
    %c0_i32_0 = arith.constant 0 : i32
    %c0_i32_1 = arith.constant 0 : i32
    return %c0_i32, %c0_i32_0 : i32, i32
  }
  func.func @transform_3(%arg0: i32) -> (i32, i32) {
    %c0_i32 = arith.constant 0 : i32
    %c0_i32_0 = arith.constant 0 : i32
    %c0_i32_1 = arith.constant 0 : i32
    return %c0_i32, %c0_i32_0 : i32, i32
  }
  func.func @transform_4(%arg0: i32) -> (i32, i32) {
    %c0_i32 = arith.constant 0 : i32
    %c0_i32_0 = arith.constant 0 : i32
    %c0_i32_1 = arith.constant 0 : i32
    return %c0_i32, %c0_i32_0 : i32, i32
  }
  func.func @transform_5(%arg0: i32) -> (i32, i32) {
    %c0_i32 = arith.constant 0 : i32
    %c0_i32_0 = arith.constant 0 : i32
    %c0_i32_1 = arith.constant 0 : i32
    return %c0_i32, %c0_i32_0 : i32, i32
  }
  func.func @transform_6(%arg0: i32) -> (i32, i32) {
    %c0_i32 = arith.constant 0 : i32
    %c0_i32_0 = arith.constant 0 : i32
    %c0_i32_1 = arith.constant 0 : i32
    return %c0_i32, %c0_i32_0 : i32, i32
  }
  func.func @transform_7(%arg0: i32) -> (i32, i32) {
    %c0_i32 = arith.constant 0 : i32
    %c0_i32_0 = arith.constant 0 : i32
    %c0_i32_1 = arith.constant 0 : i32
    return %c0_i32, %c0_i32_0 : i32, i32
  }
  func.func @transform_8(%arg0: i32) -> (i32, i32) {
    %c0_i32 = arith.constant 0 : i32
    %c0_i32_0 = arith.constant 0 : i32
    %c0_i32_1 = arith.constant 0 : i32
    return %c0_i32, %c0_i32_0 : i32, i32
  }
  func.func @transform_9(%arg0: i32) -> (i32, i32) {
    %c0_i32 = arith.constant 0 : i32
    %c0_i32_0 = arith.constant 0 : i32
    %c0_i32_1 = arith.constant 0 : i32
    return %c0_i32, %c0_i32_0 : i32, i32
  }
  func.func @transform_10(%arg0: i32) -> (i32, i32) {
    %c0_i32 = arith.constant 0 : i32
    %c0_i32_0 = arith.constant 0 : i32
    %c0_i32_1 = arith.constant 0 : i32
    return %c0_i32, %c0_i32_0 : i32, i32
  }
  func.func @transform_11(%arg0: i32) -> (i32, i32) {
    %c0_i32 = arith.constant 0 : i32
    %c0_i32_0 = arith.constant 0 : i32
    %c0_i32_1 = arith.constant 0 : i32
    return %c0_i32, %c0_i32_0 : i32, i32
  }
  func.func @transform_12(%arg0: i32) -> (i32, i32) {
    %c0_i32 = arith.constant 0 : i32
    %c0_i32_0 = arith.constant 0 : i32
    %c0_i32_1 = arith.constant 0 : i32
    return %c0_i32, %c0_i32_0 : i32, i32
  }
  func.func @transform_13(%arg0: i32) -> (i32, i32) {
    %c0_i32 = arith.constant 0 : i32
    %c0_i32_0 = arith.constant 0 : i32
    %c0_i32_1 = arith.constant 0 : i32
    return %c0_i32, %c0_i32_0 : i32, i32
  }
  func.func @transform_14(%arg0: i32) -> (i32, i32) {
    %c0_i32 = arith.constant 0 : i32
    %c0_i32_0 = arith.constant 0 : i32
    %c0_i32_1 = arith.constant 0 : i32
    return %c0_i32, %c0_i32_0 : i32, i32
  }
}

</mosaic_0001>

<bundles_post_ra>
// kernel: tpu_custom_call.1
= control target key start
LH: loop header
LB: loop body
LE: loop exit
PB: predicated region body
PF: predicated region fallthrough
CT: control target
= control target key end

     0   :  { %20 = vsyncpa [#allocation3], 0  ;;  %s5710_s0 = inlined_call_operand.hbm [shape: f32[16,96], index: 0, kind: input, shape index: {}]   ;;  %s5711_s1 = inlined_call_operand.hbm [shape: f32[16,96], index: 1, kind: input, shape index: {}]   ;;  %s5712_s2 = inlined_call_operand.hbm [shape: f32[16,96], index: 2, kind: input, shape index: {}]   ;;  %s5713_s3 = inlined_call_operand.hbm [shape: bf16[96,96], index: 3, kind: input, shape index: {}]   ;;  %s5714_s4 = inlined_call_operand.vmem [shape: f32[1,96], index: 4, kind: input, shape index: {}]   ;;  %s5715_s5 = inlined_call_operand.hbm [shape: bf16[96,96], index: 5, kind: input, shape index: {}]   ;;  %s5716_s6 = inlined_call_operand.vmem [shape: f32[1,96], index: 6, kind: input, shape index: {}]   ;;  %s5717_s7 = inlined_call_operand.hbm [shape: bf16[96,96], index: 7, kind: input, shape index: {}]   ;;  %s5718_s8 = inlined_call_operand.vmem [shape: f32[1,96], index: 8, kind: input, shape index: {}]   ;;  %s5719_s9 = inlined_call_operand.hbm [shape: bf16[96,96], index: 9, kind: input, shape index: {}]   ;;  %s5720_s10 = inlined_call_operand.vmem [shape: f32[1,96], index: 10, kind: input, shape index: {}]   ;;  %s5721_s11 = inlined_call_operand.vmem [shape: f32[1,96], index: 11, kind: input, shape index: {}]   ;;  %s5722_s12 = inlined_call_operand.vmem [shape: f32[1,96], index: 12, kind: input, shape index: {}]   ;;  %s5723_s13 = inlined_call_operand.hbm [shape: f32[16,96], index: 13, kind: output, shape index: {0}]   ;;  %s5724_s14 = inlined_call_operand.hbm [shape: f32[16,96], index: 14, kind: output, shape index: {1}]  }
   0x1   :  { %21 = vsyncpa [#allocation6], 0 }
   0x2   :  { %22 = vsyncpa [#allocation9], 0 }
   0x3   :  { %23 = vsyncpa [#allocation12], 0 }
   0x4   :  { %24 = vsyncpa [#allocation4], 0 }
   0x5   :  { %25 = vsyncpa [#allocation16], 0  ;;  %s4493_s29 = smov [#allocation5]   ;;  %s4494_s15 = smov [#allocation8]  }
   0x6   :  { %s43_s30 = sshll.u32 %s4493_s29, 4  ;;  %s67_s16 = sshll.u32 %s4494_s15, 4  ;;  %s44_s30 = int_to_ptr.vmem [resolvable:$true] %s43_s30  ;;  %s68_s16 = int_to_ptr.vmem [resolvable:$true] %s67_s16 }
   0x7   :  { %s4309_s17 = scalar_lea.vmem %s44_s30, 256  ;;  %p4314_p1 = scmp.lt.s32.totalorder %s44_s30, %s44_s30 }
   0x8   :  { %p4310_p0 = scmp.ne.s32.totalorder %s44_s30, %s4309_s17  ;;  %p4315_p2 = scmp.lt.s32.totalorder %s4309_s17, %s4309_s17 }
   0xa   :  { %p4316_p3 = por %p4315_p2, %p4314_p1 }
   0xc   :  { %p4317_p4 = pnand %p4316_p3, %p4310_p0 }
   0xe   :  { %4320 = shalt.err (!%p4317_p4)
}
   0xf   :  { %s4495_s18 = smov 128   ;;  %s4496_s19 = smov 8  }
  0x10   :  { %49 = dma.hbm_to_vmem [thread:$0]  %s5711_s1, 256, %s44_s30, [#allocation6], %s4495_s18, %s4495_s18, %s4496_s19  }
  0x11   :  { %s4329_s22 = scalar_lea.vmem %s68_s16, 768  ;;  %p4334_p6 = scmp.lt.s32.totalorder %s68_s16, %s68_s16 }
  0x12   :  { %p4330_p5 = scmp.ne.s32.totalorder %s68_s16, %s4329_s22  ;;  %p4335_p7 = scmp.lt.s32.totalorder %s4329_s22, %s4329_s22 }
  0x14   :  { %p4336_p8 = por %p4335_p7, %p4334_p6 }
  0x16   :  { %p4337_p9 = pnand %p4336_p8, %p4330_p5 }
  0x18   :  { %4340 = shalt.err (!%p4337_p9)
}
  0x19   :  { %s4497_s23 = smov 64   ;;  %s4498_s24 = smov 4  }
  0x1a   :  { %73 = dma.hbm_to_vmem [thread:$0]  %s5713_s3, 768, %s68_s16, [#allocation9], %s4497_s23, %s4497_s23, %s4498_s24  }
  0x1b   :  { %s4499_s27 = smov [#allocation11]   ;;  %s4500_s29 = smov [#allocation2]  }
  0x1c   :  { %s95_s28 = sshll.u32 %s4499_s27, 4  ;;  %s31_s1 = sshll.u32 %s4500_s29, 4  ;;  %s96_s28 = int_to_ptr.vmem [resolvable:$true] %s95_s28  ;;  %s32_s1 = int_to_ptr.vmem [resolvable:$true] %s31_s1 }
  0x1d   :  { %s4349_s30 = scalar_lea.vmem %s96_s28, 768  ;;  %p4354_p11 = scmp.lt.s32.totalorder %s96_s28, %s96_s28 }
  0x1e   :  { %p4350_p10 = scmp.ne.s32.totalorder %s96_s28, %s4349_s30  ;;  %p4355_p12 = scmp.lt.s32.totalorder %s4349_s30, %s4349_s30 }
  0x20   :  { %p4356_p13 = por %p4355_p12, %p4354_p11 }
  0x22   :  { %p4357_p0 = pnand %p4356_p13, %p4350_p10 }
  0x24   :  { %4360 = shalt.err (!%p4357_p0)
}
  0x25   :  { %101 = dma.hbm_to_vmem [thread:$0]  %s5717_s7, 768, %s96_s28, [#allocation12], %s4497_s23, %s4497_s23, %s4498_s24  }
  0x26   :  { %s4369_s3 = scalar_lea.vmem %s32_s1, 256  ;;  %p4374_p2 = scmp.lt.s32.totalorder %s32_s1, %s32_s1 }
  0x27   :  { %p4370_p1 = scmp.ne.s32.totalorder %s32_s1, %s4369_s3  ;;  %p4375_p3 = scmp.lt.s32.totalorder %s4369_s3, %s4369_s3 }
  0x29   :  { %p4376_p4 = por %p4375_p3, %p4374_p2 }
  0x2b   :  { %p4377_p5 = pnand %p4376_p4, %p4370_p1 }
  0x2d   :  { %4380 = shalt.err (!%p4377_p5)
}
  0x2e   :  { %37 = dma.hbm_to_vmem [thread:$0]  %s5710_s0, 256, %s32_s1, [#allocation3], %s4495_s18, %s4495_s18, %s4496_s19  }
  0x2f   :  { %s4501_s21 = smov [#allocation7]   ;;  %s4502_s25 = smov [#allocation10]  }
  0x30   :  { %s55_s22 = sshll.u32 %s4501_s21, 4  ;;  %s81_s26 = sshll.u32 %s4502_s25, 4  ;;  %s56_s22 = int_to_ptr.vmem [resolvable:$true] %s55_s22  ;;  %s82_s26 = int_to_ptr.vmem [resolvable:$true] %s81_s26 }
  0x31   :  { %s4389_s7 = scalar_lea.vmem %s56_s22, 256  ;;  %p4394_p7 = scmp.lt.s32.totalorder %s56_s22, %s56_s22 }
  0x32   :  { %p4390_p6 = scmp.ne.s32.totalorder %s56_s22, %s4389_s7  ;;  %p4395_p8 = scmp.lt.s32.totalorder %s4389_s7, %s4389_s7 }
  0x34   :  { %p4396_p9 = por %p4395_p8, %p4394_p7 }
  0x36   :  { %p4397_p10 = pnand %p4396_p9, %p4390_p6 }
  0x38   :  { %4400 = shalt.err (!%p4397_p10)
}
  0x39   :  { %61 = dma.hbm_to_vmem [thread:$0]  %s5712_s2, 256, %s56_s22, [#allocation6], %s4495_s18, %s4495_s18, %s4496_s19  }
  0x3a   :  { %s4409_s0 = scalar_lea.vmem %s82_s26, 768  ;;  %p4414_p12 = scmp.lt.s32.totalorder %s82_s26, %s82_s26 }
  0x3b   :  { %p4410_p11 = scmp.ne.s32.totalorder %s82_s26, %s4409_s0  ;;  %p4415_p13 = scmp.lt.s32.totalorder %s4409_s0, %s4409_s0 }
  0x3d   :  { %p4416_p0 = por %p4415_p13, %p4414_p12 }
  0x3f   :  { %p4417_p1 = pnand %p4416_p0, %p4410_p11 }
  0x41   :  { %4420 = shalt.err (!%p4417_p1)
}
  0x42   :  { %87 = dma.hbm_to_vmem [thread:$0]  %s5715_s5, 768, %s82_s26, [#allocation9], %s4497_s23, %s4497_s23, %s4498_s24  }
  0x43   :  { %s4503_s30 = smov [#allocation13]  }
  0x44   :  { %s109_s15 = sshll.u32 %s4503_s30, 4  ;;  %s110_s15 = int_to_ptr.vmem [resolvable:$true] %s109_s15 }
  0x45   :  { %s4429_s17 = scalar_lea.vmem %s110_s15, 768  ;;  %p4434_p3 = scmp.lt.s32.totalorder %s110_s15, %s110_s15 }
  0x46   :  { %p4430_p2 = scmp.ne.s32.totalorder %s110_s15, %s4429_s17  ;;  %p4435_p4 = scmp.lt.s32.totalorder %s4429_s17, %s4429_s17 }
  0x48   :  { %p4436_p5 = por %p4435_p4, %p4434_p3 }
  0x4a   :  { %p4437_p6 = pnand %p4436_p5, %p4430_p2 }
  0x4c   :  { %4440 = shalt.err (!%p4437_p6)
}
  0x4d   :  { %115 = dma.hbm_to_vmem [thread:$0]  %s5719_s9, 768, %s110_s15, [#allocation12], %s4497_s23, %s4497_s23, %s4498_s24  }
  0x4e   :  { %4481 = dma.done.wait [#allocation3], 256  }
  0x4f   :  { %4482 = vsyncadd [#allocation3], 4294967040 }
  0x50   :  { %4483 = dma.done.wait [#allocation6], 512  }
  0x51   :  { %4484 = vsyncadd [#allocation6], 4294966784 }
  0x52   :  { %4485 = dma.done.wait [#allocation9], 1536  }
  0x53   :  { %4486 = vsyncadd [#allocation9], 4294965760 }
  0x54   :  { %4487 = dma.done.wait [#allocation12], 1536  }
  0x55   :  { %4488 = vsyncadd [#allocation12], 4294965760  ;;  %v4504_v0 = vmov 0.0   ;;  %vm4505_vm0 = vmmov 0   ;;  %v4175_v1 = vld [vmem:[#allocation10 + $0x28] sm:$0xff]   ;;  %v4176_v2 = vld [vmem:[#allocation8 + $0x28] sm:$0xff]  }
  0x56   :  { %3756 = vmatprep.subr.bf16.mxu1 %v4504_v0  ;;  %3740 = vmatprep.subr.bf16.mxu0 %v4504_v0  ;;  %v4177_v3 = vld [vmem:[#allocation10 + $0x20] sm:$0xff]   ;;  %v4178_v4 = vld [vmem:[#allocation8 + $0x20] sm:$0xff]   ;;  %v4179_v5 = vld [vmem:[#allocation10 + $0x18] sm:$0xff]   ;;  %vm202_vm1 = vcmask 785408   ;;  %vm454_vm2 = vcmask 64512   ;;  %s4506_s20 = smov 120  }
  0x57   :  { %3768 = vmatprep.mubr.msk.bf16.mxu1 %vm4505_vm0, %v4504_v0  ;;  %3752 = vmatprep.mubr.msk.bf16.mxu0 %vm4505_vm0, %v4504_v0  ;;  %v4180_v6 = vld [vmem:[#allocation8 + $0x18] sm:$0xff]   ;;  %v4181_v7 = vld [vmem:[#allocation10 + $0x10] sm:$0xff]   ;;  %v4182_v8 = vld [vmem:[#allocation8 + $0x10] sm:$0xff]   ;;  %s4509_s21 = smov 96   ;;  %s4510_s22 = smov 88   ;;  %vm517_vm3 = vcmask 1043456  }
  0x58   :  { %3757 = vmatpush3.bf16.msra.mxu1 %v4175_v1  ;;  %3741 = vmatpush3.bf16.msra.mxu0 %v4176_v2  ;;  %v4183_v9 = vld [vmem:[#allocation10 + $0x8] sm:$0xff]   ;;  %v4184_v10 = vld [vmem:[#allocation8 + $0x8] sm:$0xff]   ;;  %v4185_v11 = vld [vmem:[#allocation10] sm:$0xff]   ;;  %s4511_s25 = smov 80   ;;  %s4512_s26 = smov 72   ;;  %vm1830_vm4 = vcmask 130048  }
  0x59   :  { %3758 = vmatprep.subr.bf16.mxu1 %v4504_v0  ;;  %3742 = vmatprep.subr.bf16.mxu0 %v4504_v0  ;;  %v247_v12 = vld [vmem:[#allocation5] sm:$0xff]  ;;  %v248_v13 = vld [vmem:[#allocation5 + $0x8] sm:$0xff]  ;;  %v144_v15 = vld [vmem:[#allocation2] sm:$0xff]  ;;  %s4513_s7 = smov 56   ;;  %s4514_s27 = smov 48   ;;  %vm1832_vm5 = vcmask 195584  }
  0x5a   :  { %v4186_v14 = vld [vmem:[#allocation8] sm:$0xff]   ;;  %v145_v16 = vld [vmem:[#allocation2 + $0x8] sm:$0xff]  ;;  %v249_v17 = vpack.c.bf16 %v248_v13, %v247_v12  ;;  %v4187_v18 = vld [vmem:[#allocation11 + $0x28] sm:$0xff]   ;;  %s4515_s28 = smov 40   ;;  %s4517_s1 = smov 24   ;;  %vm1834_vm6 = vcmask 261120  }
  0x5b   :  { %v146_v19 = vpack.c.bf16 %v145_v16, %v144_v15  ;;  %v4188_v20 = vld [vmem:[#allocation11 + $0x20] sm:$0xff]   ;;  %v4189_v21 = vld [vmem:[#allocation11 + $0x18] sm:$0xff]   ;;  %v4190_v22 = vld [vmem:[#allocation11 + $0x10] sm:$0xff]   ;;  %s4518_s30 = smov 32   ;;  %vm1836_vm7 = vcmask 326656   ;;  %vm1838_vm8 = vcmask 392192  }
  0x5c   :  { %3759 = vmatpush3.bf16.msra.mxu1 %v4177_v3  ;;  %3743 = vmatpush3.bf16.msra.mxu0 %v4178_v4  ;;  %v4191_v23 = vld [vmem:[#allocation11 + $0x8] sm:$0xff]   ;;  %v4192_v24 = vld [vmem:[#allocation11] sm:$0xff]   ;;  %v349_v25 = vld [vmem:[#allocation7] sm:$0xff]  ;;  %vm1840_vm9 = vcmask 457728   ;;  %vm1842_vm10 = vcmask 523264   ;;  %vm1844_vm11 = vcmask 588800  }
  0x5d   :  { %3760 = vmatprep.subr.bf16.mxu1 %v4504_v0  ;;  %3744 = vmatprep.subr.bf16.mxu0 %v4504_v0  ;;  %v350_v26 = vld [vmem:[#allocation7 + $0x8] sm:$0xff]  ;;  %v3542_v28 = vld [vmem:[%s5716_s6] ss:$0 sm:$0xff]  ;;  %s4508_s6 = smov 104   ;;  %vm1846_vm12 = vcmask 654336   ;;  %vm1848_vm13 = vcmask 719872  }
  0x5e   :  { %v351_v27 = vpack.c.bf16 %v350_v26, %v349_v25  ;;  %v3534_v29 = vld [vmem:[%s5714_s4] ss:$0 sm:$0xff]  ;;  %s4507_s4 = smov 112  }
  0x5f   :  { %v3550_v48 = vld [vmem:[%s5718_s8] ss:$0 sm:$0xff]  ;;  %s4516_s8 = smov 16  }
  0x60   :  { %3761 = vmatpush3.bf16.msra.mxu1 %v4179_v5  ;;  %3745 = vmatpush3.bf16.msra.mxu0 %v4180_v6 }
  0x61   :  { %3762 = vmatprep.subr.bf16.mxu1 %v4504_v0  ;;  %3746 = vmatprep.subr.bf16.mxu0 %v4504_v0 }
  0x64   :  { %3763 = vmatpush3.bf16.msra.mxu1 %v4181_v7  ;;  %3747 = vmatpush3.bf16.msra.mxu0 %v4182_v8 }
  0x65   :  { %3764 = vmatprep.subr.bf16.mxu1 %v4504_v0  ;;  %3748 = vmatprep.subr.bf16.mxu0 %v4504_v0 }
  0x68   :  { %3765 = vmatpush3.bf16.msra.mxu1 %v4183_v9  ;;  %3749 = vmatpush3.bf16.msra.mxu0 %v4184_v10 }
  0x69   :  { %3766 = vmatprep.subr.bf16.mxu1 %v4504_v0  ;;  %3750 = vmatprep.subr.bf16.mxu0 %v4504_v0 }
  0x6c   :  { %3767 = vmatpush3.bf16.msra.mxu1 %v4185_v11  ;;  %3751 = vmatpush3.bf16.msra.mxu0 %v4186_v14 }
  0x6d   :  { %3794 = vmatprep.subr.bf16.mxu1 %v4504_v0  ;;  %3772 = vmatprep.subr.bf16.mxu0 %v4504_v0 }
  0x6f   :  { %3769 = vmatmul.mubr.msk.bf16.vlgmr.msra.gmra.mxu1 %vm202_vm1, %v249_v17  ;;  %3753 = vmatmul.mubr.msk.bf16.vlgmr.msra.gmra.mxu0 %vm202_vm1, %v146_v19 }
  0x70   :  { %3796 = vmatprep.mubr.msk.bf16.mxu1 %vm4505_vm0, %v4504_v0  ;;  %3773 = vmatpush3.bf16.msra.mxu0 %v4187_v18 }
  0x71   :  { %3784 = vmatprep.mubr.msk.bf16.mxu0 %vm4505_vm0, %v4504_v0  ;;  %3774 = vmatprep.subr.bf16.mxu0 %v4504_v0 }
  0x74   :  { %3775 = vmatpush3.bf16.msra.mxu0 %v4188_v20 }
  0x75   :  { %3776 = vmatprep.subr.bf16.mxu0 %v4504_v0 }
  0x78   :  { %3777 = vmatpush3.bf16.msra.mxu0 %v4189_v21 }
  0x79   :  { %3778 = vmatprep.subr.bf16.mxu0 %v4504_v0 }
  0x7c   :  { %3779 = vmatpush3.bf16.msra.mxu0 %v4190_v22 }
  0x7d   :  { %3780 = vmatprep.subr.bf16.mxu0 %v4504_v0 }
  0x80   :  { %3781 = vmatpush3.bf16.msra.mxu0 %v4191_v23 }
  0x81   :  { %3782 = vmatprep.subr.bf16.mxu0 %v4504_v0 }
  0x84   :  { %3783 = vmatpush3.bf16.msra.mxu0 %v4192_v24 }
  0x85   :  { %3788 = vmatprep.subr.bf16.mxu0 %v4504_v0 }
  0x87   :  { %3785 = vmatmul.mubr.msk.bf16.vlgmr.msra.gmra.mxu0 %vm202_vm1, %v351_v27 }
  0x88   :  { %3790 = vmatprep.mubr.msk.bf16.mxu0 %vm4505_vm0, %v4504_v0 }
 0x12f   :  { %v342_v30 = vpop.f32.mrf.mxu1  ;;  %v240_v32 = vpop.f32.mrf.mxu0 }
 0x130   :  { %v343_v31 = vadd.f32 %v3542_v28, %v342_v30  ;;  %v241_v34 = vadd.f32 %v3534_v29, %v240_v32 }
 0x131   :  { %v3770_v33 = vpop.f32.mrf.mxu1  ;;  %v3754_v36 = vpop.f32.mrf.mxu0 }
 0x132   :  { %v4677_v35 = vpack.c.bf16 %v343_v31, %v343_v31  ;;  %v4679_v38 = vpack.c.bf16 %v241_v34, %v241_v34 }
 0x133   :  { %v345_v37 = vpop.f32.mrf.mxu1  ;;  %v243_v40 = vpop.f32.mrf.mxu0 }
 0x134   :  { %565 = vrot.lane.b32.xlu1 %v4677_v35, %s4506_s20  ;;  %v459_v39 = vsel %vm454_vm2, %v4677_v35, 0  ;;  %v4685_v42 = vadd.f32 %v3534_v29, %v243_v40  ;;  %v346_v46 = vadd.f32 %v3542_v28, %v345_v37 }
 0x135   :  { %v3771_v41 = vpop.f32.mrf.mxu1  ;;  %3789 = vmatpush3.bf16.xpose.msra.mxu0 %v459_v39  ;;  %v3755_v43 = vpop.f32.mrf.mxu0 }
 0x136   :  { %3806 = vmatprep.subr.bf16.mxu0 %v4504_v0  ;;  %v4718_v47 = vpack.c.bf16 %v346_v46, %v346_v46  ;;  %v4840_v31 = vpack.c.bf16 %v4685_v42, %v4685_v42 }
 0x138   :  { %562 = vrot.lane.b32.xlu1 %v4679_v38, %s4506_s20 }
 0x13c   :  { %675 = vrot.lane.b32.xlu1 %v4679_v38, %s4507_s4  ;;  %3791 = vmatmul.mubr.msk.bf16.vlgmr.msra.gmra.mxu0 %vm454_vm2, %v4679_v38 }
 0x13d   :  { %3808 = vmatprep.mubr.msk.bf16.mxu0 %vm4505_vm0, %v4504_v0 }
 0x140   :  { %788 = vrot.lane.b32.xlu1 %v4677_v35, %s4508_s6 }
 0x144   :  { %786 = vrot.lane.b32.xlu1 %v4679_v38, %s4508_s6 }
 0x147   :  { %v444_v44 = vpop.f32.mrf.mxu0 }
 0x148   :  { %899 = vrot.lane.b32.xlu1 %v4677_v35, %s4509_s21  ;;  %v445_v50 = vadd.f32 %v3550_v48, %v444_v44 }
 0x149   :  { %v3786_v45 = vpop.f32.mrf.mxu0 }
 0x14a   :  { %v4729_v52 = vpack.c.bf16 %v445_v50, %v445_v50 }
 0x14b   :  { %v447_v49 = vpop.f32.mrf.mxu0 }
 0x14c   :  { %897 = vrot.lane.b32.xlu1 %v4679_v38, %s4509_s21  ;;  %v519_v53 = vsel %vm517_vm3, %v4729_v52, 0  ;;  %v448_v56 = vadd.f32 %v3550_v48, %v447_v49 }
 0x14d   :  { %v3787_v51 = vpop.f32.mrf.mxu0  ;;  %3795 = vmatpush3.bf16.msra.mxu1 %v519_v53 }
 0x14e   :  { %3800 = vmatprep.subr.bf16.mxu1 %v4504_v0  ;;  %v4768_v58 = vpack.c.bf16 %v448_v56, %v448_v56  ;;  %v1912_v56 = vsel %vm454_vm2, %v4718_v47, 0 }
 0x150   :  { %1010 = vrot.lane.b32.xlu1 %v4677_v35, %s4510_s22 }
 0x154   :  { %1121 = vrot.lane.b32.xlu1 %v4677_v35, %s4511_s25 }
 0x158   :  { %1232 = vrot.lane.b32.xlu1 %v4677_v35, %s4512_s26 }
 0x15c   :  { %1343 = vrot.lane.b32.xlu1 %v4677_v35, %s4497_s23 }
 0x160   :  { %1454 = vrot.lane.b32.xlu1 %v4677_v35, %s4513_s7 }
 0x164   :  { %1565 = vrot.lane.b32.xlu1 %v4677_v35, %s4514_s27 }
 0x168   :  { %1676 = vrot.lane.b32.xlu1 %v4677_v35, %s4515_s28 }
 0x16c   :  { %2017 = vrot.lane.b32.xlu1 %v4718_v47, %s4506_s20 }
 0x170   :  { %2129 = vrot.lane.b32.xlu1 %v4718_v47, %s4507_s4 }
 0x174   :  { %2240 = vrot.lane.b32.xlu1 %v4718_v47, %s4508_s6 }
 0x178   :  { %2351 = vrot.lane.b32.xlu1 %v4718_v47, %s4509_s21 }
 0x17c   :  { %2462 = vrot.lane.b32.xlu1 %v4718_v47, %s4510_s22 }
 0x180   :  { %2573 = vrot.lane.b32.xlu1 %v4718_v47, %s4511_s25 }
 0x184   :  { %2684 = vrot.lane.b32.xlu1 %v4718_v47, %s4512_s26 }
 0x188   :  { %2795 = vrot.lane.b32.xlu1 %v4718_v47, %s4497_s23 }
 0x18c   :  { %2906 = vrot.lane.b32.xlu1 %v4718_v47, %s4513_s7 }
 0x190   :  { %3017 = vrot.lane.b32.xlu1 %v4718_v47, %s4514_s27 }
 0x194   :  { %3128 = vrot.lane.b32.xlu1 %v4718_v47, %s4515_s28 }
 0x198   :  { %627 = vrot.lane.b32.xlu1 %v4729_v52, %s4506_s20 }
 0x19c   :  { %849 = vrot.lane.b32.xlu1 %v4729_v52, %s4508_s6 }
 0x1a0   :  { %1071 = vrot.lane.b32.xlu1 %v4729_v52, %s4510_s22 }
 0x1a4   :  { %1293 = vrot.lane.b32.xlu1 %v4729_v52, %s4512_s26 }
 0x1a6   :  { %v4758_v54 = vpop.permute.xlu1 %565 }
 0x1a7   :  { %v571_v36 = vsel %vm454_vm2, %v4758_v54, 0 }
 0x1a8   :  { %1515 = vrot.lane.b32.xlu1 %v4729_v52, %s4513_s7 }
 0x1aa   :  { %v4762_v55 = vpop.permute.xlu1 %562 }
 0x1ac   :  { %1626 = vrot.lane.b32.xlu1 %v4729_v52, %s4514_s27 }
 0x1ae   :  { %v4766_v57 = vpop.permute.xlu1 %675 }
 0x1b0   :  { %1737 = vrot.lane.b32.xlu1 %v4729_v52, %s4515_s28 }
 0x1b2   :  { %v4772_v59 = vpop.permute.xlu1 %788 }
 0x1b3   :  { %v794_v39 = vsel %vm454_vm2, %v4772_v59, 0 }
 0x1b4   :  { %2190 = vrot.lane.b32.xlu1 %v4768_v58, %s4507_s4 }
 0x1b6   :  { %v4776_v60 = vpop.permute.xlu1 %786 }
 0x1ba   :  { %v4778_v61 = vpop.permute.xlu1 %899 }
 0x1bb   :  { %v905_v40 = vsel %vm454_vm2, %v4778_v61, 0 }
 0x1be   :  { %v4780_v62 = vpop.permute.xlu1 %897 }
 0x1c2   :  { %v4782_v63 = vpop.permute.xlu1 %1010 }
 0x1c3   :  { %v1016_v41 = vsel %vm454_vm2, %v4782_v63, 0 }
 0x1c6   :  { %v4784_v1 = vpop.permute.xlu1 %1121 }
 0x1c7   :  { %v1127_v43 = vsel %vm454_vm2, %v4784_v1, 0 }
 0x1ca   :  { %v4786_v2 = vpop.permute.xlu1 %1232 }
 0x1cb   :  { %v1238_v45 = vsel %vm454_vm2, %v4786_v2, 0 }
 0x1ce   :  { %v4788_v3 = vpop.permute.xlu1 %1343 }
 0x1cf   :  { %v1349_v48 = vsel %vm454_vm2, %v4788_v3, 0 }
 0x1d2   :  { %v4790_v4 = vpop.permute.xlu1 %1454 }
 0x1d3   :  { %v1460_v50 = vsel %vm454_vm2, %v4790_v4, 0 }
 0x1d6   :  { %v4792_v5 = vpop.permute.xlu1 %1565 }
 0x1da   :  { %v4794_v6 = vpop.permute.xlu1 %1676 }
 0x1db   :  { %v1682_v54 = vsel %vm454_vm2, %v4794_v6, 0 }
 0x1de   :  { %v4796_v7 = vpop.permute.xlu1 %2017 }
 0x1e2   :  { %v4798_v8 = vpop.permute.xlu1 %2129 }
 0x1e3   :  { %v2135_v47 = vsel %vm454_vm2, %v4798_v8, 0 }
 0x1e6   :  { %v4800_v9 = vpop.permute.xlu1 %2240 }
 0x1e7   :  { %v2246_v61 = vsel %vm454_vm2, %v4800_v9, 0 }
 0x1ea   :  { %v4802_v10 = vpop.permute.xlu1 %2351 }
 0x1eb   :  { %v2357_v63 = vsel %vm454_vm2, %v4802_v10, 0 }
 0x1ee   :  { %v4804_v11 = vpop.permute.xlu1 %2462 }
 0x1ef   :  { %v2468_v2 = vsel %vm454_vm2, %v4804_v11, 0 }
 0x1f2   :  { %v4806_v12 = vpop.permute.xlu1 %2573 }
 0x1f3   :  { %v2579_v4 = vsel %vm454_vm2, %v4806_v12, 0 }
 0x1f6   :  { %v4808_v13 = vpop.permute.xlu1 %2684 }
 0x1f7   :  { %v2690_v6 = vsel %vm454_vm2, %v4808_v13, 0 }
 0x1fa   :  { %v4810_v14 = vpop.permute.xlu1 %2795 }
 0x1fb   :  { %v2801_v8 = vsel %vm454_vm2, %v4810_v14, 0 }
 0x1fc   :  { %v495_v15 = vpop.f32.mrf.mxu0 }
 0x1fd   :  { %v501_v16 = vmul.f32 0.35355338, %v495_v15 }
 0x1fe   :  { %v4812_v17 = vpop.permute.xlu1 %2906  ;;  %v3792_v18 = vpop.f32.mrf.mxu0 }
 0x1ff   :  { %v502_v19 = vsel %vm454_vm2, %v501_v16, -inf  ;;  %v2912_v10 = vsel %vm454_vm2, %v4812_v17, 0 }
 0x200   :  { %503 = vmax.xlane.f32.xlu0 %v502_v19  ;;  %v498_v20 = vpop.f32.mrf.mxu0 }
 0x202   :  { %v4815_v21 = vpop.permute.xlu1 %3017  ;;  %v3793_v22 = vpop.f32.mrf.mxu0 }
 0x203   :  { %v3023_v12 = vsel %vm454_vm2, %v4815_v21, 0 }
 0x206   :  { %v4817_v23 = vpop.permute.xlu1 %3128 }
 0x207   :  { %v3134_v14 = vsel %vm454_vm2, %v4817_v23, 0 }
 0x20a   :  { %v628_v24 = vpop.permute.xlu1 %627 }
 0x20b   :  { %v633_v25 = vsel %vm517_vm3, %v628_v24, 0 }
 0x20c   :  { %3807 = vmatpush3.bf16.msra.mxu0 %v633_v25 }
 0x20d   :  { %3818 = vmatprep.subr.bf16.mxu0 %v4504_v0 }
 0x289   :  { %v504_v26 = vpop.xlane.xlu0 %503 }
 0x28a   :  { %v505_v27 = vsub.f32 %v501_v16, %v504_v26 }
 0x28c   :  { %v506_v28 = vmul.f32 1.442695, %v505_v27 }
 0x28e   :  { %4199 = vpow2.f32 %v506_v28 }
 0x29b   :  { %v4200_v29 = vpop.eup %4199 }
 0x29c   :  { %v508_v30 = vsel %vm454_vm2, %v4200_v29, 0.0 }
 0x29d   :  { %509 = vadd.xlane.f32.xlu0 %v508_v30 }
 0x2b3   :  { %677 = vrot.lane.b32.xlu0 %v4677_v35, %s4507_s4 }
 0x2b7   :  { %1008 = vrot.lane.b32.xlu0 %v4679_v38, %s4510_s22 }
 0x2bb   :  { %1119 = vrot.lane.b32.xlu0 %v4679_v38, %s4511_s25 }
 0x2bf   :  { %1230 = vrot.lane.b32.xlu0 %v4679_v38, %s4512_s26 }
 0x2c3   :  { %1341 = vrot.lane.b32.xlu0 %v4679_v38, %s4497_s23 }
 0x2c7   :  { %1452 = vrot.lane.b32.xlu0 %v4679_v38, %s4513_s7 }
 0x2cb   :  { %1563 = vrot.lane.b32.xlu0 %v4679_v38, %s4514_s27 }
 0x2cf   :  { %1674 = vrot.lane.b32.xlu0 %v4679_v38, %s4515_s28 }
 0x2d3   :  { %2014 = vrot.lane.b32.xlu0 %v4840_v31, %s4506_s20 }
 0x2d7   :  { %2127 = vrot.lane.b32.xlu0 %v4840_v31, %s4507_s4 }
 0x2db   :  { %2238 = vrot.lane.b32.xlu0 %v4840_v31, %s4508_s6 }
 0x2df   :  { %2349 = vrot.lane.b32.xlu0 %v4840_v31, %s4509_s21 }
 0x2e3   :  { %2460 = vrot.lane.b32.xlu0 %v4840_v31, %s4510_s22 }
 0x2e7   :  { %2571 = vrot.lane.b32.xlu0 %v4840_v31, %s4511_s25 }
 0x2eb   :  { %2682 = vrot.lane.b32.xlu0 %v4840_v31, %s4512_s26 }
 0x2ef   :  { %2793 = vrot.lane.b32.xlu0 %v4840_v31, %s4497_s23 }
 0x2f3   :  { %2904 = vrot.lane.b32.xlu0 %v4840_v31, %s4513_s7 }
 0x2f7   :  { %3015 = vrot.lane.b32.xlu0 %v4840_v31, %s4514_s27 }
 0x2fb   :  { %3126 = vrot.lane.b32.xlu0 %v4840_v31, %s4515_s28 }
 0x2ff   :  { %738 = vrot.lane.b32.xlu0 %v4729_v52, %s4507_s4 }
 0x303   :  { %960 = vrot.lane.b32.xlu0 %v4729_v52, %s4509_s21 }
 0x307   :  { %1182 = vrot.lane.b32.xlu0 %v4729_v52, %s4511_s25 }
 0x30b   :  { %1404 = vrot.lane.b32.xlu0 %v4729_v52, %s4497_s23  ;;  %v1571_v52 = vsel %vm454_vm2, %v4792_v5, 0 }
 0x30f   :  { %2079 = vrot.lane.b32.xlu0 %v4768_v58, %s4506_s20 }
 0x326   :  { %v510_v32 = vpop.xlane.xlu0 %509 }
 0x327   :  { %4201 = vrcp.f32 %v510_v32 }
 0x32a   :  { %v678_v37 = vpop.permute.xlu0 %677 }
 0x32b   :  { %v683_v38 = vsel %vm454_vm2, %v678_v37, 0 }
 0x32e   :  { %v1009_v42 = vpop.permute.xlu0 %1008 }
 0x332   :  { %v1120_v44 = vpop.permute.xlu0 %1119 }
 0x334   :  { %v4202_v33 = vpop.eup %4201 }
 0x335   :  { %v4874_v34 = vmul.f32 %v4202_v33, %v4200_v29 }
 0x336   :  { %v1231_v46 = vpop.permute.xlu0 %1230 }
 0x337   :  { %v513_v35 = vpack.c.bf16 %v4874_v34, %v4874_v34 }
 0x339   :  { %3797 = vmatmul.mubr.msk.bf16.vlgmr.msra.gmra.mxu1 %vm454_vm2, %v513_v35 }
 0x33a   :  { %3801 = vmatpush3.bf16.xpose.msra.mxu1 %v571_v36  ;;  %3802 = vmatprep.mubr.msk.bf16.mxu1 %vm4505_vm0, %v4504_v0  ;;  %v1342_v49 = vpop.permute.xlu0 %1341 }
 0x33b   :  { %3812 = vmatprep.subr.bf16.mxu1 %v4504_v0 }
 0x33e   :  { %v1453_v51 = vpop.permute.xlu0 %1452 }
 0x341   :  { %3803 = vmatmul.mubr.msk.bf16.vlgmr.msra.gmra.mxu1 %vm454_vm2, %v4762_v55 }
 0x342   :  { %3813 = vmatpush3.bf16.xpose.msra.mxu1 %v683_v38  ;;  %3814 = vmatprep.mubr.msk.bf16.mxu1 %vm4505_vm0, %v4504_v0  ;;  %v1564_v53 = vpop.permute.xlu0 %1563 }
 0x343   :  { %3824 = vmatprep.subr.bf16.mxu1 %v4504_v0 }
 0x346   :  { %v1675_v55 = vpop.permute.xlu0 %1674 }
 0x349   :  { %3815 = vmatmul.mubr.msk.bf16.vlgmr.msra.gmra.mxu1 %vm454_vm2, %v4766_v57  ;;  %v2023_v57 = vsel %vm454_vm2, %v4796_v7, 0 }
 0x34a   :  { %3825 = vmatpush3.bf16.xpose.msra.mxu1 %v794_v39  ;;  %3826 = vmatprep.mubr.msk.bf16.mxu1 %vm4505_vm0, %v4504_v0  ;;  %v2015_v59 = vpop.permute.xlu0 %2014 }
 0x34b   :  { %3836 = vmatprep.subr.bf16.mxu1 %v4504_v0 }
 0x351   :  { %3827 = vmatmul.mubr.msk.bf16.vlgmr.msra.gmra.mxu1 %vm454_vm2, %v4776_v60  ;;  %v2128_v60 = vpop.permute.xlu0 %2127 }
 0x352   :  { %3837 = vmatpush3.bf16.xpose.msra.mxu1 %v905_v40  ;;  %3838 = vmatprep.mubr.msk.bf16.mxu1 %vm4505_vm0, %v4504_v0 }
 0x353   :  { %3848 = vmatprep.subr.bf16.mxu1 %v4504_v0 }
 0x359   :  { %3839 = vmatmul.mubr.msk.bf16.vlgmr.msra.gmra.mxu1 %vm454_vm2, %v4780_v62  ;;  %v2239_v62 = vpop.permute.xlu0 %2238 }
 0x35a   :  { %3849 = vmatpush3.bf16.xpose.msra.mxu1 %v1016_v41  ;;  %3850 = vmatprep.mubr.msk.bf16.mxu1 %vm4505_vm0, %v4504_v0 }
 0x35b   :  { %3860 = vmatprep.subr.bf16.mxu1 %v4504_v0 }
 0x35d   :  { %v2350_v1 = vpop.permute.xlu0 %2349 }
 0x361   :  { %3851 = vmatmul.mubr.msk.bf16.vlgmr.msra.gmra.mxu1 %vm454_vm2, %v1009_v42  ;;  %v2461_v3 = vpop.permute.xlu0 %2460 }
 0x362   :  { %3861 = vmatpush3.bf16.xpose.msra.mxu1 %v1127_v43  ;;  %3862 = vmatprep.mubr.msk.bf16.mxu1 %vm4505_vm0, %v4504_v0 }
 0x363   :  { %3872 = vmatprep.subr.bf16.mxu1 %v4504_v0 }
 0x365   :  { %v2572_v5 = vpop.permute.xlu0 %2571 }
 0x369   :  { %3863 = vmatmul.mubr.msk.bf16.vlgmr.msra.gmra.mxu1 %vm454_vm2, %v1120_v44  ;;  %v2683_v7 = vpop.permute.xlu0 %2682 }
 0x36a   :  { %3873 = vmatpush3.bf16.xpose.msra.mxu1 %v1238_v45  ;;  %3874 = vmatprep.mubr.msk.bf16.mxu1 %vm4505_vm0, %v4504_v0 }
 0x36b   :  { %3884 = vmatprep.subr.bf16.mxu1 %v4504_v0 }
 0x36d   :  { %v2794_v9 = vpop.permute.xlu0 %2793 }
 0x371   :  { %3875 = vmatmul.mubr.msk.bf16.vlgmr.msra.gmra.mxu1 %vm454_vm2, %v1231_v46  ;;  %v2905_v11 = vpop.permute.xlu0 %2904 }
 0x372   :  { %3885 = vmatpush3.bf16.xpose.msra.mxu1 %v1349_v48  ;;  %3886 = vmatprep.mubr.msk.bf16.mxu1 %vm4505_vm0, %v4504_v0 }
 0x373   :  { %3896 = vmatprep.subr.bf16.mxu1 %v4504_v0 }
 0x375   :  { %v3016_v13 = vpop.permute.xlu0 %3015 }
 0x379   :  { %3887 = vmatmul.mubr.msk.bf16.vlgmr.msra.gmra.mxu1 %vm454_vm2, %v1342_v49  ;;  %v3127_v15 = vpop.permute.xlu0 %3126 }
 0x37a   :  { %3897 = vmatpush3.bf16.xpose.msra.mxu1 %v1460_v50  ;;  %3898 = vmatprep.mubr.msk.bf16.mxu1 %vm4505_vm0, %v4504_v0 }
 0x37b   :  { %3908 = vmatprep.subr.bf16.mxu1 %v4504_v0 }
 0x381   :  { %3899 = vmatmul.mubr.msk.bf16.vlgmr.msra.gmra.mxu1 %vm454_vm2, %v1453_v51 }
 0x382   :  { %3909 = vmatpush3.bf16.xpose.msra.mxu1 %v1571_v52  ;;  %3910 = vmatprep.mubr.msk.bf16.mxu1 %vm4505_vm0, %v4504_v0 }
 0x383   :  { %3920 = vmatprep.subr.bf16.mxu1 %v4504_v0 }
 0x389   :  { %3911 = vmatmul.mubr.msk.bf16.vlgmr.msra.gmra.mxu1 %vm454_vm2, %v1564_v53 }
 0x38a   :  { %3921 = vmatpush3.bf16.xpose.msra.mxu1 %v1682_v54  ;;  %3922 = vmatprep.mubr.msk.bf16.mxu1 %vm4505_vm0, %v4504_v0 }
 0x38b   :  { %3932 = vmatprep.subr.bf16.mxu1 %v4504_v0 }
 0x391   :  { %3923 = vmatmul.mubr.msk.bf16.vlgmr.msra.gmra.mxu1 %vm454_vm2, %v1675_v55 }
 0x392   :  { %3933 = vmatpush3.bf16.xpose.msra.mxu1 %v1912_v56  ;;  %3934 = vmatprep.mubr.msk.bf16.mxu1 %vm4505_vm0, %v4504_v0 }
 0x393   :  { %3944 = vmatprep.subr.bf16.mxu1 %v4504_v0 }
 0x399   :  { %3935 = vmatmul.mubr.msk.bf16.vlgmr.msra.gmra.mxu1 %vm454_vm2, %v4840_v31 }
 0x39a   :  { %3945 = vmatpush3.bf16.xpose.msra.mxu1 %v2023_v57  ;;  %3946 = vmatprep.mubr.msk.bf16.mxu1 %vm4505_vm0, %v4504_v0 }
 0x39b   :  { %3956 = vmatprep.subr.bf16.mxu1 %v4504_v0 }
 0x3a1   :  { %3947 = vmatmul.mubr.msk.bf16.vlgmr.msra.gmra.mxu1 %vm454_vm2, %v2015_v59 }
 0x3a2   :  { %3957 = vmatpush3.bf16.xpose.msra.mxu1 %v2135_v47  ;;  %3958 = vmatprep.mubr.msk.bf16.mxu1 %vm4505_vm0, %v4504_v0 }
 0x3a3   :  { %3968 = vmatprep.subr.bf16.mxu1 %v4504_v0 }
 0x3a9   :  { %3959 = vmatmul.mubr.msk.bf16.vlgmr.msra.gmra.mxu1 %vm454_vm2, %v2128_v60 }
 0x3aa   :  { %3969 = vmatpush3.bf16.xpose.msra.mxu1 %v2246_v61  ;;  %3970 = vmatprep.mubr.msk.bf16.mxu1 %vm4505_vm0, %v4504_v0 }
 0x3ab   :  { %3980 = vmatprep.subr.bf16.mxu1 %v4504_v0 }
 0x3b1   :  { %3971 = vmatmul.mubr.msk.bf16.vlgmr.msra.gmra.mxu1 %vm454_vm2, %v2239_v62 }
 0x3b2   :  { %3981 = vmatpush3.bf16.xpose.msra.mxu1 %v2357_v63  ;;  %3982 = vmatprep.mubr.msk.bf16.mxu1 %vm4505_vm0, %v4504_v0 }
 0x3b3   :  { %3992 = vmatprep.subr.bf16.mxu1 %v4504_v0 }
 0x3b9   :  { %3983 = vmatmul.mubr.msk.bf16.vlgmr.msra.gmra.mxu1 %vm454_vm2, %v2350_v1 }
 0x3ba   :  { %3993 = vmatpush3.bf16.xpose.msra.mxu1 %v2468_v2  ;;  %3994 = vmatprep.mubr.msk.bf16.mxu1 %vm4505_vm0, %v4504_v0 }
 0x3bb   :  { %4004 = vmatprep.subr.bf16.mxu1 %v4504_v0 }
 0x3c1   :  { %3995 = vmatmul.mubr.msk.bf16.vlgmr.msra.gmra.mxu1 %vm454_vm2, %v2461_v3 }
 0x3c2   :  { %4005 = vmatpush3.bf16.xpose.msra.mxu1 %v2579_v4  ;;  %4006 = vmatprep.mubr.msk.bf16.mxu1 %vm4505_vm0, %v4504_v0 }
 0x3c3   :  { %4016 = vmatprep.subr.bf16.mxu1 %v4504_v0 }
 0x3c9   :  { %4007 = vmatmul.mubr.msk.bf16.vlgmr.msra.gmra.mxu1 %vm454_vm2, %v2572_v5 }
 0x3ca   :  { %4017 = vmatpush3.bf16.xpose.msra.mxu1 %v2690_v6  ;;  %4018 = vmatprep.mubr.msk.bf16.mxu1 %vm4505_vm0, %v4504_v0 }
 0x3cb   :  { %4028 = vmatprep.subr.bf16.mxu1 %v4504_v0 }
 0x3d1   :  { %4019 = vmatmul.mubr.msk.bf16.vlgmr.msra.gmra.mxu1 %vm454_vm2, %v2683_v7 }
 0x3d2   :  { %4029 = vmatpush3.bf16.xpose.msra.mxu1 %v2801_v8  ;;  %4030 = vmatprep.mubr.msk.bf16.mxu1 %vm4505_vm0, %v4504_v0 }
 0x3d3   :  { %4040 = vmatprep.subr.bf16.mxu1 %v4504_v0 }
 0x3d9   :  { %4031 = vmatmul.mubr.msk.bf16.vlgmr.msra.gmra.mxu1 %vm454_vm2, %v2794_v9 }
 0x3da   :  { %4041 = vmatpush3.bf16.xpose.msra.mxu1 %v2912_v10  ;;  %4042 = vmatprep.mubr.msk.bf16.mxu1 %vm4505_vm0, %v4504_v0 }
 0x3db   :  { %4052 = vmatprep.subr.bf16.mxu1 %v4504_v0 }
 0x3e1   :  { %4043 = vmatmul.mubr.msk.bf16.vlgmr.msra.gmra.mxu1 %vm454_vm2, %v2905_v11 }
 0x3e2   :  { %4053 = vmatpush3.bf16.xpose.msra.mxu1 %v3023_v12  ;;  %4054 = vmatprep.mubr.msk.bf16.mxu1 %vm4505_vm0, %v4504_v0 }
 0x3e3   :  { %4064 = vmatprep.subr.bf16.mxu1 %v4504_v0 }
 0x3e9   :  { %4055 = vmatmul.mubr.msk.bf16.vlgmr.msra.gmra.mxu1 %vm454_vm2, %v3016_v13 }
 0x3ea   :  { %4065 = vmatpush3.bf16.xpose.msra.mxu1 %v3134_v14  ;;  %4066 = vmatprep.mubr.msk.bf16.mxu1 %vm4505_vm0, %v4504_v0 }
 0x3eb   :  { %4076 = vmatprep.subr.bf16.mxu1 %v4504_v0 }
 0x3f1   :  { %4067 = vmatmul.mubr.msk.bf16.vlgmr.msra.gmra.mxu1 %vm454_vm2, %v3127_v15 }
 0x3f2   :  { %4088 = vmatprep.mubr.msk.bf16.mxu1 %vm4505_vm0, %v4504_v0 }
 0x3f9   :  { %v5023_v16 = vpop.f32.mrf.mxu1 }
 0x3fb   :  { %v3798_v17 = vpop.f32.mrf.mxu1 }
 0x3fd   :  { %v558_v18 = vpop.f32.mrf.mxu1 }
 0x3ff   :  { %v3799_v19 = vpop.f32.mrf.mxu1 }
 0x401   :  { %v607_v20 = vpop.f32.mrf.mxu1 }
 0x402   :  { %v5025_v21 = vmul.f32 0.35355338, %v607_v20 }
 0x403   :  { %v3804_v22 = vpop.f32.mrf.mxu1 }
 0x404   :  { %v614_v23 = vsel %vm454_vm2, %v5025_v21, -inf }
 0x405   :  { %615 = vmax.xlane.f32.xlu1 %v614_v23  ;;  %v610_v24 = vpop.f32.mrf.mxu1 }
 0x407   :  { %v3805_v25 = vpop.f32.mrf.mxu1 }
 0x409   :  { %v719_v26 = vpop.f32.mrf.mxu1 }
 0x40a   :  { %v5029_v27 = vmul.f32 0.35355338, %v719_v26 }
 0x40b   :  { %v3816_v28 = vpop.f32.mrf.mxu1 }
 0x40c   :  { %v726_v29 = vsel %vm454_vm2, %v5029_v27, -inf }
 0x40d   :  { %727 = vmax.xlane.f32.xlu0 %v726_v29  ;;  %v722_v30 = vpop.f32.mrf.mxu1 }
 0x40f   :  { %v3817_v31 = vpop.f32.mrf.mxu1 }
 0x410   :  { %v5065_v31 = vpop.permute.xlu1 %849 }
 0x411   :  { %v830_v32 = vpop.f32.mrf.mxu1 }
 0x412   :  { %v5033_v33 = vmul.f32 0.35355338, %v830_v32 }
 0x413   :  { %v3828_v35 = vpop.f32.mrf.mxu1 }
 0x414   :  { %v837_v36 = vsel %vm454_vm2, %v5033_v33, -inf }
 0x415   :  { %838 = vmax.xlane.f32.xlu0 %v837_v36  ;;  %v833_v37 = vpop.f32.mrf.mxu1 }
 0x416   :  { %v5067_v37 = vpop.permute.xlu1 %1071 }
 0x417   :  { %v3829_v38 = vpop.f32.mrf.mxu1 }
 0x419   :  { %v941_v39 = vpop.f32.mrf.mxu1 }
 0x41a   :  { %v5037_v40 = vmul.f32 0.35355338, %v941_v39 }
 0x41b   :  { %v3840_v41 = vpop.f32.mrf.mxu1 }
 0x41c   :  { %v948_v42 = vsel %vm454_vm2, %v5037_v40, -inf }
 0x41d   :  { %949 = vmax.xlane.f32.xlu1 %v948_v42  ;;  %v944_v43 = vpop.f32.mrf.mxu1 }
 0x41f   :  { %v3841_v44 = vpop.f32.mrf.mxu1 }
 0x421   :  { %v1052_v45 = vpop.f32.mrf.mxu1 }
 0x422   :  { %v5041_v46 = vmul.f32 0.35355338, %v1052_v45  ;;  %v5075_v45 = vpop.permute.xlu1 %1293 }
 0x423   :  { %v3852_v48 = vpop.f32.mrf.mxu1 }
 0x424   :  { %v1059_v49 = vsel %vm454_vm2, %v5041_v46, -inf }
 0x425   :  { %1060 = vmax.xlane.f32.xlu0 %v1059_v49  ;;  %v1055_v50 = vpop.f32.mrf.mxu1 }
 0x427   :  { %v3853_v51 = vpop.f32.mrf.mxu1 }
 0x429   :  { %v1163_v52 = vpop.f32.mrf.mxu1 }
 0x42a   :  { %v5045_v53 = vmul.f32 0.35355338, %v1163_v52 }
 0x42b   :  { %v3864_v54 = vpop.f32.mrf.mxu1 }
 0x42c   :  { %v1170_v55 = vsel %vm454_vm2, %v5045_v53, -inf }
 0x42d   :  { %1171 = vmax.xlane.f32.xlu1 %v1170_v55  ;;  %v1166_v56 = vpop.f32.mrf.mxu1  ;;  %v5083_v55 = vpop.permute.xlu1 %1515 }
 0x42f   :  { %v3865_v57 = vpop.f32.mrf.mxu1 }
 0x431   :  { %v1274_v59 = vpop.f32.mrf.mxu1 }
 0x432   :  { %v5049_v47 = vmul.f32 0.35355338, %v1274_v59 }
 0x433   :  { %v3876_v60 = vpop.f32.mrf.mxu1 }
 0x434   :  { %v1281_v61 = vsel %vm454_vm2, %v5049_v47, -inf }
 0x435   :  { %1282 = vmax.xlane.f32.xlu0 %v1281_v61  ;;  %v1277_v62 = vpop.f32.mrf.mxu1  ;;  %v5091_v61 = vpop.permute.xlu0 %738 }
 0x437   :  { %v3877_v63 = vpop.f32.mrf.mxu1 }
 0x439   :  { %v1385_v1 = vpop.f32.mrf.mxu1 }
 0x43a   :  { %v5053_v2 = vmul.f32 0.35355338, %v1385_v1 }
 0x43b   :  { %v3888_v3 = vpop.f32.mrf.mxu1 }
 0x43c   :  { %v1392_v4 = vsel %vm454_vm2, %v5053_v2, -inf }
 0x43d   :  { %1393 = vmax.xlane.f32.xlu1 %v1392_v4  ;;  %v1388_v5 = vpop.f32.mrf.mxu1 }
 0x43f   :  { %v3889_v6 = vpop.f32.mrf.mxu1 }
 0x440   :  { %v5101_v6 = vpop.permute.xlu1 %1626 }
 0x441   :  { %v1496_v7 = vpop.f32.mrf.mxu1 }
 0x442   :  { %v5057_v8 = vmul.f32 0.35355338, %v1496_v7 }
 0x443   :  { %v3900_v9 = vpop.f32.mrf.mxu1 }
 0x444   :  { %v1503_v10 = vsel %vm454_vm2, %v5057_v8, -inf  ;;  %v5103_v9 = vpop.permute.xlu0 %960 }
 0x445   :  { %1504 = vmax.xlane.f32.xlu0 %v1503_v10  ;;  %v1499_v11 = vpop.f32.mrf.mxu1 }
 0x447   :  { %v3901_v12 = vpop.f32.mrf.mxu1 }
 0x449   :  { %v1607_v13 = vpop.f32.mrf.mxu1 }
 0x44a   :  { %v5069_v38 = vmul.f32 0.35355338, %v1607_v13 }
 0x44b   :  { %v3912_v14 = vpop.f32.mrf.mxu1 }
 0x44c   :  { %v1614_v44 = vsel %vm454_vm2, %v5069_v38, -inf  ;;  %v5109_v14 = vpop.permute.xlu1 %1737 }
 0x44d   :  { %v1610_v15 = vpop.f32.mrf.mxu1 }
 0x44e   :  { %2412 = vrot.lane.b32.xlu1 %v4768_v58, %s4509_s21 }
 0x44f   :  { %v3913_v17 = vpop.f32.mrf.mxu1 }
 0x451   :  { %v1718_v18 = vpop.f32.mrf.mxu1 }
 0x452   :  { %v5077_v49 = vmul.f32 0.35355338, %v1718_v18  ;;  %v5113_v18 = vpop.permute.xlu0 %1182 }
 0x453   :  { %v3924_v19 = vpop.f32.mrf.mxu1 }
 0x454   :  { %v1725_v59 = vsel %vm454_vm2, %v5077_v49, -inf }
 0x455   :  { %v1721_v20 = vpop.f32.mrf.mxu1 }
 0x457   :  { %v3925_v22 = vpop.f32.mrf.mxu1 }
 0x458   :  { %v5115_v22 = vpop.permute.xlu1 %2190 }
 0x459   :  { %v1948_v23 = vpop.f32.mrf.mxu1 }
 0x45a   :  { %v5071_v42 = vmul.f32 0.35355338, %v1948_v23 }
 0x45b   :  { %2301 = vrot.lane.b32.xlu0 %v4768_v58, %s4508_s6  ;;  %v3936_v24 = vpop.f32.mrf.mxu1 }
 0x45c   :  { %v1955_v52 = vsel %vm454_vm2, %v5071_v42, -inf }
 0x45d   :  { %v1951_v25 = vpop.f32.mrf.mxu1 }
 0x45e   :  { %v5119_v25 = vpop.permute.xlu0 %1404 }
 0x45f   :  { %v3937_v26 = vpop.f32.mrf.mxu1 }
 0x461   :  { %v2059_v28 = vpop.f32.mrf.mxu1 }
 0x462   :  { %v5079_v50 = vmul.f32 0.35355338, %v2059_v28 }
 0x463   :  { %v3948_v29 = vpop.f32.mrf.mxu1 }
 0x464   :  { %v2066_v60 = vsel %vm454_vm2, %v5079_v50, -inf }
 0x465   :  { %v2062_v30 = vpop.f32.mrf.mxu1 }
 0x467   :  { %v3949_v32 = vpop.f32.mrf.mxu1 }
 0x469   :  { %v2171_v35 = vpop.f32.mrf.mxu1 }
 0x46a   :  { %v5085_v56 = vmul.f32 0.35355338, %v2171_v35 }
 0x46b   :  { %v3960_v36 = vpop.f32.mrf.mxu1 }
 0x46c   :  { %v2178_v5 = vsel %vm454_vm2, %v5085_v56, -inf }
 0x46d   :  { %v2174_v39 = vpop.f32.mrf.mxu1 }
 0x46e   :  { %v5124_v39 = vpop.permute.xlu0 %2079 }
 0x46f   :  { %v3961_v41 = vpop.f32.mrf.mxu1 }
 0x471   :  { %v2282_v43 = vpop.f32.mrf.mxu1 }
 0x472   :  { %1615 = vmax.xlane.f32.xlu1 %v1614_v44  ;;  %v5097_v3 = vmul.f32 0.35355338, %v2282_v43 }
 0x473   :  { %v3972_v48 = vpop.f32.mrf.mxu1 }
 0x474   :  { %v2289_v11 = vsel %vm454_vm2, %v5097_v3, -inf }
 0x475   :  { %v2285_v51 = vpop.f32.mrf.mxu1 }
 0x476   :  { %1956 = vmax.xlane.f32.xlu1 %v1955_v52 }
 0x477   :  { %v3973_v54 = vpop.f32.mrf.mxu1 }
 0x479   :  { %v2393_v57 = vpop.f32.mrf.mxu1 }
 0x47a   :  { %v5093_v62 = vmul.f32 0.35355338, %v2393_v57  ;;  %1726 = vmax.xlane.f32.xlu0 %v1725_v59  ;;  %2067 = vmax.xlane.f32.xlu1 %v2066_v60 }
 0x47b   :  { %v3984_v63 = vpop.f32.mrf.mxu1 }
 0x47c   :  { %v2400_v1 = vsel %vm454_vm2, %v5093_v62, -inf }
 0x47d   :  { %v2396_v4 = vpop.f32.mrf.mxu1 }
 0x47e   :  { %2179 = vmax.xlane.f32.xlu1 %v2178_v5  ;;  %2401 = vmax.xlane.f32.xlu0 %v2400_v1 }
 0x47f   :  { %v3985_v7 = vpop.f32.mrf.mxu1 }
 0x481   :  { %v2504_v10 = vpop.f32.mrf.mxu1 }
 0x482   :  { %v5107_v12 = vmul.f32 0.35355338, %v2504_v10  ;;  %2290 = vmax.xlane.f32.xlu1 %v2289_v11 }
 0x483   :  { %v3996_v13 = vpop.f32.mrf.mxu1 }
 0x484   :  { %v2511_v15 = vsel %vm454_vm2, %v5107_v12, -inf }
 0x485   :  { %v2507_v17 = vpop.f32.mrf.mxu1 }
 0x486   :  { %2512 = vmax.xlane.f32.xlu1 %v2511_v15 }
 0x487   :  { %v3997_v19 = vpop.f32.mrf.mxu1 }
 0x489   :  { %v2615_v20 = vpop.f32.mrf.mxu1 }
 0x48a   :  { %v5117_v23 = vmul.f32 0.35355338, %v2615_v20 }
 0x48b   :  { %v4008_v24 = vpop.f32.mrf.mxu1 }
 0x48c   :  { %v2622_v26 = vsel %vm454_vm2, %v5117_v23, -inf }
 0x48d   :  { %2623 = vmax.xlane.f32.xlu0 %v2622_v26  ;;  %v2618_v28 = vpop.f32.mrf.mxu1 }
 0x48e   :  { %v616_v29 = vpop.xlane.xlu1 %615 }
 0x48f   :  { %v617_v30 = vsub.f32 %v5025_v21, %v616_v29  ;;  %v4009_v32 = vpop.f32.mrf.mxu1 }
 0x491   :  { %v618_v35 = vmul.f32 1.442695, %v617_v30  ;;  %v2726_v36 = vpop.f32.mrf.mxu1 }
 0x492   :  { %v5126_v41 = vmul.f32 0.35355338, %v2726_v36 }
 0x493   :  { %4203 = vpow2.f32 %v618_v35  ;;  %v4020_v43 = vpop.f32.mrf.mxu1 }
 0x494   :  { %v2733_v44 = vsel %vm454_vm2, %v5126_v41, -inf }
 0x495   :  { %2734 = vmax.xlane.f32.xlu1 %v2733_v44  ;;  %v2729_v48 = vpop.f32.mrf.mxu1 }
 0x496   :  { %v728_v51 = vpop.xlane.xlu0 %727 }
 0x497   :  { %v729_v52 = vsub.f32 %v5029_v27, %v728_v51  ;;  %v4021_v54 = vpop.f32.mrf.mxu1 }
 0x499   :  { %v730_v57 = vmul.f32 1.442695, %v729_v52  ;;  %v2837_v21 = vpop.f32.mrf.mxu1 }
 0x49a   :  { %v5131_v59 = vmul.f32 0.35355338, %v2837_v21 }
 0x49b   :  { %4205 = vpow2.f32 %v730_v57  ;;  %v4032_v60 = vpop.f32.mrf.mxu1 }
 0x49c   :  { %v2844_v63 = vsel %vm454_vm2, %v5131_v59, -inf }
 0x49d   :  { %2845 = vmax.xlane.f32.xlu0 %v2844_v63  ;;  %v2840_v1 = vpop.f32.mrf.mxu1 }
 0x49e   :  { %v839_v4 = vpop.xlane.xlu0 %838 }
 0x49f   :  { %v840_v5 = vsub.f32 %v5033_v33, %v839_v4  ;;  %v4033_v7 = vpop.f32.mrf.mxu1 }
 0x4a0   :  { %v5136_v10 = vpop.eup %4203 }
 0x4a1   :  { %v841_v11 = vmul.f32 1.442695, %v840_v5  ;;  %v2948_v27 = vpop.f32.mrf.mxu1  ;;  %v620_v13 = vsel %vm454_vm2, %v5136_v10, 0.0 }
 0x4a2   :  { %v5140_v15 = vmul.f32 0.35355338, %v2948_v27  ;;  %621 = vadd.xlane.f32.xlu0 %v620_v13 }
 0x4a3   :  { %4207 = vpow2.f32 %v841_v11  ;;  %v4044_v17 = vpop.f32.mrf.mxu1 }
 0x4a4   :  { %v2955_v19 = vsel %vm454_vm2, %v5140_v15, -inf }
 0x4a5   :  { %v2951_v20 = vpop.f32.mrf.mxu1 }
 0x4a6   :  { %v950_v24 = vpop.xlane.xlu1 %949  ;;  %2634 = vrot.lane.b32.xlu1 %v4768_v58, %s4511_s25  ;;  %2956 = vmax.xlane.f32.xlu0 %v2955_v19 }
 0x4a7   :  { %v951_v33 = vsub.f32 %v5037_v40, %v950_v24  ;;  %v4045_v26 = vpop.f32.mrf.mxu1 }
 0x4a8   :  { %v5147_v28 = vpop.eup %4205 }
 0x4a9   :  { %v952_v29 = vmul.f32 1.442695, %v951_v33  ;;  %v3059_v30 = vpop.f32.mrf.mxu1  ;;  %v732_v32 = vsel %vm454_vm2, %v5147_v28, 0.0 }
 0x4aa   :  { %v5151_v35 = vmul.f32 0.35355338, %v3059_v30  ;;  %733 = vadd.xlane.f32.xlu0 %v732_v32 }
 0x4ab   :  { %4209 = vpow2.f32 %v952_v29  ;;  %v4056_v36 = vpop.f32.mrf.mxu1 }
 0x4ac   :  { %v3066_v43 = vsel %vm454_vm2, %v5151_v35, -inf }
 0x4ad   :  { %v3062_v44 = vpop.f32.mrf.mxu1 }
 0x4ae   :  { %3067 = vmax.xlane.f32.xlu0 %v3066_v43  ;;  %v1061_v48 = vpop.xlane.xlu0 %1060 }
 0x4af   :  { %v1062_v40 = vsub.f32 %v5041_v46, %v1061_v48  ;;  %v4057_v51 = vpop.f32.mrf.mxu1 }
 0x4b0   :  { %v5156_v52 = vpop.eup %4207 }
 0x4b1   :  { %v1063_v54 = vmul.f32 1.442695, %v1062_v40  ;;  %v3170_v57 = vpop.f32.mrf.mxu1  ;;  %v843_v21 = vsel %vm454_vm2, %v5156_v52, 0.0 }
 0x4b2   :  { %v5160_v60 = vmul.f32 0.35355338, %v3170_v57  ;;  %844 = vadd.xlane.f32.xlu0 %v843_v21 }
 0x4b3   :  { %4211 = vpow2.f32 %v1063_v54  ;;  %v4068_v63 = vpop.f32.mrf.mxu1 }
 0x4b4   :  { %v3177_v1 = vsel %vm454_vm2, %v5160_v60, -inf }
 0x4b5   :  { %v3173_v4 = vpop.f32.mrf.mxu1 }
 0x4b6   :  { %v1172_v5 = vpop.xlane.xlu1 %1171  ;;  %3178 = vmax.xlane.f32.xlu0 %v3177_v1 }
 0x4b7   :  { %v1173_v46 = vsub.f32 %v5045_v53, %v1172_v5  ;;  %v4069_v7 = vpop.f32.mrf.mxu1 }
 0x4b8   :  { %v5165_v11 = vpop.eup %4209 }
 0x4b9   :  { %v1174_v27 = vmul.f32 1.442695, %v1173_v46  ;;  %v954_v13 = vsel %vm454_vm2, %v5165_v11, 0.0 }
 0x4ba   :  { %955 = vadd.xlane.f32.xlu0 %v954_v13 }
 0x4bb   :  { %4213 = vpow2.f32 %v1174_v27 }
 0x4be   :  { %v1283_v17 = vpop.xlane.xlu0 %1282 }
 0x4bf   :  { %v1284_v19 = vsub.f32 %v5049_v47, %v1283_v17 }
 0x4c0   :  { %v5170_v20 = vpop.eup %4211 }
 0x4c1   :  { %v1285_v24 = vmul.f32 1.442695, %v1284_v19  ;;  %v1065_v33 = vsel %vm454_vm2, %v5170_v20, 0.0 }
 0x4c2   :  { %1066 = vadd.xlane.f32.xlu0 %v1065_v33 }
 0x4c3   :  { %4215 = vpow2.f32 %v1285_v24 }
 0x4c6   :  { %v1394_v53 = vpop.xlane.xlu1 %1393 }
 0x4c7   :  { %v1395_v26 = vsub.f32 %v5053_v2, %v1394_v53 }
 0x4c8   :  { %v5175_v29 = vpop.eup %4213 }
 0x4c9   :  { %v1396_v30 = vmul.f32 1.442695, %v1395_v26  ;;  %v1176_v32 = vsel %vm454_vm2, %v5175_v29, 0.0 }
 0x4ca   :  { %1177 = vadd.xlane.f32.xlu0 %v1176_v32 }
 0x4cb   :  { %4217 = vpow2.f32 %v1396_v30 }
 0x4ce   :  { %v1505_v47 = vpop.xlane.xlu0 %1504 }
 0x4cf   :  { %v1506_v36 = vsub.f32 %v5057_v8, %v1505_v47  ;;  %v5194_v8 = vpop.permute.xlu1 %2412 }
 0x4d0   :  { %v5180_v43 = vpop.eup %4215 }
 0x4d1   :  { %v1507_v44 = vmul.f32 1.442695, %v1506_v36  ;;  %v1287_v48 = vsel %vm454_vm2, %v5180_v43, 0.0 }
 0x4d2   :  { %1288 = vadd.xlane.f32.xlu0 %v1287_v48  ;;  %v5197_v1 = vpop.permute.xlu0 %2301 }
 0x4d3   :  { %4219 = vpow2.f32 %v1507_v44 }
 0x4d8   :  { %v5184_v2 = vpop.eup %4217 }
 0x4d9   :  { %v1398_v40 = vsel %vm454_vm2, %v5184_v2, 0.0 }
 0x4da   :  { %1399 = vadd.xlane.f32.xlu0 %v1398_v40 }
 0x4e0   :  { %v5188_v51 = vpop.eup %4219 }
 0x4e1   :  { %v1509_v54 = vsel %vm454_vm2, %v5188_v51, 0.0 }
 0x4e2   :  { %1510 = vadd.xlane.f32.xlu1 %v1509_v54 }
 0x4f0   :  { %2523 = vrot.lane.b32.xlu0 %v4768_v58, %s4510_s22 }
 0x4fb   :  { %v1616_v57 = vpop.xlane.xlu1 %1615 }
 0x4fc   :  { %v1617_v21 = vsub.f32 %v5069_v38, %v1616_v57 }
 0x4fe   :  { %v1618_v63 = vmul.f32 1.442695, %v1617_v21 }
 0x4ff   :  { %v1957_v4 = vpop.xlane.xlu1 %1956 }
 0x500   :  { %4221 = vpow2.f32 %v1618_v63  ;;  %v1958_v5 = vsub.f32 %v5071_v42, %v1957_v4 }
 0x502   :  { %v1959_v24 = vmul.f32 1.442695, %v1958_v5 }
 0x503   :  { %v2068_v46 = vpop.xlane.xlu1 %2067  ;;  %v1727_v7 = vpop.xlane.xlu0 %1726 }
 0x504   :  { %v2069_v27 = vsub.f32 %v5079_v50, %v2068_v46  ;;  %v1728_v13 = vsub.f32 %v5077_v49, %v1727_v7 }
 0x506   :  { %v2070_v17 = vmul.f32 1.442695, %v2069_v27  ;;  %v1729_v19 = vmul.f32 1.442695, %v1728_v13 }
 0x507   :  { %v2180_v33 = vpop.xlane.xlu1 %2179  ;;  %v2402_v53 = vpop.xlane.xlu0 %2401 }
 0x508   :  { %4223 = vpow2.f32 %v2070_v17  ;;  %v2181_v38 = vsub.f32 %v5085_v56, %v2180_v33  ;;  %v2403_v26 = vsub.f32 %v5093_v62, %v2402_v53 }
 0x509   :  { %4225 = vpow2.f32 %v1729_v19 }
 0x50a   :  { %v2182_v30 = vmul.f32 1.442695, %v2181_v38  ;;  %4227 = vpow2.f32 %v1959_v24  ;;  %v2404_v42 = vmul.f32 1.442695, %v2403_v26 }
 0x50b   :  { %v2291_v32 = vpop.xlane.xlu1 %2290 }
 0x50c   :  { %4229 = vpow2.f32 %v2182_v30  ;;  %v2292_v50 = vsub.f32 %v5097_v3, %v2291_v32 }
 0x50d   :  { %v5205_v47 = vpop.eup %4221  ;;  %4231 = vpow2.f32 %v2404_v42 }
 0x50e   :  { %v2293_v49 = vmul.f32 1.442695, %v2292_v50  ;;  %v1620_v36 = vsel %vm454_vm2, %v5205_v47, 0.0 }
 0x50f   :  { %v2513_v44 = vpop.xlane.xlu1 %2512  ;;  %1621 = vadd.xlane.f32.xlu1 %v1620_v36 }
 0x510   :  { %4233 = vpow2.f32 %v2293_v49  ;;  %v2514_v56 = vsub.f32 %v5107_v12, %v2513_v44 }
 0x512   :  { %v2515_v62 = vmul.f32 1.442695, %v2514_v56 }
 0x514   :  { %4235 = vpow2.f32 %v2515_v62 }
 0x515   :  { %v5210_v48 = vpop.eup %4223 }
 0x516   :  { %v5212_v40 = vpop.eup %4225  ;;  %v2624_v54 = vpop.xlane.xlu0 %2623  ;;  %v2072_v3 = vsel %vm454_vm2, %v5210_v48, 0.0 }
 0x517   :  { %v2625_v57 = vsub.f32 %v5117_v23, %v2624_v54  ;;  %2073 = vadd.xlane.f32.xlu0 %v2072_v3  ;;  %v1731_v21 = vsel %vm454_vm2, %v5212_v40, 0.0  ;;  %v5219_v63 = vpop.eup %4227  ;;  %v744_v3 = vsel %vm517_vm3, %v5091_v61, 0 }
 0x518   :  { %1732 = vadd.xlane.f32.xlu1 %v1731_v21  ;;  %v1961_v46 = vsel %vm454_vm2, %v5219_v63, 0.0 }
 0x519   :  { %v5221_v12 = vpop.eup %4229  ;;  %v2626_v4 = vmul.f32 1.442695, %v2625_v57 }
 0x51a   :  { %v2184_v5 = vsel %vm454_vm2, %v5221_v12, 0.0  ;;  %v5227_v7 = vpop.eup %4231 }
 0x51b   :  { %4237 = vpow2.f32 %v2626_v4  ;;  %2185 = vadd.xlane.f32.xlu0 %v2184_v5  ;;  %v2406_v19 = vsel %vm454_vm2, %v5227_v7, 0.0 }
 0x51c   :  { %1962 = vadd.xlane.f32.xlu1 %v1961_v46  ;;  %v855_v46 = vsel %vm517_vm3, %v5065_v31, 0 }
 0x51d   :  { %v5229_v23 = vpop.eup %4233 }
 0x51e   :  { %v2735_v27 = vpop.xlane.xlu1 %2734  ;;  %v2295_v13 = vsel %vm454_vm2, %v5229_v23, 0.0 }
 0x51f   :  { %v2736_v17 = vsub.f32 %v5126_v41, %v2735_v27  ;;  %2296 = vadd.xlane.f32.xlu0 %v2295_v13 }
 0x520   :  { %2407 = vadd.xlane.f32.xlu1 %v2406_v19  ;;  %v966_v19 = vsel %vm517_vm3, %v5103_v9, 0 }
 0x521   :  { %v5236_v24 = vpop.eup %4235  ;;  %v2737_v33 = vmul.f32 1.442695, %v2736_v17 }
 0x522   :  { %v2517_v53 = vsel %vm454_vm2, %v5236_v24, 0.0 }
 0x523   :  { %4239 = vpow2.f32 %v2737_v33  ;;  %2518 = vadd.xlane.f32.xlu0 %v2517_v53 }
 0x526   :  { %v2846_v38 = vpop.xlane.xlu0 %2845 }
 0x527   :  { %v2847_v61 = vsub.f32 %v5131_v59, %v2846_v38 }
 0x528   :  { %v5240_v26 = vpop.eup %4237 }
 0x529   :  { %v2628_v30 = vsel %vm454_vm2, %v5240_v26, 0.0  ;;  %v2848_v27 = vmul.f32 1.442695, %v2847_v61 }
 0x52a   :  { %2629 = vadd.xlane.f32.xlu1 %v2628_v30 }
 0x52b   :  { %v622_v41 = vpop.xlane.xlu0 %621 }
 0x52c   :  { %4241 = vrcp.f32 %v622_v41  ;;  %v1077_v41 = vsel %vm517_vm3, %v5067_v37, 0 }
 0x52f   :  { %v2957_v42 = vpop.xlane.xlu0 %2956 }
 0x530   :  { %v5244_v32 = vpop.eup %4239  ;;  %v2958_v59 = vsub.f32 %v5140_v15, %v2957_v42 }
 0x531   :  { %v2739_v50 = vsel %vm454_vm2, %v5244_v32, 0.0 }
 0x532   :  { %2740 = vadd.xlane.f32.xlu0 %v2739_v50  ;;  %v2959_v33 = vmul.f32 1.442695, %v2958_v59 }
 0x533   :  { %v734_v49 = vpop.xlane.xlu0 %733 }
 0x534   :  { %4243 = vrcp.f32 %v734_v49 }
 0x537   :  { %v5248_v36 = vpop.xlane.xlu0 %3067 }
 0x539   :  { %v4242_v44 = vpop.eup %4241 }
 0x53a   :  { %v5251_v56 = vmul.f32 %v4242_v44, %v5136_v10  ;;  %v1188_v44 = vsel %vm517_vm3, %v5113_v18, 0 }
 0x53b   :  { %2856 = vrot.lane.b32.xlu1 %v4768_v58, %s4497_s23  ;;  %v845_v62 = vpop.xlane.xlu0 %844 }
 0x53c   :  { %v625_v54 = vpack.c.bf16 %v5251_v56, %v5251_v56  ;;  %4245 = vrcp.f32 %v845_v62 }
 0x53e   :  { %3809 = vmatmul.mubr.msk.bf16.vlgmr.msra.gmra.mxu0 %vm454_vm2, %v625_v54 }
 0x53f   :  { %3819 = vmatpush3.bf16.msra.mxu0 %v744_v3  ;;  %v3179_v57 = vpop.xlane.xlu0 %3178  ;;  %3820 = vmatprep.mubr.msk.bf16.mxu0 %vm4505_vm0, %v4504_v0 }
 0x540   :  { %3830 = vmatprep.subr.bf16.mxu0 %v4504_v0  ;;  %v3180_v53 = vsub.f32 %v5160_v60, %v3179_v57 }
 0x541   :  { %v4244_v10 = vpop.eup %4243 }
 0x542   :  { %v5264_v4 = vmul.f32 %v4244_v10, %v5147_v28  ;;  %v3181_v15 = vmul.f32 1.442695, %v3180_v53 }
 0x543   :  { %v956_v21 = vpop.xlane.xlu0 %955 }
 0x544   :  { %4247 = vrcp.f32 %v956_v21  ;;  %v737_v5 = vpack.c.bf16 %v5264_v4, %v5264_v4  ;;  %v1299_v21 = vsel %vm517_vm3, %v5075_v45, 0 }
 0x546   :  { %3821 = vmatmul.mubr.msk.bf16.vlgmr.msra.gmra.mxu0 %vm454_vm2, %v737_v5  ;;  %v5329_v5 = vpop.permute.xlu1 %2634 }
 0x547   :  { %3831 = vmatpush3.bf16.msra.mxu0 %v855_v46  ;;  %3832 = vmatprep.mubr.msk.bf16.mxu0 %vm4505_vm0, %v4504_v0 }
 0x548   :  { %2745 = vrot.lane.b32.xlu0 %v4768_v58, %s4512_s26  ;;  %3842 = vmatprep.subr.bf16.mxu0 %v4504_v0 }
 0x549   :  { %v4246_v28 = vpop.eup %4245 }
 0x54a   :  { %v5278_v17 = vmul.f32 %v4246_v28, %v5156_v52 }
 0x54b   :  { %v1067_v13 = vpop.xlane.xlu0 %1066 }
 0x54c   :  { %4249 = vrcp.f32 %v1067_v13  ;;  %v848_v31 = vpack.c.bf16 %v5278_v17, %v5278_v17 }
 0x54d   :  { %4251 = vpow2.f32 %v2848_v27  ;;  %v1410_v27 = vsel %vm517_vm3, %v5119_v25, 0  ;;  %v1521_v25 = vsel %vm517_vm3, %v5083_v55, 0  ;;  %v1632_v55 = vsel %vm517_vm3, %v5101_v6, 0 }
 0x54e   :  { %3833 = vmatmul.mubr.msk.bf16.vlgmr.msra.gmra.mxu0 %vm454_vm2, %v848_v31 }
 0x54f   :  { %3843 = vmatpush3.bf16.msra.mxu0 %v966_v19  ;;  %3844 = vmatprep.mubr.msk.bf16.mxu0 %vm4505_vm0, %v4504_v0 }
 0x550   :  { %3854 = vmatprep.subr.bf16.mxu0 %v4504_v0 }
 0x551   :  { %v4248_v52 = vpop.eup %4247 }
 0x552   :  { %v5291_v30 = vmul.f32 %v4248_v52, %v5165_v11 }
 0x553   :  { %v1178_v38 = vpop.xlane.xlu0 %1177 }
 0x554   :  { %4253 = vrcp.f32 %v1178_v38  ;;  %v959_v9 = vpack.c.bf16 %v5291_v30, %v5291_v30 }
 0x555   :  { %4255 = vpow2.f32 %v2959_v33 }
 0x556   :  { %3845 = vmatmul.mubr.msk.bf16.vlgmr.msra.gmra.mxu0 %vm454_vm2, %v959_v9  ;;  %4257 = vpow2.f32 %v3181_v15 }
 0x557   :  { %3855 = vmatpush3.bf16.msra.mxu0 %v1077_v41  ;;  %3856 = vmatprep.mubr.msk.bf16.mxu0 %vm4505_vm0, %v4504_v0 }
 0x558   :  { %3866 = vmatprep.subr.bf16.mxu0 %v4504_v0 }
 0x559   :  { %v4250_v60 = vpop.eup %4249 }
 0x55a   :  { %v5302_v11 = vmul.f32 %v4250_v60, %v5170_v20  ;;  %v5304_v42 = vpop.eup %4251  ;;  %v1743_v60 = vsel %vm517_vm3, %v5109_v14, 0  ;;  %v1971_v14 = vsel %vm517_vm3, %v4768_v58, 0 }
 0x55b   :  { %v1289_v50 = vpop.xlane.xlu0 %1288  ;;  %v2850_v49 = vsel %vm454_vm2, %v5304_v42, 0.0 }
 0x55c   :  { %4259 = vrcp.f32 %v1289_v50  ;;  %v1070_v37 = vpack.c.bf16 %v5302_v11, %v5302_v11 }
 0x55e   :  { %3857 = vmatmul.mubr.msk.bf16.vlgmr.msra.gmra.mxu0 %vm454_vm2, %v1070_v37 }
 0x55f   :  { %2851 = vadd.xlane.f32.xlu1 %v2850_v49  ;;  %3867 = vmatpush3.bf16.msra.mxu0 %v1188_v44 }
 0x560   :  { %3868 = vmatprep.mubr.msk.bf16.mxu0 %vm4505_vm0, %v4504_v0  ;;  %3878 = vmatprep.subr.bf16.mxu0 %v4504_v0 }
 0x561   :  { %v4254_v20 = vpop.eup %4253 }
 0x562   :  { %v5317_v62 = vmul.f32 %v4254_v20, %v5175_v29  ;;  %v5319_v54 = vpop.eup %4255 }
 0x563   :  { %v1400_v3 = vpop.xlane.xlu0 %1399  ;;  %v2961_v57 = vsel %vm454_vm2, %v5319_v54, 0.0  ;;  %v5325_v10 = vpop.eup %4257 }
 0x564   :  { %4261 = vrcp.f32 %v1400_v3  ;;  %v1181_v18 = vpack.c.bf16 %v5317_v62, %v5317_v62  ;;  %v3183_v61 = vsel %vm454_vm2, %v5325_v10, 0.0 }
 0x566   :  { %3869 = vmatmul.mubr.msk.bf16.vlgmr.msra.gmra.mxu0 %vm454_vm2, %v1181_v18 }
 0x567   :  { %2962 = vadd.xlane.f32.xlu0 %v2961_v57  ;;  %3879 = vmatpush3.bf16.msra.mxu0 %v1299_v21  ;;  %v5382_v9 = vpop.permute.xlu0 %2523  ;;  %v2085_v21 = vsel %vm517_vm3, %v5124_v39, 0  ;;  %v2196_v39 = vsel %vm517_vm3, %v5115_v22, 0  ;;  %v2307_v22 = vsel %vm517_vm3, %v5197_v1, 0  ;;  %v2418_v1 = vsel %vm517_vm3, %v5194_v8, 0 }
 0x568   :  { %3880 = vmatprep.mubr.msk.bf16.mxu0 %vm4505_vm0, %v4504_v0  ;;  %3890 = vmatprep.subr.bf16.mxu0 %v4504_v0  ;;  %v2529_v8 = vsel %vm517_vm3, %v5382_v9, 0 }
 0x569   :  { %v4260_v29 = vpop.eup %4259 }
 0x56a   :  { %v5338_v46 = vmul.f32 %v4260_v29, %v5180_v43 }
 0x56b   :  { %v1511_v28 = vpop.xlane.xlu1 %1510  ;;  %3184 = vadd.xlane.f32.xlu0 %v3183_v61 }
 0x56c   :  { %4263 = vrcp.f32 %v1511_v28  ;;  %v1292_v45 = vpack.c.bf16 %v5338_v46, %v5338_v46 }
 0x56e   :  { %3881 = vmatmul.mubr.msk.bf16.vlgmr.msra.gmra.mxu0 %vm454_vm2, %v1292_v45 }
 0x56f   :  { %3891 = vmatpush3.bf16.msra.mxu0 %v1410_v27  ;;  %3892 = vmatprep.mubr.msk.bf16.mxu0 %vm4505_vm0, %v4504_v0 }
 0x570   :  { %2967 = vrot.lane.b32.xlu1 %v4768_v58, %s4513_s7  ;;  %3902 = vmatprep.subr.bf16.mxu0 %v4504_v0 }
 0x571   :  { %v4262_v13 = vpop.eup %4261 }
 0x572   :  { %v5351_v43 = vmul.f32 %v4262_v13, %v5184_v2  ;;  %v3069_v2 = vsub.f32 %v5151_v35, %v5248_v36 }
 0x574   :  { %v1403_v31 = vpack.c.bf16 %v5351_v43, %v5351_v43  ;;  %v3070_v33 = vmul.f32 1.442695, %v3069_v2 }
 0x576   :  { %3893 = vmatmul.mubr.msk.bf16.vlgmr.msra.gmra.mxu0 %vm454_vm2, %v1403_v31  ;;  %4265 = vpow2.f32 %v3070_v33 }
 0x577   :  { %3903 = vmatpush3.bf16.msra.mxu0 %v1521_v25  ;;  %3904 = vmatprep.mubr.msk.bf16.mxu0 %vm4505_vm0, %v4504_v0 }
 0x578   :  { %3914 = vmatprep.subr.bf16.mxu0 %v4504_v0 }
 0x579   :  { %v4264_v59 = vpop.eup %4263 }
 0x57a   :  { %v5362_v19 = vmul.f32 %v4264_v59, %v5188_v51 }
 0x57c   :  { %v1514_v52 = vpack.c.bf16 %v5362_v19, %v5362_v19 }
 0x57e   :  { %3905 = vmatmul.mubr.msk.bf16.vlgmr.msra.gmra.mxu0 %vm454_vm2, %v1514_v52 }
 0x57f   :  { %3915 = vmatpush3.bf16.msra.mxu0 %v1632_v55  ;;  %3916 = vmatprep.mubr.msk.bf16.mxu0 %vm4505_vm0, %v4504_v0 }
 0x580   :  { %3926 = vmatprep.subr.bf16.mxu0 %v4504_v0 }
 0x581   :  { %3078 = vrot.lane.b32.xlu0 %v4768_v58, %s4514_s27 }
 0x583   :  { %v5376_v35 = vpop.eup %4265 }
 0x584   :  { %v3072_v51 = vsel %vm454_vm2, %v5376_v35, 0.0 }
 0x594   :  { %3073 = vadd.xlane.f32.xlu1 %v3072_v51  ;;  %v2640_v51 = vsel %vm517_vm3, %v5329_v5, 0 }
 0x598   :  { %v1622_v6 = vpop.xlane.xlu1 %1621 }
 0x599   :  { %4267 = vrcp.f32 %v1622_v6 }
 0x5a0   :  { %v2074_v50 = vpop.xlane.xlu0 %2073 }
 0x5a1   :  { %v1733_v36 = vpop.xlane.xlu1 %1732 }
 0x5a2   :  { %4269 = vrcp.f32 %v1733_v36 }
 0x5a4   :  { %v2186_v20 = vpop.xlane.xlu0 %2185 }
 0x5a5   :  { %v1963_v53 = vpop.xlane.xlu1 %1962  ;;  %3189 = vrot.lane.b32.xlu1 %v4768_v58, %s4515_s28 }
 0x5a6   :  { %v4268_v38 = vpop.eup %4267  ;;  %4271 = vrcp.f32 %v1963_v53 }
 0x5a7   :  { %v5385_v15 = vmul.f32 %v4268_v38, %v5205_v47  ;;  %4273 = vrcp.f32 %v2074_v50 }
 0x5a8   :  { %4275 = vrcp.f32 %v2186_v20  ;;  %v2297_v57 = vpop.xlane.xlu0 %2296 }
 0x5a9   :  { %v1625_v41 = vpack.c.bf16 %v5385_v15, %v5385_v15  ;;  %4277 = vrcp.f32 %v2297_v57  ;;  %v2408_v61 = vpop.xlane.xlu1 %2407 }
 0x5aa   :  { %4279 = vrcp.f32 %v2408_v61 }
 0x5ab   :  { %3917 = vmatmul.mubr.msk.bf16.vlgmr.msra.gmra.mxu0 %vm454_vm2, %v1625_v41 }
 0x5ac   :  { %3927 = vmatpush3.bf16.msra.mxu0 %v1743_v60  ;;  %3928 = vmatprep.mubr.msk.bf16.mxu0 %vm4505_vm0, %v4504_v0  ;;  %v2519_v27 = vpop.xlane.xlu0 %2518 }
 0x5ad   :  { %3938 = vmatprep.subr.bf16.mxu0 %v4504_v0  ;;  %4281 = vrcp.f32 %v2519_v27 }
 0x5af   :  { %v4270_v37 = vpop.eup %4269 }
 0x5b0   :  { %v5396_v47 = vmul.f32 %v4270_v37, %v5212_v40 }
 0x5b2   :  { %v1736_v49 = vpack.c.bf16 %v5396_v47, %v5396_v47 }
 0x5b3   :  { %v4272_v44 = vpop.eup %4271  ;;  %v2630_v25 = vpop.xlane.xlu1 %2629 }
 0x5b4   :  { %3929 = vmatmul.mubr.msk.bf16.vlgmr.msra.gmra.mxu0 %vm454_vm2, %v1736_v49  ;;  %v5407_v40 = vmul.f32 %v4272_v44, %v5219_v63  ;;  %v4274_v18 = vpop.eup %4273  ;;  %4283 = vrcp.f32 %v2630_v25 }
 0x5b5   :  { %3939 = vmatpush3.bf16.msra.mxu0 %v1971_v14  ;;  %3940 = vmatprep.mubr.msk.bf16.mxu0 %vm4505_vm0, %v4504_v0  ;;  %v5418_v58 = vmul.f32 %v4274_v18, %v5210_v48  ;;  %v4276_v29 = vpop.eup %4275 }
 0x5b6   :  { %3950 = vmatprep.subr.bf16.mxu0 %v4504_v0  ;;  %v1966_v3 = vpack.c.bf16 %v5407_v40, %v5407_v40  ;;  %v5429_v48 = vmul.f32 %v4276_v29, %v5221_v12  ;;  %v4278_v45 = vpop.eup %4277 }
 0x5b7   :  { %v2077_v63 = vpack.c.bf16 %v5418_v58, %v5418_v58  ;;  %v5440_v12 = vmul.f32 %v4278_v45, %v5229_v23  ;;  %v4280_v31 = vpop.eup %4279  ;;  %v2857_v6 = vpop.permute.xlu1 %2856 }
 0x5b8   :  { %v2189_v28 = vpack.c.bf16 %v5429_v48, %v5429_v48  ;;  %v5451_v23 = vmul.f32 %v4280_v31, %v5227_v7  ;;  %v2862_v50 = vsel %vm517_vm3, %v2857_v6, 0 }
 0x5b9   :  { %v2300_v13 = vpack.c.bf16 %v5440_v12, %v5440_v12 }
 0x5ba   :  { %v2411_v59 = vpack.c.bf16 %v5451_v23, %v5451_v23  ;;  %v4282_v2 = vpop.eup %4281 }
 0x5bb   :  { %v2741_v52 = vpop.xlane.xlu0 %2740  ;;  %v5462_v7 = vmul.f32 %v4282_v2, %v5236_v24 }
 0x5bc   :  { %3941 = vmatmul.mubr.msk.bf16.vlgmr.msra.gmra.mxu0 %vm454_vm2, %v1966_v3  ;;  %4285 = vrcp.f32 %v2741_v52 }
 0x5bd   :  { %3951 = vmatpush3.bf16.msra.mxu0 %v2085_v21  ;;  %3952 = vmatprep.mubr.msk.bf16.mxu0 %vm4505_vm0, %v4504_v0  ;;  %v2522_v55 = vpack.c.bf16 %v5462_v7, %v5462_v7 }
 0x5be   :  { %3962 = vmatprep.subr.bf16.mxu0 %v4504_v0 }
 0x5bf   :  { %v2746_v53 = vpop.permute.xlu0 %2745 }
 0x5c0   :  { %v2751_v5 = vsel %vm517_vm3, %v2746_v53, 0 }
 0x5c1   :  { %v4284_v33 = vpop.eup %4283 }
 0x5c2   :  { %v5473_v36 = vmul.f32 %v4284_v33, %v5240_v26 }
 0x5c4   :  { %3953 = vmatmul.mubr.msk.bf16.vlgmr.msra.gmra.mxu0 %vm454_vm2, %v2077_v63  ;;  %v2633_v38 = vpack.c.bf16 %v5473_v36, %v5473_v36 }
 0x5c5   :  { %3963 = vmatpush3.bf16.msra.mxu0 %v2196_v39  ;;  %3964 = vmatprep.mubr.msk.bf16.mxu0 %vm4505_vm0, %v4504_v0 }
 0x5c6   :  { %3974 = vmatprep.subr.bf16.mxu0 %v4504_v0 }
 0x5c9   :  { %v4286_v9 = vpop.eup %4285 }
 0x5ca   :  { %v5483_v26 = vmul.f32 %v4286_v9, %v5244_v32 }
 0x5cc   :  { %3965 = vmatmul.mubr.msk.bf16.vlgmr.msra.gmra.mxu0 %vm454_vm2, %v2189_v28  ;;  %v2744_v60 = vpack.c.bf16 %v5483_v26, %v5483_v26 }
 0x5cd   :  { %3975 = vmatpush3.bf16.msra.mxu0 %v2307_v22  ;;  %3976 = vmatprep.mubr.msk.bf16.mxu0 %vm4505_vm0, %v4504_v0 }
 0x5ce   :  { %3986 = vmatprep.subr.bf16.mxu0 %v4504_v0 }
 0x5d4   :  { %3977 = vmatmul.mubr.msk.bf16.vlgmr.msra.gmra.mxu0 %vm454_vm2, %v2300_v13 }
 0x5d5   :  { %3987 = vmatpush3.bf16.msra.mxu0 %v2418_v1  ;;  %3988 = vmatprep.mubr.msk.bf16.mxu0 %vm4505_vm0, %v4504_v0 }
 0x5d6   :  { %3998 = vmatprep.subr.bf16.mxu0 %v4504_v0 }
 0x5dc   :  { %3989 = vmatmul.mubr.msk.bf16.vlgmr.msra.gmra.mxu0 %vm454_vm2, %v2411_v59 }
 0x5dd   :  { %3999 = vmatpush3.bf16.msra.mxu0 %v2529_v8  ;;  %4000 = vmatprep.mubr.msk.bf16.mxu0 %vm4505_vm0, %v4504_v0 }
 0x5de   :  { %4010 = vmatprep.subr.bf16.mxu0 %v4504_v0 }
 0x5e4   :  { %4001 = vmatmul.mubr.msk.bf16.vlgmr.msra.gmra.mxu0 %vm454_vm2, %v2522_v55 }
 0x5e5   :  { %4011 = vmatpush3.bf16.msra.mxu0 %v2640_v51  ;;  %4012 = vmatprep.mubr.msk.bf16.mxu0 %vm4505_vm0, %v4504_v0 }
 0x5e6   :  { %4022 = vmatprep.subr.bf16.mxu0 %v4504_v0 }
 0x5e8   :  { %v2852_v24 = vpop.xlane.xlu1 %2851 }
 0x5e9   :  { %4287 = vrcp.f32 %v2852_v24 }
 0x5ec   :  { %4013 = vmatmul.mubr.msk.bf16.vlgmr.msra.gmra.mxu0 %vm454_vm2, %v2633_v38  ;;  %v2968_v32 = vpop.permute.xlu1 %2967 }
 0x5ed   :  { %4023 = vmatpush3.bf16.msra.mxu0 %v2751_v5  ;;  %4024 = vmatprep.mubr.msk.bf16.mxu0 %vm4505_vm0, %v4504_v0  ;;  %v2973_v14 = vsel %vm517_vm3, %v2968_v32, 0 }
 0x5ee   :  { %4034 = vmatprep.subr.bf16.mxu0 %v4504_v0 }
 0x5f0   :  { %v2963_v41 = vpop.xlane.xlu0 %2962 }
 0x5f1   :  { %4289 = vrcp.f32 %v2963_v41 }
 0x5f4   :  { %4025 = vmatmul.mubr.msk.bf16.vlgmr.msra.gmra.mxu0 %vm454_vm2, %v2744_v60  ;;  %v3185_v20 = vpop.xlane.xlu0 %3184 }
 0x5f5   :  { %4035 = vmatpush3.bf16.msra.mxu0 %v2862_v50  ;;  %4036 = vmatprep.mubr.msk.bf16.mxu0 %vm4505_vm0, %v4504_v0 }
 0x5f6   :  { %v4288_v37 = vpop.eup %4287  ;;  %4046 = vmatprep.subr.bf16.mxu0 %v4504_v0 }
 0x5f7   :  { %v5493_v49 = vmul.f32 %v4288_v37, %v5304_v42 }
 0x5f8   :  { %v3079_v21 = vpop.permute.xlu0 %3078 }
 0x5f9   :  { %v2855_v44 = vpack.c.bf16 %v5493_v49, %v5493_v49  ;;  %v3084_v61 = vsel %vm517_vm3, %v3079_v21, 0 }
 0x5fc   :  { %4037 = vmatmul.mubr.msk.bf16.vlgmr.msra.gmra.mxu0 %vm454_vm2, %v2855_v44 }
 0x5fd   :  { %4047 = vmatpush3.bf16.msra.mxu0 %v2973_v14  ;;  %4048 = vmatprep.mubr.msk.bf16.mxu0 %vm4505_vm0, %v4504_v0 }
 0x5fe   :  { %v4290_v3 = vpop.eup %4289  ;;  %v5501_v18 = vpop.f32.mrf.mxu0  ;;  %4058 = vmatprep.subr.bf16.mxu0 %v4504_v0 }
 0x5ff   :  { %v5505_v42 = vmul.f32 %v4290_v3, %v5319_v54 }
 0x600   :  { %v3810_v57 = vpop.f32.mrf.mxu0 }
 0x601   :  { %v2966_v63 = vpack.c.bf16 %v5505_v42, %v5505_v42 }
 0x602   :  { %v672_v29 = vpop.f32.mrf.mxu0 }
 0x604   :  { %4049 = vmatmul.mubr.msk.bf16.vlgmr.msra.gmra.mxu0 %vm454_vm2, %v2966_v63  ;;  %v3811_v39 = vpop.f32.mrf.mxu0 }
 0x605   :  { %4059 = vmatpush3.bf16.msra.mxu0 %v3084_v61  ;;  %4060 = vmatprep.mubr.msk.bf16.mxu0 %vm4505_vm0, %v4504_v0 }
 0x606   :  { %4070 = vmatprep.subr.bf16.mxu0 %v4504_v0  ;;  %v5514_v28 = vpop.f32.mrf.mxu0 }
 0x608   :  { %v3822_v54 = vpop.f32.mrf.mxu0 }
 0x60a   :  { %v783_v45 = vpop.f32.mrf.mxu0 }
 0x60c   :  { %v3823_v27 = vpop.f32.mrf.mxu0 }
 0x60e   :  { %v5516_v22 = vpop.f32.mrf.mxu0 }
 0x610   :  { %v3834_v13 = vpop.f32.mrf.mxu0 }
 0x612   :  { %v894_v31 = vpop.f32.mrf.mxu0 }
 0x614   :  { %v3835_v25 = vpop.f32.mrf.mxu0 }
 0x616   :  { %v5518_v1 = vpop.f32.mrf.mxu0 }
 0x618   :  { %v3846_v59 = vpop.f32.mrf.mxu0 }
 0x61a   :  { %v1005_v2 = vpop.f32.mrf.mxu0 }
 0x61c   :  { %v3847_v52 = vpop.f32.mrf.mxu0 }
 0x61d   :  { %v3074_v8 = vpop.xlane.xlu1 %3073 }
 0x61e   :  { %4291 = vrcp.f32 %v3074_v8  ;;  %v5520_v55 = vpop.f32.mrf.mxu0 }
 0x61f   :  { %4293 = vrcp.f32 %v3185_v20 }
 0x620   :  { %v3858_v33 = vpop.f32.mrf.mxu0 }
 0x621   :  { %v3190_v41 = vpop.permute.xlu1 %3189 }
 0x622   :  { %v1116_v51 = vpop.f32.mrf.mxu0  ;;  %v3195_v44 = vsel %vm517_vm3, %v3190_v41, 0 }
 0x624   :  { %v3859_v6 = vpop.f32.mrf.mxu0 }
 0x626   :  { %v5522_v24 = vpop.f32.mrf.mxu0 }
 0x628   :  { %v3870_v53 = vpop.f32.mrf.mxu0 }
 0x62a   :  { %v1227_v9 = vpop.f32.mrf.mxu0 }
 0x62b   :  { %v4292_v38 = vpop.eup %4291 }
 0x62c   :  { %v5525_v5 = vmul.f32 %v4292_v38, %v5376_v35  ;;  %v3871_v60 = vpop.f32.mrf.mxu0  ;;  %v4294_v37 = vpop.eup %4293 }
 0x62d   :  { %v5536_v35 = vmul.f32 %v4294_v37, %v5325_v10 }
 0x62e   :  { %v3077_v50 = vpack.c.bf16 %v5525_v5, %v5525_v5  ;;  %v5529_v32 = vpop.f32.mrf.mxu0 }
 0x62f   :  { %v3188_v57 = vpack.c.bf16 %v5536_v35, %v5536_v35 }
 0x630   :  { %4061 = vmatmul.mubr.msk.bf16.vlgmr.msra.gmra.mxu0 %vm454_vm2, %v3077_v50  ;;  %v3882_v20 = vpop.f32.mrf.mxu0 }
 0x631   :  { %4071 = vmatpush3.bf16.msra.mxu0 %v3195_v44  ;;  %4072 = vmatprep.mubr.msk.bf16.mxu0 %vm4505_vm0, %v4504_v0 }
 0x632   :  { %v1338_v14 = vpop.f32.mrf.mxu0 }
 0x634   :  { %v3883_v3 = vpop.f32.mrf.mxu0 }
 0x636   :  { %v5540_v21 = vpop.f32.mrf.mxu0 }
 0x638   :  { %4073 = vmatmul.mubr.msk.bf16.vlgmr.msra.gmra.mxu0 %vm454_vm2, %v3188_v57  ;;  %v3894_v63 = vpop.f32.mrf.mxu0 }
 0x63a   :  { %v1449_v29 = vpop.f32.mrf.mxu0 }
 0x63c   :  { %v3895_v61 = vpop.f32.mrf.mxu0 }
 0x63e   :  { %v5543_v39 = vpop.f32.mrf.mxu0 }
 0x640   :  { %v3906_v54 = vpop.f32.mrf.mxu0 }
 0x642   :  { %v1560_v45 = vpop.f32.mrf.mxu0 }
 0x644   :  { %v3907_v27 = vpop.f32.mrf.mxu0 }
 0x66b   :  { %v5545_v13 = vpop.f32.mrf.mxu0 }
 0x66d   :  { %v3918_v10 = vpop.f32.mrf.mxu0 }
 0x66f   :  { %v1671_v31 = vpop.f32.mrf.mxu0 }
 0x671   :  { %v3919_v25 = vpop.f32.mrf.mxu0 }
 0x674   :  { %v5547_v59 = vpop.f32.mrf.mxu0 }
 0x676   :  { %v3930_v2 = vpop.f32.mrf.mxu0 }
 0x678   :  { %v1782_v52 = vpop.f32.mrf.mxu0 }
 0x67a   :  { %v3931_v8 = vpop.f32.mrf.mxu0 }
 0x67c   :  { %v5549_v33 = vpop.f32.mrf.mxu0 }
 0x67e   :  { %v3942_v51 = vpop.f32.mrf.mxu0 }
 0x680   :  { %v2010_v6 = vpop.f32.mrf.mxu0 }
 0x682   :  { %v3943_v53 = vpop.f32.mrf.mxu0 }
 0x684   :  { %v2121_v38 = vpop.f32.mrf.mxu0 }
 0x685   :  { %v4120_v9 = vpack.i.bf16 %v2121_v38, %v5501_v18 }
 0x686   :  { %v3954_v41 = vpop.f32.mrf.mxu0 }
 0x687   :  { %4121 = vrot.lane.b32.xlu1 %v4120_v9, %s4496_s19 }
 0x688   :  { %v2124_v60 = vpop.f32.mrf.mxu0 }
 0x68a   :  { %v3955_v50 = vpop.f32.mrf.mxu0 }
 0x68b   :  { %v4193_v50 = vld [vmem:[#allocation13 + $0x28] sm:$0xff]  }
 0x68c   :  { %v2232_v37 = vpop.f32.mrf.mxu0  ;;  %4077 = vmatpush3.bf16.msra.mxu1 %v4193_v50 }
 0x68d   :  { %v4125_v44 = vpack.i.bf16 %v2232_v37, %v5514_v28  ;;  %4078 = vmatprep.subr.bf16.mxu1 %v4504_v0 }
 0x68e   :  { %v3966_v20 = vpop.f32.mrf.mxu0 }
 0x68f   :  { %4126 = vrot.lane.b32.xlu1 %v4125_v44, %s4516_s8  ;;  %v4194_v44 = vld [vmem:[#allocation13 + $0x20] sm:$0xff]  }
 0x690   :  { %v2235_v14 = vpop.f32.mrf.mxu0  ;;  %4079 = vmatpush3.bf16.msra.mxu1 %v4194_v44 }
 0x691   :  { %4080 = vmatprep.subr.bf16.mxu1 %v4504_v0 }
 0x692   :  { %v3967_v3 = vpop.f32.mrf.mxu0 }
 0x693   :  { %v4195_v3 = vld [vmem:[#allocation13 + $0x18] sm:$0xff]  }
 0x694   :  { %v2343_v57 = vpop.f32.mrf.mxu0  ;;  %4081 = vmatpush3.bf16.msra.mxu1 %v4195_v3 }
 0x695   :  { %v4130_v63 = vpack.i.bf16 %v2343_v57, %v5516_v22  ;;  %4082 = vmatprep.subr.bf16.mxu1 %v4504_v0 }
 0x696   :  { %v3978_v29 = vpop.f32.mrf.mxu0 }
 0x697   :  { %4131 = vrot.lane.b32.xlu1 %v4130_v63, %s4517_s1 }
 0x698   :  { %v2346_v18 = vpop.f32.mrf.mxu0 }
 0x69a   :  { %v3979_v61 = vpop.f32.mrf.mxu0 }
 0x69b   :  { %v4196_v61 = vld [vmem:[#allocation13 + $0x10] sm:$0xff]  }
 0x69c   :  { %v2454_v54 = vpop.f32.mrf.mxu0  ;;  %4083 = vmatpush3.bf16.msra.mxu1 %v4196_v61 }
 0x69d   :  { %v4135_v45 = vpack.i.bf16 %v2454_v54, %v5518_v1  ;;  %4084 = vmatprep.subr.bf16.mxu1 %v4504_v0  ;;  %v4197_v54 = vld [vmem:[#allocation13 + $0x8] sm:$0xff]  }
 0x69e   :  { %v3990_v27 = vpop.f32.mrf.mxu0 }
 0x69f   :  { %4136 = vrot.lane.b32.xlu1 %v4135_v45, %s4518_s30  ;;  %v4198_v45 = vld [vmem:[#allocation13] sm:$0xff]  }
 0x6a0   :  { %v2457_v28 = vpop.f32.mrf.mxu0  ;;  %4085 = vmatpush3.bf16.msra.mxu1 %v4197_v54 }
 0x6a1   :  { %4086 = vmatprep.subr.bf16.mxu1 %v4504_v0 }
 0x6a2   :  { %v3991_v10 = vpop.f32.mrf.mxu0 }
 0x6a4   :  { %v2565_v31 = vpop.f32.mrf.mxu0  ;;  %4087 = vmatpush3.bf16.msra.mxu1 %v4198_v45 }
 0x6a5   :  { %v4140_v25 = vpack.i.bf16 %v2565_v31, %v5520_v55 }
 0x6a6   :  { %v4002_v2 = vpop.f32.mrf.mxu0 }
 0x6a7   :  { %4141 = vrot.lane.b32.xlu1 %v4140_v25, %s4515_s28 }
 0x6a8   :  { %v2568_v22 = vpop.f32.mrf.mxu0 }
 0x6aa   :  { %v4003_v52 = vpop.f32.mrf.mxu0 }
 0x6ac   :  { %v2676_v8 = vpop.f32.mrf.mxu0 }
 0x6ad   :  { %v4145_v51 = vpack.i.bf16 %v2676_v8, %v5522_v24 }
 0x6ae   :  { %v4014_v6 = vpop.f32.mrf.mxu0 }
 0x6af   :  { %4146 = vrot.lane.b32.xlu0 %v4145_v51, %s4514_s27 }
 0x6b0   :  { %v2679_v1 = vpop.f32.mrf.mxu0 }
 0x6b2   :  { %v4015_v53 = vpop.f32.mrf.mxu0 }
 0x6b4   :  { %v2787_v38 = vpop.f32.mrf.mxu0 }
 0x6b5   :  { %v4150_v9 = vpack.i.bf16 %v2787_v38, %v5529_v32 }
 0x6b6   :  { %v4026_v41 = vpop.f32.mrf.mxu0 }
 0x6b7   :  { %4151 = vrot.lane.b32.xlu1 %v4150_v9, %s4513_s7 }
 0x6b8   :  { %v2790_v55 = vpop.f32.mrf.mxu0 }
 0x6ba   :  { %v4027_v60 = vpop.f32.mrf.mxu0 }
 0x6bc   :  { %v2898_v37 = vpop.f32.mrf.mxu0 }
 0x6bd   :  { %v4155_v20 = vpack.i.bf16 %v2898_v37, %v5540_v21 }
 0x6be   :  { %v4038_v24 = vpop.f32.mrf.mxu0 }
 0x6bf   :  { %4156 = vrot.lane.b32.xlu0 %v4155_v20, %s4497_s23 }
 0x6c0   :  { %v2901_v14 = vpop.f32.mrf.mxu0 }
 0x6c2   :  { %v4039_v32 = vpop.f32.mrf.mxu0 }
 0x6c4   :  { %v3009_v57 = vpop.f32.mrf.mxu0 }
 0x6c5   :  { %v4160_v63 = vpack.i.bf16 %v3009_v57, %v5543_v39 }
 0x6c6   :  { %v4050_v29 = vpop.f32.mrf.mxu0 }
 0x6c7   :  { %4161 = vrot.lane.b32.xlu1 %v4160_v63, %s4512_s26 }
 0x6c8   :  { %v3012_v21 = vpop.f32.mrf.mxu0 }
 0x6ca   :  { %v4051_v18 = vpop.f32.mrf.mxu0 }
 0x6f0   :  { %v3120_v27 = vpop.f32.mrf.mxu0 }
 0x6f1   :  { %v4165_v39 = vpack.i.bf16 %v3120_v27, %v5545_v13 }
 0x6f2   :  { %v4062_v28 = vpop.f32.mrf.mxu0 }
 0x6f3   :  { %4166 = vrot.lane.b32.xlu0 %v4165_v39, %s4511_s25 }
 0x6f4   :  { %v3123_v10 = vpop.f32.mrf.mxu0 }
 0x6f6   :  { %v4063_v31 = vpop.f32.mrf.mxu0 }
 0x6f7   :  { %1851 = vrot.lane.b32.xlu0 %v5251_v56, %s4496_s19 }
 0x6f8   :  { %v3231_v25 = vpop.f32.mrf.mxu0 }
 0x6f9   :  { %v4170_v2 = vpack.i.bf16 %v3231_v25, %v5547_v59  ;;  %v4122_v56 = vpop.permute.xlu1 %4121 }
 0x6fa   :  { %v4074_v22 = vpop.f32.mrf.mxu0  ;;  %v4123_v1 = vunpack.i.l.bf16 %v4122_v56 }
 0x6fb   :  { %1859 = vrot.lane.b32.xlu0 %v5278_v17, %s4517_s1  ;;  %4171 = vrot.lane.b32.xlu1 %v4170_v2, %s4510_s22  ;;  %v4124_v17 = vunpack.i.h.bf16 %v4122_v56 }
 0x6fc   :  { %v3234_v0 = vpop.f32.mrf.mxu0  ;;  %v1829_v50 = vsel %vm454_vm2, %v5023_v16, %v4123_v1 }
 0x6fd   :  { %v3281_v60 = vsel %vm454_vm2, %v5549_v33, %v4124_v17 }
 0x6fe   :  { %v4075_v52 = vpop.f32.mrf.mxu0 }
 0x6ff   :  { %1855 = vrot.lane.b32.xlu1 %v5264_v4, %s4516_s8 }
 0x701   :  { %v4127_v13 = vpop.permute.xlu1 %4126 }
 0x702   :  { %v4129_v53 = vunpack.i.h.bf16 %v4127_v13  ;;  %v4128_v38 = vunpack.i.l.bf16 %v4127_v13 }
 0x703   :  { %1863 = vrot.lane.b32.xlu1 %v5291_v30, %s4518_s30 }
 0x704   :  { %v1831_v3 = vsel %vm1830_vm4, %v1829_v50, %v4128_v38  ;;  %v3282_v32 = vsel %vm1830_vm4, %v3281_v60, %v4129_v53 }
 0x707   :  { %1871 = vrot.lane.b32.xlu1 %v5317_v62, %s4514_s27 }
 0x709   :  { %v4132_v59 = vpop.permute.xlu1 %4131 }
 0x70a   :  { %v4134_v4 = vunpack.i.h.bf16 %v4132_v59  ;;  %v4133_v30 = vunpack.i.l.bf16 %v4132_v59 }
 0x70c   :  { %v1833_v21 = vsel %vm1832_vm5, %v1831_v3, %v4133_v30  ;;  %v3283_v18 = vsel %vm1832_vm5, %v3282_v32, %v4134_v4  ;;  %v3606_v4 = vld [vmem:[%s5720_s10] ss:$0 sm:$0xff]  ;;  %s4519_s10 = smov [#allocation15]  }
 0x711   :  { %v4137_v8 = vpop.permute.xlu1 %4136 }
 0x712   :  { %v4139_v62 = vunpack.i.h.bf16 %v4137_v8  ;;  %v4138_v55 = vunpack.i.l.bf16 %v4137_v8 }
 0x714   :  { %v1835_v16 = vsel %vm1834_vm6, %v1833_v21, %v4138_v55  ;;  %v3284_v54 = vsel %vm1834_vm6, %v3283_v18, %v4139_v62  ;;  %v4299_v55 = vld [vmem:[#allocation2] sm:$0xff] }
 0x719   :  { %v4142_v51 = vpop.permute.xlu1 %4141 }
 0x71a   :  { %v4144_v37 = vunpack.i.h.bf16 %v4142_v51  ;;  %v4143_v44 = vunpack.i.l.bf16 %v4142_v51 }
 0x71c   :  { %v1837_v39 = vsel %vm1836_vm7, %v1835_v16, %v4143_v44  ;;  %v3285_v28 = vsel %vm1836_vm7, %v3284_v54, %v4144_v37 }
 0x721   :  { %v4147_v6 = vpop.permute.xlu0 %4146 }
 0x722   :  { %v4149_v20 = vunpack.i.h.bf16 %v4147_v6  ;;  %v4148_v24 = vunpack.i.l.bf16 %v4147_v6 }
 0x724   :  { %v1839_v25 = vsel %vm1838_vm8, %v1837_v39, %v4148_v24  ;;  %v3286_v2 = vsel %vm1838_vm8, %v3285_v28, %v4149_v20  ;;  %v4300_v24 = vld [vmem:[#allocation2 + $0x8] sm:$0xff] }
 0x729   :  { %v4152_v9 = vpop.permute.xlu1 %4151 }
 0x72a   :  { %v4154_v57 = vunpack.i.h.bf16 %v4152_v9  ;;  %v4153_v63 = vunpack.i.l.bf16 %v4152_v9 }
 0x72c   :  { %v1841_v22 = vsel %vm1840_vm9, %v1839_v25, %v4153_v63  ;;  %v3287_v0 = vsel %vm1840_vm9, %v3286_v2, %v4154_v57 }
 0x731   :  { %v4157_v41 = vpop.permute.xlu0 %4156 }
 0x732   :  { %v4159_v33 = vunpack.i.h.bf16 %v4157_v41  ;;  %v4158_v61 = vunpack.i.l.bf16 %v4157_v41 }
 0x734   :  { %v1843_v56 = vsel %vm1842_vm10, %v1841_v22, %v4158_v61  ;;  %v3288_v13 = vsel %vm1842_vm10, %v3287_v0, %v4159_v33 }
 0x739   :  { %v4162_v14 = vpop.permute.xlu1 %4161 }
 0x73a   :  { %v4164_v45 = vunpack.i.h.bf16 %v4162_v14  ;;  %v4163_v27 = vunpack.i.l.bf16 %v4162_v14 }
 0x73c   :  { %v1845_v51 = vsel %vm1844_vm11, %v1843_v56, %v4163_v27  ;;  %v3289_v6 = vsel %vm1844_vm11, %v3288_v13, %v4164_v45 }
 0x765   :  { %v4167_v29 = vpop.permute.xlu0 %4166 }
 0x766   :  { %v4169_v10 = vunpack.i.h.bf16 %v4167_v29  ;;  %v4168_v31 = vunpack.i.l.bf16 %v4167_v29 }
 0x768   :  { %v1847_v17 = vsel %vm1846_vm12, %v1845_v51, %v4168_v31  ;;  %v3290_v1 = vsel %vm1846_vm12, %v3289_v6, %v4169_v10 }
 0x76d   :  { %v4172_v52 = vpop.permute.xlu1 %4171 }
 0x76e   :  { %v4174_v59 = vunpack.i.h.bf16 %v4172_v52  ;;  %v4173_v8 = vunpack.i.l.bf16 %v4172_v52 }
 0x770   :  { %v1849_v53 = vsel %vm1848_vm13, %v1847_v17, %v4173_v8  ;;  %v3291_v38 = vsel %vm1848_vm13, %v3290_v1, %v4174_v59 }
 0x771   :  { %v3347_v9 = vpack.c.bf16 %v3291_v38, %v1849_v53 }
 0x773   :  { %4089 = vmatmul.mubr.msk.bf16.vlgmr.msra.gmra.mxu1 %vm202_vm1, %v3347_v9 }
 0x833   :  { %v3440_v30 = vpop.f32.mrf.mxu1 }
 0x834   :  { %v3441_v41 = vadd.f32 %v3606_v4, %v3440_v30 }
 0x835   :  { %v4090_v62 = vpop.f32.mrf.mxu1 }
 0x836   :  { %v3447_v60 = vadd.f32 %v4299_v55, %v3441_v41 }
 0x837   :  { %v3443_v50 = vpop.f32.mrf.mxu1 }
 0x838   :  { %v3444_v37 = vadd.f32 %v3606_v4, %v3443_v50  ;;  %v3449_v44 = vsel %vm202_vm1, %v3447_v60, 0.0 }
 0x839   :  { %3450 = vadd.xlane.f32.xlu0 %v3449_v44  ;;  %v4091_v20 = vpop.f32.mrf.mxu1 }
 0x83a   :  { %v3448_v14 = vadd.f32 %v4300_v24, %v3444_v37 }
 0x83c   :  { %v3452_v3 = vsel %vm202_vm1, %v3448_v14, 0.0 }
 0x83d   :  { %3453 = vadd.xlane.f32.xlu1 %v3452_v3 }
 0x84e   :  { %1879 = vrot.lane.b32.xlu1 %v5351_v43, %s4497_s23 }
 0x84f   :  { %1867 = vrot.lane.b32.xlu0 %v5302_v11, %s4515_s28  ;;  %v1856_v11 = vpop.permute.xlu1 %1855 }
 0x852   :  { %1887 = vrot.lane.b32.xlu1 %v5385_v15, %s4511_s25 }
 0x853   :  { %1875 = vrot.lane.b32.xlu0 %v5338_v46, %s4513_s7  ;;  %v1852_v46 = vpop.permute.xlu0 %1851  ;;  %v1864_v43 = vpop.permute.xlu1 %1863 }
 0x854   :  { %v1894_v15 = vsel %vm454_vm2, %v4874_v34, %v1852_v46 }
 0x856   :  { %3293 = vrot.lane.b32.xlu1 %v5418_v58, %s4496_s19 }
 0x857   :  { %1883 = vrot.lane.b32.xlu0 %v5362_v19, %s4512_s26  ;;  %v1860_v19 = vpop.permute.xlu0 %1859  ;;  %v1872_v58 = vpop.permute.xlu1 %1871 }
 0x85a   :  { %3301 = vrot.lane.b32.xlu1 %v5440_v12, %s4517_s1 }
 0x85b   :  { %1891 = vrot.lane.b32.xlu0 %v5396_v47, %s4510_s22  ;;  %v1895_v47 = vsel %vm1830_vm4, %v1894_v15, %v1856_v11 }
 0x85e   :  { %3309 = vrot.lane.b32.xlu1 %v5462_v7, %s4515_s28 }
 0x85f   :  { %3297 = vrot.lane.b32.xlu0 %v5429_v48, %s4516_s8 }
 0x862   :  { %3317 = vrot.lane.b32.xlu1 %v5483_v26, %s4513_s7 }
 0x863   :  { %3305 = vrot.lane.b32.xlu0 %v5451_v23, %s4518_s30  ;;  %v1896_v23 = vsel %vm1832_vm5, %v1895_v47, %v1860_v19 }
 0x864   :  { %v1897_v26 = vsel %vm1834_vm6, %v1896_v23, %v1864_v43 }
 0x866   :  { %3325 = vrot.lane.b32.xlu1 %v5505_v42, %s4512_s26 }
 0x867   :  { %3313 = vrot.lane.b32.xlu0 %v5473_v36, %s4514_s27 }
 0x8c2   :  { %v3451_v48 = vpop.xlane.xlu0 %3450 }
 0x8c3   :  { %v3456_v12 = vmul.f32 0.010416667, %v3451_v48 }
 0x8c5   :  { %v5650_v7 = vsub.f32 %v3447_v60, %v3456_v12 }
 0x8c6   :  { %v1868_v42 = vpop.permute.xlu0 %1867  ;;  %v3454_v36 = vpop.xlane.xlu1 %3453 }
 0x8c7   :  { %v1898_v32 = vsel %vm1836_vm7, %v1897_v26, %v1868_v42  ;;  %v3457_v57 = vmul.f32 0.010416667, %v3454_v36  ;;  %v3460_v63 = vmul.f32 %v5650_v7, %v5650_v7 }
 0x8c8   :  { %v1899_v21 = vsel %vm1838_vm8, %v1898_v32, %v1872_v58 }
 0x8c9   :  { %v5656_v34 = vsub.f32 %v3448_v14, %v3457_v57  ;;  %v3462_v29 = vsel %vm202_vm1, %v3460_v63, 0.0 }
 0x8ca   :  { %3463 = vadd.xlane.f32.xlu0 %v3462_v29  ;;  %v1876_v18 = vpop.permute.xlu0 %1875  ;;  %v1880_v33 = vpop.permute.xlu1 %1879 }
 0x8cb   :  { %v1900_v61 = vsel %vm1840_vm9, %v1899_v21, %v1876_v18  ;;  %v3461_v16 = vmul.f32 %v5656_v34, %v5656_v34 }
 0x8cc   :  { %v1901_v45 = vsel %vm1842_vm10, %v1900_v61, %v1880_v33 }
 0x8cd   :  { %v3465_v54 = vsel %vm202_vm1, %v3461_v16, 0.0 }
 0x8ce   :  { %v1884_v27 = vpop.permute.xlu0 %1883  ;;  %3466 = vadd.xlane.f32.xlu1 %v3465_v54  ;;  %v1888_v28 = vpop.permute.xlu1 %1887 }
 0x8cf   :  { %v1902_v39 = vsel %vm1844_vm11, %v1901_v45, %v1884_v27 }
 0x8d0   :  { %v1903_v10 = vsel %vm1846_vm12, %v1902_v39, %v1888_v28 }
 0x8d2   :  { %v1892_v31 = vpop.permute.xlu0 %1891  ;;  %v3294_v2 = vpop.permute.xlu1 %3293 }
 0x8d3   :  { %v1904_v25 = vsel %vm1848_vm13, %v1903_v10, %v1892_v31  ;;  %v3336_v13 = vsel %vm454_vm2, %v5407_v40, %v3294_v2 }
 0x8d4   :  { %3496 = vst.msk [vmem:[#allocation15] sm:$0xff] %vm202_vm1, %v1904_v25 }
 0x8d6   :  { %v3302_v22 = vpop.permute.xlu1 %3301  ;;  %v3298_v0 = vpop.permute.xlu0 %3297 }
 0x8d7   :  { %v3337_v59 = vsel %vm1830_vm4, %v3336_v13, %v3298_v0 }
 0x8d8   :  { %v3338_v51 = vsel %vm1832_vm5, %v3337_v59, %v3302_v22 }
 0x8da   :  { %v3310_v52 = vpop.permute.xlu1 %3309  ;;  %v3306_v56 = vpop.permute.xlu0 %3305 }
 0x8db   :  { %v3339_v6 = vsel %vm1834_vm6, %v3338_v51, %v3306_v56 }
 0x8de   :  { %v3318_v8 = vpop.permute.xlu1 %3317 }
 0x8df   :  { %3333 = vrot.lane.b32.xlu1 %v5536_v35, %s4510_s22  ;;  %v3314_v35 = vpop.permute.xlu0 %3313 }
 0x8e0   :  { %3321 = vrot.lane.b32.xlu0 %v5493_v49, %s4497_s23  ;;  %v3340_v49 = vsel %vm1836_vm7, %v3339_v6, %v3310_v52  ;;  %s3515_s23 = sshll.u32 %s4519_s10, 4  ;;  %s3516_s23 = int_to_ptr.vmem [resolvable:$true] %s3515_s23 }
 0x8e1   :  { %v3341_v1 = vsel %vm1838_vm8, %v3340_v49, %v3314_v35  ;;  %s4441_s2 = scalar_lea.vmem %s3516_s23, 256  ;;  %p4446_p8 = scmp.lt.s32.totalorder %s3516_s23, %s3516_s23 }
 0x8e2   :  { %v3326_v17 = vpop.permute.xlu1 %3325  ;;  %v3342_v9 = vsel %vm1840_vm9, %v3341_v1, %v3318_v8  ;;  %p4442_p7 = scmp.ne.s32.totalorder %s3516_s23, %s4441_s2  ;;  %p4447_p9 = scmp.lt.s32.totalorder %s4441_s2, %s4441_s2 }
 0x8e4   :  { %3329 = vrot.lane.b32.xlu0 %v5525_v5, %s4511_s25  ;;  %p4448_p10 = por %p4447_p9, %p4446_p8 }
 0x8e6   :  { %p4449_p11 = pnand %p4448_p10, %p4442_p7 }
 0x953   :  { %v3464_v5 = vpop.xlane.xlu0 %3463 }
 0x954   :  { %v3468_v53 = vmul.f32 0.010416667, %v3464_v5 }
 0x956   :  { %v3470_v38 = vadd.f32 1e-06, %v3468_v53 }
 0x957   :  { %v3322_v4 = vpop.permute.xlu0 %3321  ;;  %v3467_v40 = vpop.xlane.xlu1 %3466 }
 0x958   :  { %4295 = vrsqrt.f32 %v3470_v38  ;;  %v3343_v30 = vsel %vm1842_vm10, %v3342_v9, %v3322_v4  ;;  %v3469_v41 = vmul.f32 0.010416667, %v3467_v40 }
 0x959   :  { %v3344_v60 = vsel %vm1844_vm11, %v3343_v30, %v3326_v17 }
 0x95a   :  { %v3471_v62 = vadd.f32 1e-06, %v3469_v41 }
 0x95b   :  { %v3330_v55 = vpop.permute.xlu0 %3329  ;;  %v3334_v50 = vpop.permute.xlu1 %3333 }
 0x95c   :  { %4297 = vrsqrt.f32 %v3471_v62  ;;  %v3345_v37 = vsel %vm1846_vm12, %v3344_v60, %v3330_v55 }
 0x95d   :  { %v3346_v44 = vsel %vm1848_vm13, %v3345_v37, %v3334_v50 }
 0x95e   :  { %3497 = vst.msk [vmem:[#allocation15 + $0x8] sm:$0xff] %vm202_vm1, %v3346_v44 }
 0x95f   :  { %4452 = shalt.err (!%p4449_p11)
}
 0x960   :  { %3521 = dma.vmem_to_hbm [thread:$0]  %s3516_s23, 256, %s5724_s14, [#allocation16], %s4495_s18, %s4495_s18, %s4496_s19  }
 0x961   :  { %v3614_v24 = vld [vmem:[%s5721_s11] ss:$0 sm:$0xff]  ;;  %s4520_s4 = smov [#allocation14]  }
 0x962   :  { %v3615_v3 = vld [vmem:[%s5722_s12] ss:$0 sm:$0xff]  ;;  %s3503_s6 = sshll.u32 %s4520_s4, 4  ;;  %s3504_s6 = int_to_ptr.vmem [resolvable:$true] %s3503_s6 }
 0x963   :  { %s4461_s11 = scalar_lea.vmem %s3504_s6, 256  ;;  %p4466_p13 = scmp.lt.s32.totalorder %s3504_s6, %s3504_s6 }
 0x964   :  { %p4462_p12 = scmp.ne.s32.totalorder %s3504_s6, %s4461_s11  ;;  %p4467_p0 = scmp.lt.s32.totalorder %s4461_s11, %s4461_s11 }
 0x965   :  { %v4296_v20 = vpop.eup %4295 }
 0x966   :  { %v3474_v14 = vmul.f32 %v4296_v20, %v5650_v7  ;;  %p4468_p1 = por %p4467_p0, %p4466_p13 }
 0x968   :  { %v3483_v11 = vmul.f32 %v3614_v24, %v3474_v14  ;;  %p4469_p2 = pnand %p4468_p1, %p4462_p12 }
 0x969   :  { %v4298_v46 = vpop.eup %4297 }
 0x96a   :  { %v3475_v43 = vmul.f32 %v4298_v46, %v5656_v34  ;;  %v3492_v19 = vadd.f32 %v3615_v3, %v3483_v11 }
 0x96c   :  { %v3484_v15 = vmul.f32 %v3614_v24, %v3475_v43  ;;  %3494 = vst.msk [vmem:[#allocation14] sm:$0xff] %vm202_vm1, %v3492_v19 }
 0x96e   :  { %v3493_v47 = vadd.f32 %v3615_v3, %v3484_v15 }
 0x970   :  { %3495 = vst.msk [vmem:[#allocation14 + $0x8] sm:$0xff] %vm202_vm1, %v3493_v47 }
 0x971   :  { %4472 = shalt.err (!%p4469_p2)
}
 0x972   :  { %3509 = dma.vmem_to_hbm [thread:$0]  %s3504_s6, 256, %s5723_s13, [#allocation4], %s4495_s18, %s4495_s18, %s4496_s19  }
 0x973   :  { %4489 = dma.done.wait [#allocation4], 256  }
 0x974   :  { %4490 = vsyncadd [#allocation4], 4294967040 }
 0x975   :  { %4491 = dma.done.wait [#allocation16], 256  }
 0x976   :  { %4492 = vsyncadd [#allocation16], 4294967040 }
 0x977   :  { %3528 = vsyncpa [#allocation3], 1 }
 0x978   :  { %3529 = vsyncpa [#allocation6], 1 }
 0x979   :  { %3530 = vsyncpa [#allocation9], 1 }
 0x97a   :  { %3531 = vsyncpa [#allocation12], 1 }
 0x97b   :  { %3532 = vsyncpa [#allocation4], 1 }
 0x97c   :  { %3533 = vsyncpa [#allocation16], 1 }

</bundles_post_ra>
